<compile_context>
chip_gen: v5e
topology: v5e:2x2
jax: 0.10.0
libtpu: 0.0.40
codegen_flags: <defaults>
</compile_context>

<pallas_src>
from functools import lru_cache, partial

import jax
import jax.numpy as jnp
from jax import lax
from jax.experimental import pallas as pl
from jax.experimental.pallas import tpu as pltpu


# ----------------------------------------------------------------------------
# hardware-aware knobs
# ----------------------------------------------------------------------------
@lru_cache(maxsize=1)
def _vmem_limit_bytes():
    """~70% of physical VMEM: ~44 MiB on v7x (64 MiB/TC), ~89 MiB on v5e/v6e."""
    cap = 128 * 1024 * 1024
    try:
        v = getattr(pltpu.get_tpu_info(), "vmem_capacity_bytes", None)
        if v:
            cap = int(v)
    except Exception:
        pass
    return int(cap * 0.7)


def _pick_tile(dim, candidates):
    for c in candidates:
        if c <= dim and dim % c == 0:
            return c
    return dim  # full extent (always legal as a block dim)


def _pick_tm(B, candidates=(256, 128, 64, 32, 16, 8)):
    # Prefer >=2 batch blocks so the "parallel" axis can shard across the two
    # v7x TensorCores; fall back to a single block for tiny B.
    for c in candidates:
        if 2 * c <= B and B % c == 0:
            return c
    for c in candidates:
        if c <= B and B % c == 0:
            return c
    return B


# ----------------------------------------------------------------------------
# Kernel 1: fused  encoder-stub -> projection -> L2 normalize
#   h    = relu(x @ W_enc + b_enc)       (stub for visual/text transformer)
#   emb  = h @ W_proj + b_proj           (vision_proj / text_proj Linear)
#   feat = emb * rsqrt(max(||emb||^2, 1e-24))   == F.normalize(emb, dim=-1)
# Two variants: single-K-step (no accumulator scratch) and K-tiled fallback.
# ----------------------------------------------------------------------------
def _encode_fused_kernel(x_ref, w_enc_ref, b_enc_ref, w_proj_ref, b_proj_ref,
                         feat_ref):
    # Whole contraction in one step: h stays in vregs, no VMEM accumulator.
    x = x_ref[...].astype(jnp.bfloat16)          # in-kernel cast, hidden under MXU
    h = jnp.dot(x, w_enc_ref[...], preferred_element_type=jnp.float32)
    h = jnp.maximum(h + b_enc_ref[...], 0.0)                       # f32 VPU
    emb = jnp.dot(h.astype(jnp.bfloat16), w_proj_ref[...],
                  preferred_element_type=jnp.float32) + b_proj_ref[...]
    ss = jnp.sum(emb * emb, axis=-1, keepdims=True)
    # rsqrt -> EUP slot; matches F.normalize eps=1e-12 (sqrt(1e-24)).
    feat_ref[...] = (emb * lax.rsqrt(jnp.maximum(ss, 1e-24))).astype(feat_ref.dtype)


def _encode_ktiled_kernel(x_ref, w_enc_ref, b_enc_ref, w_proj_ref, b_proj_ref,
                          feat_ref, h_acc):
    k = pl.program_id(1)

    @pl.when(k == 0)
    def _():
        h_acc[...] = jnp.zeros_like(h_acc)

    h_acc[...] += jnp.dot(x_ref[...].astype(jnp.bfloat16), w_enc_ref[...],
                          preferred_element_type=jnp.float32)

    @pl.when(k == pl.num_programs(1) - 1)
    def _():
        h = jnp.maximum(h_acc[...] + b_enc_ref[...], 0.0)
        emb = jnp.dot(h.astype(jnp.bfloat16), w_proj_ref[...],
                      preferred_element_type=jnp.float32) + b_proj_ref[...]
        ss = jnp.sum(emb * emb, axis=-1, keepdims=True)
        feat_ref[...] = (emb * lax.rsqrt(jnp.maximum(ss, 1e-24))).astype(feat_ref.dtype)


def encode_project_normalize(x, w_enc, b_enc, w_proj, b_proj,
                             out_dtype=jnp.float32):
    B, K = x.shape
    H = w_enc.shape[1]
    D = w_proj.shape[1]

    # Weights are expected to be stored bf16 (init_params); these are no-ops then.
    w_enc = w_enc.astype(jnp.bfloat16)
    w_proj = w_proj.astype(jnp.bfloat16)
    b_enc = b_enc.astype(jnp.float32)
    b_proj = b_proj.astype(jnp.float32)

    vmem_limit = _vmem_limit_bytes()
    tm = _pick_tm(B)
    out_bytes = jnp.dtype(out_dtype).itemsize
    x_bytes = x.dtype.itemsize

    def _fits(tk):
        # rough double-buffered VMEM footprint for one grid step
        est = (tm * tk * x_bytes * 2            # x tile
               + tk * H * 2 * 2                 # w_enc tile (bf16)
               + H * D * 2 * 2                  # w_proj (bf16, resident)
               + (H + D) * 4 * 2                # biases
               + tm * D * out_bytes * 2         # output tile
               + tm * H * 4)                    # h (acc scratch or vregs)
        return est <= vmem_limit

    tk = None
    for c in (K, 2048, 1024, 512, 256, 128):    # prefer full-K collapse
        if c <= K and K % c == 0 and _fits(c):
            tk = c
            break
    if tk is None:
        tk = _pick_tile(K, (512, 256, 128))

    flops = 2 * B * K * H + 2 * B * H * D
    bytes_accessed = (x_bytes * B * K + 2 * (K * H + H * D)
                      + 4 * (H + D) + out_bytes * B * D)
    cost = pl.CostEstimate(flops=int(flops), transcendentals=int(B),
                           bytes_accessed=int(bytes_accessed))

    if tk == K:
        # Single contraction step: no K grid axis, no accumulator scratch.
        return pl.pallas_call(
            _encode_fused_kernel,
            grid=(B // tm,),
            in_specs=[
                pl.BlockSpec((tm, K), lambda i: (i, 0)),   # x (f32, cast in-kernel)
                pl.BlockSpec((K, H), lambda i: (0, 0)),    # w_enc (bf16, resident)
                pl.BlockSpec((1, H), lambda i: (0, 0)),    # b_enc
                pl.BlockSpec((H, D), lambda i: (0, 0)),    # w_proj
                pl.BlockSpec((1, D), lambda i: (0, 0)),    # b_proj
            ],
            out_specs=pl.BlockSpec((tm, D), lambda i: (i, 0)),
            out_shape=jax.ShapeDtypeStruct((B, D), out_dtype),
            compiler_params=pltpu.CompilerParams(
                dimension_semantics=("parallel",),
                vmem_limit_bytes=vmem_limit),
            cost_estimate=cost,
        )(x, w_enc, b_enc, w_proj, b_proj)

    # Large-K fallback: stream w_enc over K with f32 VMEM accumulator.
    grid = (B // tm, K // tk)
    return pl.pallas_call(
        _encode_ktiled_kernel,
        grid=grid,
        in_specs=[
            pl.BlockSpec((tm, tk), lambda i, k: (i, k)),   # x
            pl.BlockSpec((tk, H), lambda i, k: (k, 0)),    # w_enc (streamed over K)
            pl.BlockSpec((1, H), lambda i, k: (0, 0)),     # b_enc
            pl.BlockSpec((H, D), lambda i, k: (0, 0)),     # w_proj
            pl.BlockSpec((1, D), lambda i, k: (0, 0)),     # b_proj
        ],
        out_specs=pl.BlockSpec((tm, D), lambda i, k: (i, 0)),
        out_shape=jax.ShapeDtypeStruct((B, D), out_dtype),
        scratch_shapes=[pltpu.VMEM((tm, H), jnp.float32)],
        compiler_params=pltpu.CompilerParams(
            dimension_semantics=("parallel", "arbitrary"),
            vmem_limit_bytes=vmem_limit),
        cost_estimate=cost,
    )(x, w_enc, b_enc, w_proj, b_proj)


# ----------------------------------------------------------------------------
# Kernel 2: CLIP_Loss (symmetric cross-entropy over in-batch similarities)
#   logits = img @ txt.T * (1/temp)
#   loss   = 0.5 * ( CE(logits, arange(B)) + CE(logits.T, arange(B)) )
# Streams txt in (tk, D) blocks; online row-LSE, exact per-block column-LSE,
# diagonal taken straight from the logits block; never materializes BxB.
# ----------------------------------------------------------------------------
def _clip_loss_kernel(inv_temp_ref, img_ref, txt_blk_ref, loss_ref,
                      m_row, s_row, col_lse, diag_lane):
    kj = pl.program_id(0)
    nkj = pl.num_programs(0)
    inv_temp = inv_temp_ref[0, 0]

    @pl.when(kj == 0)
    def _():
        m_row[...] = jnp.full_like(m_row, -jnp.inf)
        s_row[...] = jnp.zeros_like(s_row)

    img = img_ref[...]                                   # (B, D) bf16 (resident)
    txt_blk = txt_blk_ref[...]                           # (tk, D) bf16 (streamed)
    tk = txt_blk.shape[0]
    B = img.shape[0]

    # (B, tk) logits block; contraction on last dims -> no materialized transpose.
    s = lax.dot_general(img, txt_blk, (((1,), (1,)), ((), ())),
                        preferred_element_type=jnp.float32) * inv_temp

    # Diagonal entries covered by this key block, taken from the same logits
    # block (exactly consistent with the LSE denominators).
    start = kj * tk
    row_idx = lax.broadcasted_iota(jnp.int32, (B, tk), 0)
    col_idx = lax.broadcasted_iota(jnp.int32, (B, tk), 1) + start
    diag_row = jnp.sum(jnp.where(row_idx == col_idx, s, 0.0),
                       axis=0, keepdims=True)                         # (1, tk)
    diag_lane[pl.ds(kj, 1), :] = diag_row

    # image -> text direction: online logsumexp over key blocks.
    m_new = jnp.maximum(m_row[...], jnp.max(s, axis=-1, keepdims=True))
    s_row[...] = s_row[...] * jnp.exp(m_row[...] - m_new) \
        + jnp.sum(jnp.exp(s - m_new), axis=-1, keepdims=True)
    m_row[...] = m_new

    # text -> image direction: every row is resident, so the column LSE for
    # this key block is exact within this step; store lane-dense, reduce later.
    m_col = jnp.max(s, axis=0, keepdims=True)                         # (1, tk)
    lse_col = m_col + jnp.log(jnp.sum(jnp.exp(s - m_col), axis=0, keepdims=True))
    col_lse[pl.ds(kj, 1), :] = lse_col

    @pl.when(kj == nkj - 1)
    def _():
        i2t = jnp.sum(m_row[...] + jnp.log(s_row[...]), keepdims=True)   # (1,1)
        t2i = jnp.sum(col_lse[...], keepdims=True)
        diag = jnp.sum(diag_lane[...], keepdims=True)
        loss_ref[...] = (i2t + t2i - 2.0 * diag) * (0.5 / B)


def clip_loss(img_feat, txt_feat, temp):
    B, D = img_feat.shape
    tk = _pick_tile(B, (512, 256, 128, 64, 32, 16, 8))
    n_blocks = B // tk

    inv_temp = (1.0 / jnp.asarray(temp, jnp.float32)).reshape(1, 1)
    # Encoders already emit bf16 on the loss path -> these are no-ops there.
    img_b = img_feat if img_feat.dtype == jnp.bfloat16 else img_feat.astype(jnp.bfloat16)
    txt_b = txt_feat if txt_feat.dtype == jnp.bfloat16 else txt_feat.astype(jnp.bfloat16)

    out = pl.pallas_call(
        _clip_loss_kernel,
        grid=(n_blocks,),
        in_specs=[
            pl.BlockSpec(memory_space=pltpu.MemorySpace.SMEM),   # 1/temp scalar
            pl.BlockSpec((B, D), lambda kj: (0, 0)),             # img (resident)
            pl.BlockSpec((tk, D), lambda kj: (kj, 0)),           # txt (streamed)
        ],
        out_specs=pl.BlockSpec((1, 1), lambda kj: (0, 0)),
        out_shape=jax.ShapeDtypeStruct((1, 1), jnp.float32),
        scratch_shapes=[pltpu.VMEM((B, 1), jnp.float32),         # m_row
                        pltpu.VMEM((B, 1), jnp.float32),         # s_row
                        pltpu.VMEM((n_blocks, tk), jnp.float32), # per-block col LSE
                        pltpu.VMEM((n_blocks, tk), jnp.float32)],# per-block diag
        compiler_params=pltpu.CompilerParams(
            dimension_semantics=("arbitrary",),
            vmem_limit_bytes=_vmem_limit_bytes()),
        cost_estimate=pl.CostEstimate(flops=int(2 * B * B * D),
                                      transcendentals=int(B * B + 2 * B),
                                      bytes_accessed=int(2 * 2 * B * D + 8)),
    )(inv_temp, img_b, txt_b)
    return out[0, 0]


# ----------------------------------------------------------------------------
# CLIP forward (ita_type='clip', learnable_temp=False, personalized_tau=False,
# enable_i2i_loss=False, enable_t2t_loss=False)
# ----------------------------------------------------------------------------
def clip_forward(params, image_nchw, input_ids, attention_mask, temp=0.01,
                 return_feat=False):
    B = image_nchw.shape[0]
    # bf16 features are enough for the loss path (halves writeback + loss DMA);
    # f32 for the return_feat path (tight unit-norm / downstream consumers).
    feat_dtype = jnp.float32 if return_feat else jnp.bfloat16

    # Visual branch: flatten NCHW -> (B, C*H*W), encoder stub + vision_proj + normalize.
    image_flat = image_nchw.reshape(B, -1)
    image_feat = encode_project_normalize(
        image_flat, params["w_vis_enc"], params["b_vis_enc"],
        params["w_vis_proj"], params["b_vis_proj"], out_dtype=feat_dtype)

    # Text branch: token embedding gather (glue) + CLS (position 0) selection,
    # then encoder stub + text_proj + normalize in Pallas.
    tok_cls = params["tok_emb"][input_ids[:, 0]]     # "last_hidden_state[:, 0, :]" stub
    del attention_mask  # TODO(synk): attention_mask only affects the real transformer stub.
    text_feat = encode_project_normalize(
        tok_cls, params["w_txt_enc"], params["b_txt_enc"],
        params["w_txt_proj"], params["b_txt_proj"], out_dtype=feat_dtype)

    if return_feat:
        return image_feat, text_feat

    loss_ita = clip_loss(image_feat, text_feat, temp)
    info_dict = {}
    return loss_ita, info_dict


def init_params(key, in_dim_img, vis_features, txt_hidden, embed_dim, vocab):
    ks = jax.random.split(key, 8)
    scale = lambda fan_in: 1.0 / jnp.sqrt(jnp.float32(fan_in))
    bf = jnp.bfloat16  # weights stored bf16 once -> no per-call cast HBM passes
    return {
        "w_vis_enc":  (jax.random.normal(ks[0], (in_dim_img, vis_features), jnp.float32) * scale(in_dim_img)).astype(bf),
        "b_vis_enc":  jnp.zeros((1, vis_features), jnp.float32),
        "w_vis_proj": (jax.random.normal(ks[1], (vis_features, embed_dim), jnp.float32) * scale(vis_features)).astype(bf),
        "b_vis_proj": jnp.zeros((1, embed_dim), jnp.float32),
        "tok_emb":    jax.random.normal(ks[2], (vocab, txt_hidden), jnp.float32) * 0.02,
        "w_txt_enc":  (jax.random.normal(ks[3], (txt_hidden, txt_hidden), jnp.float32) * scale(txt_hidden)).astype(bf),
        "b_txt_enc":  jnp.zeros((1, txt_hidden), jnp.float32),
        "w_txt_proj": (jax.random.normal(ks[4], (txt_hidden, embed_dim), jnp.float32) * scale(txt_hidden)).astype(bf),
        "b_txt_proj": jnp.zeros((1, embed_dim), jnp.float32),
    }


# ----------------------------------------------------------------------------
# Pure-JAX references (same bf16-MXU / f32-accumulate math) for validation.
# ----------------------------------------------------------------------------
def _encode_ref(x, w_enc, b_enc, w_proj, b_proj):
    h = jnp.dot(x.astype(jnp.bfloat16), w_enc.astype(jnp.bfloat16),
                preferred_element_type=jnp.float32)
    h = jnp.maximum(h + b_enc, 0.0)
    emb = jnp.dot(h.astype(jnp.bfloat16), w_proj.astype(jnp.bfloat16),
                  preferred_element_type=jnp.float32) + b_proj
    ss = jnp.sum(emb * emb, axis=-1, keepdims=True)
    return emb * lax.rsqrt(jnp.maximum(ss, 1e-24))


def _loss_ref(img, txt, temp):
    logits = jnp.dot(img.astype(jnp.bfloat16), txt.astype(jnp.bfloat16).T,
                     preferred_element_type=jnp.float32) / temp
    d = jnp.diag(logits)
    lse_r = jax.nn.logsumexp(logits, axis=1)
    lse_c = jax.nn.logsumexp(logits, axis=0)
    return 0.5 * (jnp.mean(lse_r - d) + jnp.mean(lse_c - d))


if __name__ == "__main__":
    key = jax.random.PRNGKey(0)
    k_img, k_ids, k_par = jax.random.split(key, 3)

    B, C, H, W = 8, 3, 16, 16          # image batch, NCHW
    L, VOCAB = 8, 1000                 # text seq length, vocab
    VIS_FEATURES = 128                 # visual_encoder.num_features (stub)
    TXT_HIDDEN = 768                   # text encoder hidden size (non-roberta path)
    EMBED_DIM = 128                    # embed_dim
    TEMP = 0.01                        # temp (learnable_temp=False)

    image = jax.random.normal(k_img, (B, C, H, W), jnp.float32)          # NCHW
    input_ids = jax.random.randint(k_ids, (B, L), 0, VOCAB, jnp.int32)
    attention_mask = jnp.ones((B, L), jnp.int32)

    params = init_params(k_par, C * H * W, VIS_FEATURES, TXT_HIDDEN, EMBED_DIM, VOCAB)

    fwd = jax.jit(clip_forward)
    fwd_feat = jax.jit(partial(clip_forward, return_feat=True))

    loss_ita, info_dict = fwd(params, image, input_ids, attention_mask, jnp.float32(TEMP))
    image_feat, text_feat = fwd_feat(params, image, input_ids, attention_mask, jnp.float32(TEMP))
    jax.block_until_ready((loss_ita, image_feat, text_feat))

    # ---- shape / sanity checks ----
    assert loss_ita.shape == ()
    assert image_feat.shape == (B, EMBED_DIM) and text_feat.shape == (B, EMBED_DIM)
    assert bool(jnp.isfinite(loss_ita))
    # normalization is done in f32 -> unit norm holds tightly on the f32 path
    assert bool(jnp.allclose(jnp.sum(image_feat ** 2, -1), 1.0, atol=1e-4))
    assert bool(jnp.allclose(jnp.sum(text_feat ** 2, -1), 1.0, atol=1e-4))

    # ---- pure-JAX reference comparison ----
    image_flat = image.reshape(B, -1)
    tok_cls = params["tok_emb"][input_ids[:, 0]]
    img_ref = _encode_ref(image_flat, params["w_vis_enc"], params["b_vis_enc"],
                          params["w_vis_proj"], params["b_vis_proj"])
    txt_ref = _encode_ref(tok_cls, params["w_txt_enc"], params["b_txt_enc"],
                          params["w_txt_proj"], params["b_txt_proj"])
    loss_ref = _loss_ref(img_ref, txt_ref, TEMP)
    assert bool(jnp.allclose(image_feat, img_ref, rtol=1e-2, atol=1e-2))
    assert bool(jnp.allclose(text_feat, txt_ref, rtol=1e-2, atol=1e-2))
    assert bool(jnp.allclose(loss_ita, loss_ref, rtol=1e-2, atol=5e-2))

    print("KERNEL_OK")
</pallas_src>

<mosaic_0001>
module attributes {stable_mosaic.version = 11 : i64} {
  func.func @_encode_fused_kernel(%arg0: i32, %arg1: memref<8x768xf32, #tpu.memory_space<vmem>>, %arg2: memref<768x128xbf16, #tpu.memory_space<vmem>>, %arg3: memref<1x128xf32, #tpu.memory_space<vmem>>, %arg4: memref<128x128xbf16, #tpu.memory_space<vmem>>, %arg5: memref<1x128xf32, #tpu.memory_space<vmem>>, %arg6: memref<8x128xbf16, #tpu.memory_space<vmem>>) attributes {dimension_semantics = [#tpu.dimension_semantics<parallel>], iteration_bounds = array<i64: 1>, scalar_prefetch = 0 : i64, scratch_operands = 0 : i64, tpu.core_type = #tpu.core_type<tc>, window_params = [{transform_indices = @transform_0, window_bounds = array<i64: 8, 768>}, {pipeline_mode = #tpu.pipeline_mode<synchronous>, transform_indices = @transform_1, window_bounds = array<i64: 768, 128>}, {pipeline_mode = #tpu.pipeline_mode<synchronous>, transform_indices = @transform_2, window_bounds = array<i64: 1, 128>}, {pipeline_mode = #tpu.pipeline_mode<synchronous>, transform_indices = @transform_3, window_bounds = array<i64: 128, 128>}, {pipeline_mode = #tpu.pipeline_mode<synchronous>, transform_indices = @transform_4, window_bounds = array<i64: 1, 128>}, {transform_indices = @transform_5, window_bounds = array<i64: 8, 128>}]} {
    %c0 = arith.constant 0 : index
    %c0_0 = arith.constant 0 : index
    %0 = vector.load %arg1[%c0, %c0_0] : memref<8x768xf32, #tpu.memory_space<vmem>>, vector<8x768xf32>
    %1 = arith.truncf %0 : vector<8x768xf32> to vector<8x768xbf16>
    %c0_1 = arith.constant 0 : index
    %c0_2 = arith.constant 0 : index
    %2 = vector.load %arg2[%c0_1, %c0_2] : memref<768x128xbf16, #tpu.memory_space<vmem>>, vector<768x128xbf16>
    %cst = arith.constant dense<0.000000e+00> : vector<8x128xf32>
    %3 = tpu.matmul %1, %2, %cst {dimension_numbers = #tpu.dot_dimension_numbers<[1], [0], [0], [1], [0, 0, 1, 1], [], []>} : vector<8x768xbf16>, vector<768x128xbf16>, vector<8x128xf32> -> vector<8x128xf32>
    %c0_3 = arith.constant 0 : index
    %c0_4 = arith.constant 0 : index
    %4 = vector.load %arg3[%c0_3, %c0_4] : memref<1x128xf32, #tpu.memory_space<vmem>>, vector<1x128xf32>
    %5 = vector.broadcast %4 : vector<1x128xf32> to vector<8x128xf32>
    %6 = arith.addf %3, %5 : vector<8x128xf32>
    %cst_5 = arith.constant 0.000000e+00 : f32
    %7 = vector.broadcast %cst_5 : f32 to vector<8x128xf32>
    %8 = arith.maximumf %6, %7 : vector<8x128xf32>
    %9 = arith.truncf %8 : vector<8x128xf32> to vector<8x128xbf16>
    %c0_6 = arith.constant 0 : index
    %c0_7 = arith.constant 0 : index
    %10 = vector.load %arg4[%c0_6, %c0_7] : memref<128x128xbf16, #tpu.memory_space<vmem>>, vector<128x128xbf16>
    %cst_8 = arith.constant dense<0.000000e+00> : vector<8x128xf32>
    %11 = tpu.matmul %9, %10, %cst_8 {dimension_numbers = #tpu.dot_dimension_numbers<[1], [0], [0], [1], [0, 0, 1, 1], [], []>} : vector<8x128xbf16>, vector<128x128xbf16>, vector<8x128xf32> -> vector<8x128xf32>
    %c0_9 = arith.constant 0 : index
    %c0_10 = arith.constant 0 : index
    %12 = vector.load %arg5[%c0_9, %c0_10] : memref<1x128xf32, #tpu.memory_space<vmem>>, vector<1x128xf32>
    %13 = vector.broadcast %12 : vector<1x128xf32> to vector<8x128xf32>
    %14 = arith.addf %11, %13 : vector<8x128xf32>
    %15 = arith.mulf %14, %14 : vector<8x128xf32>
    %cst_11 = arith.constant dense<0.000000e+00> : vector<8xf32>
    %16 = vector.multi_reduction <add>, %15, %cst_11 [1] : vector<8x128xf32> to vector<8xf32>
    %17 = vector.shape_cast %16 : vector<8xf32> to vector<8x1xf32>
    %cst_12 = arith.constant 1.000000e-24 : f32
    %18 = vector.broadcast %cst_12 : f32 to vector<8x1xf32>
    %19 = arith.maximumf %17, %18 : vector<8x1xf32>
    %20 = math.rsqrt %19 : vector<8x1xf32>
    %21 = vector.broadcast %20 : vector<8x1xf32> to vector<8x128xf32>
    %22 = arith.mulf %14, %21 : vector<8x128xf32>
    %23 = arith.truncf %22 : vector<8x128xf32> to vector<8x128xbf16>
    %c0_13 = arith.constant 0 : index
    %c0_14 = arith.constant 0 : index
    %24 = vector.load %arg6[%c0_13, %c0_14] : memref<8x128xbf16, #tpu.memory_space<vmem>>, vector<8x128xbf16>
    tpu.vector_store %arg6[%c0_13, %c0_14], %23 {strides = array<i32>} : memref<8x128xbf16, #tpu.memory_space<vmem>>, vector<8x128xbf16>,
    return
  }
  func.func @transform_0(%arg0: i32) -> (i32, i32) {
    %c0_i32 = arith.constant 0 : i32
    %c0_i32_0 = arith.constant 0 : i32
    return %arg0, %c0_i32 : i32, i32
  }
  func.func @transform_1(%arg0: i32) -> (i32, i32) {
    %c0_i32 = arith.constant 0 : i32
    %c0_i32_0 = arith.constant 0 : i32
    %c0_i32_1 = arith.constant 0 : i32
    return %c0_i32, %c0_i32_0 : i32, i32
  }
  func.func @transform_2(%arg0: i32) -> (i32, i32) {
    %c0_i32 = arith.constant 0 : i32
    %c0_i32_0 = arith.constant 0 : i32
    %c0_i32_1 = arith.constant 0 : i32
    return %c0_i32, %c0_i32_0 : i32, i32
  }
  func.func @transform_3(%arg0: i32) -> (i32, i32) {
    %c0_i32 = arith.constant 0 : i32
    %c0_i32_0 = arith.constant 0 : i32
    %c0_i32_1 = arith.constant 0 : i32
    return %c0_i32, %c0_i32_0 : i32, i32
  }
  func.func @transform_4(%arg0: i32) -> (i32, i32) {
    %c0_i32 = arith.constant 0 : i32
    %c0_i32_0 = arith.constant 0 : i32
    %c0_i32_1 = arith.constant 0 : i32
    return %c0_i32, %c0_i32_0 : i32, i32
  }
  func.func @transform_5(%arg0: i32) -> (i32, i32) {
    %c0_i32 = arith.constant 0 : i32
    %c0_i32_0 = arith.constant 0 : i32
    return %arg0, %c0_i32 : i32, i32
  }
}

module attributes {stable_mosaic.version = 11 : i64} {
  func.func @_encode_fused_kernel(%arg0: i32, %arg1: memref<8x768xf32, #tpu.memory_space<vmem>>, %arg2: memref<768x768xbf16, #tpu.memory_space<vmem>>, %arg3: memref<1x768xf32, #tpu.memory_space<vmem>>, %arg4: memref<768x128xbf16, #tpu.memory_space<vmem>>, %arg5: memref<1x128xf32, #tpu.memory_space<vmem>>, %arg6: memref<8x128xbf16, #tpu.memory_space<vmem>>) attributes {dimension_semantics = [#tpu.dimension_semantics<parallel>], iteration_bounds = array<i64: 1>, scalar_prefetch = 0 : i64, scratch_operands = 0 : i64, tpu.core_type = #tpu.core_type<tc>, window_params = [{transform_indices = @transform_0, window_bounds = array<i64: 8, 768>}, {pipeline_mode = #tpu.pipeline_mode<synchronous>, transform_indices = @transform_1, window_bounds = array<i64: 768, 768>}, {pipeline_mode = #tpu.pipeline_mode<synchronous>, transform_indices = @transform_2, window_bounds = array<i64: 1, 768>}, {pipeline_mode = #tpu.pipeline_mode<synchronous>, transform_indices = @transform_3, window_bounds = array<i64: 768, 128>}, {pipeline_mode = #tpu.pipeline_mode<synchronous>, transform_indices = @transform_4, window_bounds = array<i64: 1, 128>}, {transform_indices = @transform_5, window_bounds = array<i64: 8, 128>}]} {
    %c0 = arith.constant 0 : index
    %c0_0 = arith.constant 0 : index
    %0 = vector.load %arg1[%c0, %c0_0] : memref<8x768xf32, #tpu.memory_space<vmem>>, vector<8x768xf32>
    %1 = arith.truncf %0 : vector<8x768xf32> to vector<8x768xbf16>
    %c0_1 = arith.constant 0 : index
    %c0_2 = arith.constant 0 : index
    %2 = vector.load %arg2[%c0_1, %c0_2] : memref<768x768xbf16, #tpu.memory_space<vmem>>, vector<768x768xbf16>
    %cst = arith.constant dense<0.000000e+00> : vector<8x768xf32>
    %3 = tpu.matmul %1, %2, %cst {dimension_numbers = #tpu.dot_dimension_numbers<[1], [0], [0], [1], [0, 0, 1, 1], [], []>} : vector<8x768xbf16>, vector<768x768xbf16>, vector<8x768xf32> -> vector<8x768xf32>
    %c0_3 = arith.constant 0 : index
    %c0_4 = arith.constant 0 : index
    %4 = vector.load %arg3[%c0_3, %c0_4] : memref<1x768xf32, #tpu.memory_space<vmem>>, vector<1x768xf32>
    %5 = vector.broadcast %4 : vector<1x768xf32> to vector<8x768xf32>
    %6 = arith.addf %3, %5 : vector<8x768xf32>
    %cst_5 = arith.constant 0.000000e+00 : f32
    %7 = vector.broadcast %cst_5 : f32 to vector<8x768xf32>
    %8 = arith.maximumf %6, %7 : vector<8x768xf32>
    %9 = arith.truncf %8 : vector<8x768xf32> to vector<8x768xbf16>
    %c0_6 = arith.constant 0 : index
    %c0_7 = arith.constant 0 : index
    %10 = vector.load %arg4[%c0_6, %c0_7] : memref<768x128xbf16, #tpu.memory_space<vmem>>, vector<768x128xbf16>
    %cst_8 = arith.constant dense<0.000000e+00> : vector<8x128xf32>
    %11 = tpu.matmul %9, %10, %cst_8 {dimension_numbers = #tpu.dot_dimension_numbers<[1], [0], [0], [1], [0, 0, 1, 1], [], []>} : vector<8x768xbf16>, vector<768x128xbf16>, vector<8x128xf32> -> vector<8x128xf32>
    %c0_9 = arith.constant 0 : index
    %c0_10 = arith.constant 0 : index
    %12 = vector.load %arg5[%c0_9, %c0_10] : memref<1x128xf32, #tpu.memory_space<vmem>>, vector<1x128xf32>
    %13 = vector.broadcast %12 : vector<1x128xf32> to vector<8x128xf32>
    %14 = arith.addf %11, %13 : vector<8x128xf32>
    %15 = arith.mulf %14, %14 : vector<8x128xf32>
    %cst_11 = arith.constant dense<0.000000e+00> : vector<8xf32>
    %16 = vector.multi_reduction <add>, %15, %cst_11 [1] : vector<8x128xf32> to vector<8xf32>
    %17 = vector.shape_cast %16 : vector<8xf32> to vector<8x1xf32>
    %cst_12 = arith.constant 1.000000e-24 : f32
    %18 = vector.broadcast %cst_12 : f32 to vector<8x1xf32>
    %19 = arith.maximumf %17, %18 : vector<8x1xf32>
    %20 = math.rsqrt %19 : vector<8x1xf32>
    %21 = vector.broadcast %20 : vector<8x1xf32> to vector<8x128xf32>
    %22 = arith.mulf %14, %21 : vector<8x128xf32>
    %23 = arith.truncf %22 : vector<8x128xf32> to vector<8x128xbf16>
    %c0_13 = arith.constant 0 : index
    %c0_14 = arith.constant 0 : index
    %24 = vector.load %arg6[%c0_13, %c0_14] : memref<8x128xbf16, #tpu.memory_space<vmem>>, vector<8x128xbf16>
    tpu.vector_store %arg6[%c0_13, %c0_14], %23 {strides = array<i32>} : memref<8x128xbf16, #tpu.memory_space<vmem>>, vector<8x128xbf16>,
    return
  }
  func.func @transform_0(%arg0: i32) -> (i32, i32) {
    %c0_i32 = arith.constant 0 : i32
    %c0_i32_0 = arith.constant 0 : i32
    return %arg0, %c0_i32 : i32, i32
  }
  func.func @transform_1(%arg0: i32) -> (i32, i32) {
    %c0_i32 = arith.constant 0 : i32
    %c0_i32_0 = arith.constant 0 : i32
    %c0_i32_1 = arith.constant 0 : i32
    return %c0_i32, %c0_i32_0 : i32, i32
  }
  func.func @transform_2(%arg0: i32) -> (i32, i32) {
    %c0_i32 = arith.constant 0 : i32
    %c0_i32_0 = arith.constant 0 : i32
    %c0_i32_1 = arith.constant 0 : i32
    return %c0_i32, %c0_i32_0 : i32, i32
  }
  func.func @transform_3(%arg0: i32) -> (i32, i32) {
    %c0_i32 = arith.constant 0 : i32
    %c0_i32_0 = arith.constant 0 : i32
    %c0_i32_1 = arith.constant 0 : i32
    return %c0_i32, %c0_i32_0 : i32, i32
  }
  func.func @transform_4(%arg0: i32) -> (i32, i32) {
    %c0_i32 = arith.constant 0 : i32
    %c0_i32_0 = arith.constant 0 : i32
    %c0_i32_1 = arith.constant 0 : i32
    return %c0_i32, %c0_i32_0 : i32, i32
  }
  func.func @transform_5(%arg0: i32) -> (i32, i32) {
    %c0_i32 = arith.constant 0 : i32
    %c0_i32_0 = arith.constant 0 : i32
    return %arg0, %c0_i32 : i32, i32
  }
}

module attributes {stable_mosaic.version = 11 : i64} {
  func.func @_clip_loss_kernel(%arg0: i32, %arg1: memref<1x1xf32, #tpu.memory_space<smem>>, %arg2: memref<8x128xbf16, #tpu.memory_space<vmem>>, %arg3: memref<8x128xbf16, #tpu.memory_space<vmem>>, %arg4: memref<1x1xf32, #tpu.memory_space<vmem>>, %arg5: memref<8x1xf32, #tpu.memory_space<vmem>>, %arg6: memref<8x1xf32, #tpu.memory_space<vmem>>, %arg7: memref<1x8xf32, #tpu.memory_space<vmem>>, %arg8: memref<1x8xf32, #tpu.memory_space<vmem>>) attributes {dimension_semantics = [#tpu.dimension_semantics<arbitrary>], iteration_bounds = array<i64: 1>, scalar_prefetch = 0 : i64, scratch_operands = 4 : i64, tpu.core_type = #tpu.core_type<tc>, window_params = [{transform_indices = @transform_0, window_bounds = array<i64: 1, 1>}, {pipeline_mode = #tpu.pipeline_mode<synchronous>, transform_indices = @transform_1, window_bounds = array<i64: 8, 128>}, {transform_indices = @transform_2, window_bounds = array<i64: 8, 128>}, {pipeline_mode = #tpu.pipeline_mode<synchronous>, transform_indices = @transform_3, window_bounds = array<i64: 1, 1>}]} {
    %c0 = arith.constant 0 : index
    %c0_0 = arith.constant 0 : index
    %0 = memref.load %arg1[%c0, %c0_0] : memref<1x1xf32, #tpu.memory_space<smem>>
    %c0_i32 = arith.constant 0 : i32
    %1 = arith.cmpi eq, %arg0, %c0_i32 : i32
    %2 = arith.extui %1 : i1 to i32
    %c0_i32_1 = arith.constant 0 : i32
    %3 = arith.cmpi ne, %2, %c0_i32_1 : i32
    scf.if %3 {
      %cst_26 = arith.constant 0xFF800000 : f32
      %52 = vector.broadcast %cst_26 : f32 to vector<8x1xf32>
      %c0_27 = arith.constant 0 : index
      %c0_28 = arith.constant 0 : index
      %53 = vector.load %arg5[%c0_27, %c0_28] : memref<8x1xf32, #tpu.memory_space<vmem>>, vector<8x1xf32>
      tpu.vector_store %arg5[%c0_27, %c0_28], %52 {strides = array<i32>} : memref<8x1xf32, #tpu.memory_space<vmem>>, vector<8x1xf32>,
      %cst_29 = arith.constant 0.000000e+00 : f32
      %54 = vector.broadcast %cst_29 : f32 to vector<8x1xf32>
      %c0_30 = arith.constant 0 : index
      %c0_31 = arith.constant 0 : index
      %55 = vector.load %arg6[%c0_30, %c0_31] : memref<8x1xf32, #tpu.memory_space<vmem>>, vector<8x1xf32>
      tpu.vector_store %arg6[%c0_30, %c0_31], %54 {strides = array<i32>} : memref<8x1xf32, #tpu.memory_space<vmem>>, vector<8x1xf32>,
    } else {
    }
    %c0_2 = arith.constant 0 : index
    %c0_3 = arith.constant 0 : index
    %4 = vector.load %arg2[%c0_2, %c0_3] : memref<8x128xbf16, #tpu.memory_space<vmem>>, vector<8x128xbf16>
    %c0_4 = arith.constant 0 : index
    %c0_5 = arith.constant 0 : index
    %5 = vector.load %arg3[%c0_4, %c0_5] : memref<8x128xbf16, #tpu.memory_space<vmem>>, vector<8x128xbf16>
    %cst = arith.constant dense<0.000000e+00> : vector<8x8xf32>
    %6 = tpu.matmul %4, %5, %cst {dimension_numbers = #tpu.dot_dimension_numbers<[1], [1], [0], [0], [0, 0, 1, 0], [], []>} : vector<8x128xbf16>, vector<8x128xbf16>, vector<8x8xf32> -> vector<8x8xf32>
    %7 = vector.broadcast %0 : f32 to vector<8x8xf32>
    %8 = arith.mulf %6, %7 : vector<8x8xf32>
    %c8_i32 = arith.constant 8 : i32
    %9 = arith.muli %arg0, %c8_i32 : i32
    %10 = tpu.iota {dimensions = array<i32: 0>} : vector<8x8xi32>
    %11 = tpu.iota {dimensions = array<i32: 1>} : vector<8x8xi32>
    %12 = vector.broadcast %9 : i32 to vector<8x8xi32>
    %13 = arith.addi %11, %12 : vector<8x8xi32>
    %14 = arith.cmpi eq, %10, %13 : vector<8x8xi32>
    %cst_6 = arith.constant 0.000000e+00 : f32
    %15 = vector.broadcast %cst_6 : f32 to vector<8x8xf32>
    %16 = arith.select %14, %8, %15 : vector<8x8xi1>, vector<8x8xf32>
    %cst_7 = arith.constant dense<0.000000e+00> : vector<8xf32>
    %17 = vector.multi_reduction <add>, %16, %cst_7 [0] : vector<8x8xf32> to vector<8xf32>
    %18 = vector.shape_cast %17 : vector<8xf32> to vector<1x8xf32>
    %19 = arith.index_cast %arg0 : i32 to index
    %c0_8 = arith.constant 0 : index
    %20 = vector.load %arg8[%19, %c0_8] : memref<1x8xf32, #tpu.memory_space<vmem>>, vector<1x8xf32>
    tpu.vector_store %arg8[%19, %c0_8], %18 {strides = array<i32>} : memref<1x8xf32, #tpu.memory_space<vmem>>, vector<1x8xf32>,
    %c0_9 = arith.constant 0 : index
    %c0_10 = arith.constant 0 : index
    %21 = vector.load %arg5[%c0_9, %c0_10] : memref<8x1xf32, #tpu.memory_space<vmem>>, vector<8x1xf32>
    %cst_11 = arith.constant dense<0xFF800000> : vector<8xf32>
    %22 = vector.multi_reduction <maximumf>, %8, %cst_11 [1] : vector<8x8xf32> to vector<8xf32>
    %23 = vector.shape_cast %22 : vector<8xf32> to vector<8x1xf32>
    %24 = arith.maximumf %21, %23 : vector<8x1xf32>
    %c0_12 = arith.constant 0 : index
    %c0_13 = arith.constant 0 : index
    %25 = vector.load %arg6[%c0_12, %c0_13] : memref<8x1xf32, #tpu.memory_space<vmem>>, vector<8x1xf32>
    %c0_14 = arith.constant 0 : index
    %c0_15 = arith.constant 0 : index
    %26 = vector.load %arg5[%c0_14, %c0_15] : memref<8x1xf32, #tpu.memory_space<vmem>>, vector<8x1xf32>
    %27 = arith.subf %26, %24 : vector<8x1xf32>
    %28 = math.exp %27 : vector<8x1xf32>
    %29 = arith.mulf %25, %28 : vector<8x1xf32>
    %30 = vector.broadcast %24 : vector<8x1xf32> to vector<8x8xf32>
    %31 = arith.subf %8, %30 : vector<8x8xf32>
    %32 = math.exp %31 : vector<8x8xf32>
    %cst_16 = arith.constant dense<0.000000e+00> : vector<8xf32>
    %33 = vector.multi_reduction <add>, %32, %cst_16 [1] : vector<8x8xf32> to vector<8xf32>
    %34 = vector.shape_cast %33 : vector<8xf32> to vector<8x1xf32>
    %35 = arith.addf %29, %34 : vector<8x1xf32>
    %c0_17 = arith.constant 0 : index
    %c0_18 = arith.constant 0 : index
    %36 = vector.load %arg6[%c0_17, %c0_18] : memref<8x1xf32, #tpu.memory_space<vmem>>, vector<8x1xf32>
    tpu.vector_store %arg6[%c0_17, %c0_18], %35 {strides = array<i32>} : memref<8x1xf32, #tpu.memory_space<vmem>>, vector<8x1xf32>,
    %c0_19 = arith.constant 0 : index
    %c0_20 = arith.constant 0 : index
    %37 = vector.load %arg5[%c0_19, %c0_20] : memref<8x1xf32, #tpu.memory_space<vmem>>, vector<8x1xf32>
    tpu.vector_store %arg5[%c0_19, %c0_20], %24 {strides = array<i32>} : memref<8x1xf32, #tpu.memory_space<vmem>>, vector<8x1xf32>,
    %cst_21 = arith.constant dense<0xFF800000> : vector<8xf32>
    %38 = vector.multi_reduction <maximumf>, %8, %cst_21 [0] : vector<8x8xf32> to vector<8xf32>
    %39 = vector.shape_cast %38 : vector<8xf32> to vector<1x8xf32>
    %40 = vector.broadcast %39 : vector<1x8xf32> to vector<8x8xf32>
    %41 = arith.subf %8, %40 : vector<8x8xf32>
    %42 = math.exp %41 : vector<8x8xf32>
    %cst_22 = arith.constant dense<0.000000e+00> : vector<8xf32>
    %43 = vector.multi_reduction <add>, %42, %cst_22 [0] : vector<8x8xf32> to vector<8xf32>
    %44 = vector.shape_cast %43 : vector<8xf32> to vector<1x8xf32>
    %45 = math.log %44 : vector<1x8xf32>
    %46 = arith.addf %39, %45 : vector<1x8xf32>
    %47 = arith.index_cast %arg0 : i32 to index
    %c0_23 = arith.constant 0 : index
    %48 = vector.load %arg7[%47, %c0_23] : memref<1x8xf32, #tpu.memory_space<vmem>>, vector<1x8xf32>
    tpu.vector_store %arg7[%47, %c0_23], %46 {strides = array<i32>} : memref<1x8xf32, #tpu.memory_space<vmem>>, vector<1x8xf32>,
    %c0_i32_24 = arith.constant 0 : i32
    %49 = arith.cmpi eq, %arg0, %c0_i32_24 : i32
    %50 = arith.extui %49 : i1 to i32
    %c0_i32_25 = arith.constant 0 : i32
    %51 = arith.cmpi ne, %50, %c0_i32_25 : i32
    scf.if %51 {
      %c0_26 = arith.constant 0 : index
      %c0_27 = arith.constant 0 : index
      %52 = vector.load %arg5[%c0_26, %c0_27] : memref<8x1xf32, #tpu.memory_space<vmem>>, vector<8x1xf32>
      %c0_28 = arith.constant 0 : index
      %c0_29 = arith.constant 0 : index
      %53 = vector.load %arg6[%c0_28, %c0_29] : memref<8x1xf32, #tpu.memory_space<vmem>>, vector<8x1xf32>
      %54 = math.log %53 : vector<8x1xf32>
      %55 = arith.addf %52, %54 : vector<8x1xf32>
      %56 = vector.shape_cast %55 : vector<8x1xf32> to vector<1x8x1xf32>
      %cst_30 = arith.constant dense<0.000000e+00> : vector<1xf32>
      %57 = vector.multi_reduction <add>, %56, %cst_30 [1, 2] : vector<1x8x1xf32> to vector<1xf32>
      %58 = vector.shape_cast %57 : vector<1xf32> to vector<1x1x1xf32>
      %59 = vector.extract %58[0, 0, 0] : f32 from vector<1x1x1xf32>
      %60 = vector.broadcast %59 : f32 to vector<1x1xf32>
      %c0_31 = arith.constant 0 : index
      %c0_32 = arith.constant 0 : index
      %61 = vector.load %arg7[%c0_31, %c0_32] : memref<1x8xf32, #tpu.memory_space<vmem>>, vector<1x8xf32>
      %62 = vector.shape_cast %61 : vector<1x8xf32> to vector<1x1x8xf32>
      %cst_33 = arith.constant dense<0.000000e+00> : vector<1xf32>
      %63 = vector.multi_reduction <add>, %62, %cst_33 [1, 2] : vector<1x1x8xf32> to vector<1xf32>
      %64 = vector.shape_cast %63 : vector<1xf32> to vector<1x1x1xf32>
      %65 = vector.extract %64[0, 0, 0] : f32 from vector<1x1x1xf32>
      %66 = vector.broadcast %65 : f32 to vector<1x1xf32>
      %c0_34 = arith.constant 0 : index
      %c0_35 = arith.constant 0 : index
      %67 = vector.load %arg8[%c0_34, %c0_35] : memref<1x8xf32, #tpu.memory_space<vmem>>, vector<1x8xf32>
      %68 = vector.shape_cast %67 : vector<1x8xf32> to vector<1x1x8xf32>
      %cst_36 = arith.constant dense<0.000000e+00> : vector<1xf32>
      %69 = vector.multi_reduction <add>, %68, %cst_36 [1, 2] : vector<1x1x8xf32> to vector<1xf32>
      %70 = vector.shape_cast %69 : vector<1xf32> to vector<1x1x1xf32>
      %71 = vector.extract %70[0, 0, 0] : f32 from vector<1x1x1xf32>
      %72 = vector.broadcast %71 : f32 to vector<1x1xf32>
      %73 = arith.addf %60, %66 : vector<1x1xf32>
      %cst_37 = arith.constant 2.000000e+00 : f32
      %74 = vector.broadcast %cst_37 : f32 to vector<1x1xf32>
      %75 = arith.mulf %74, %72 : vector<1x1xf32>
      %76 = arith.subf %73, %75 : vector<1x1xf32>
      %cst_38 = arith.constant 6.250000e-02 : f32
      %77 = vector.broadcast %cst_38 : f32 to vector<1x1xf32>
      %78 = arith.mulf %76, %77 : vector<1x1xf32>
      %c0_39 = arith.constant 0 : index
      %c0_40 = arith.constant 0 : index
      %79 = vector.load %arg4[%c0_39, %c0_40] : memref<1x1xf32, #tpu.memory_space<vmem>>, vector<1x1xf32>
      tpu.vector_store %arg4[%c0_39, %c0_40], %78 {strides = array<i32>} : memref<1x1xf32, #tpu.memory_space<vmem>>, vector<1x1xf32>,
    } else {
    }
    return
  }
  func.func @transform_0(%arg0: i32) -> (i32, i32) {
    %c0_i32 = arith.constant 0 : i32
    %c0_i32_0 = arith.constant 0 : i32
    %c0_i32_1 = arith.constant 0 : i32
    return %c0_i32, %c0_i32_0 : i32, i32
  }
  func.func @transform_1(%arg0: i32) -> (i32, i32) {
    %c0_i32 = arith.constant 0 : i32
    %c0_i32_0 = arith.constant 0 : i32
    %c0_i32_1 = arith.constant 0 : i32
    return %c0_i32, %c0_i32_0 : i32, i32
  }
  func.func @transform_2(%arg0: i32) -> (i32, i32) {
    %c0_i32 = arith.constant 0 : i32
    %c0_i32_0 = arith.constant 0 : i32
    return %arg0, %c0_i32 : i32, i32
  }
  func.func @transform_3(%arg0: i32) -> (i32, i32) {
    %c0_i32 = arith.constant 0 : i32
    %c0_i32_0 = arith.constant 0 : i32
    %c0_i32_1 = arith.constant 0 : i32
    return %c0_i32, %c0_i32_0 : i32, i32
  }
}

</mosaic_0001>

<bundles_post_ra>
// kernel: clip_forward.5
= control target key start
LH: loop header
LB: loop body
LE: loop exit
PB: predicated region body
PF: predicated region fallthrough
CT: control target
= control target key end

     0   :  { %s267_s0 = inlined_call_operand.<no memory space> [shape: f32[1,1], index: 0, kind: input, shape index: {}]   ;;  %s268_s1 = inlined_call_operand.vmem [shape: bf16[8,128], index: 1, kind: input, shape index: {}]   ;;  %s269_s2 = inlined_call_operand.vmem [shape: bf16[8,128], index: 2, kind: input, shape index: {}]   ;;  %s270_s3 = inlined_call_operand.hbm [shape: f32[1,1], index: 3, kind: output, shape index: {}]  }
   0x1   :  { %v26_v0 = vld [vmem:[%s269_s2] sm:$0xf] }
   0x2   :  { %9 = vsyncpa [#allocation8], 0  ;;  %34 = vmatpush.bf16.xpose.msra.mxu0 %v26_v0  ;;  %v25_v1 = vld [vmem:[%s268_s1] sm:$0xf]  ;;  %v43_v2 = vlaneseq  ;;  %v40_v5 = vstv %s267_s0  ;;  %vm51_vm1 = vcmask 64512   ;;  %vm59_vm2 = vcmask 57344  }
   0x3   :  { %vm22_vm3 = vcmask 7168   ;;  %v218_v41 = vmov -inf   ;;  %v219_v42 = vmov 0   ;;  %v220_v43 = vmov 0.0   ;;  %s221_s18 = smov [#allocation7]   ;;  %s162_s22 = sshll.u32 %s270_s3, 4  ;;  %s163_s22 = int_to_ptr.hbm [resolvable:$true] %s162_s22 }
   0x4   :  { %v44_v3 = vshrl.u32 %v43_v2, 7  ;;  %v46_v4 = vand.u32 127, %v43_v2  ;;  %23 = vst.msk [vmem:[#allocation2] sm:$0xff] %vm22_vm3, %v218_v41  ;;  %181 = vset.pattern.permute.xlu0 %v219_v42  ;;  %s160_s19 = sshll.u32 %s221_s18, 4  ;;  %vm153_vm4 = vcmask 0   ;;  %s161_s19 = int_to_ptr.vmem [resolvable:$true] %s160_s19 }
   0x5   :  { %24 = vst.msk [vmem:[#allocation3] sm:$0xff] %vm22_vm3, %v220_v43 }
   0x6   :  { %vm49_vm0 = vcmp.eq.s32.totalorder %v44_v3, %v46_v4 }
   0x9   :  { %35 = vmatmul.bf16.vlgmr.msra.gmra.mxu0 %v25_v1 }
   0xb   :  { %v61_v44 = vld [vmem:[#allocation2] sm:$0xff] }
   0xc   :  { %v66_v55 = vld [vmem:[#allocation3] sm:$0xff] }
  0x86   :  { %v36_v6 = vpop.f32.mrf.mxu0 }
  0x87   :  { %v41_v7 = vmul.f32 %v40_v5, %v36_v6 }
  0x89   :  { %v50_v8 = vsel %vm49_vm0, %v41_v7, 0.0  ;;  %v62_v9 = vsel %vm51_vm1, %v41_v7, -inf }
  0x8a   :  { %63 = vmax.xlane.f32.xlu0 %v62_v9  ;;  %v52_v10 = vsel %vm51_vm1, %v50_v8, 0.0  ;;  %v86_v11 = vrot.slane %v62_v9, 4 }
  0x8b   :  { %v53_v12 = vrot.slane %v52_v10, 4 }
  0x8c   :  { %v87_v13 = vmax.f32 %v62_v9, %v86_v11 }
  0x8d   :  { %v54_v14 = vadd.f32 %v53_v12, %v52_v10 }
  0x8e   :  { %v88_v15 = vrot.slane %v87_v13, 2  ;;  %v38_v16 = vpop.f32.mrf.mxu0 }
  0x8f   :  { %v55_v17 = vrot.slane %v54_v14, 2 }
  0x90   :  { %v89_v18 = vmax.f32 %v87_v13, %v88_v15 }
  0x91   :  { %v56_v19 = vadd.f32 %v55_v17, %v54_v14 }
  0x92   :  { %v90_v20 = vrot.slane %v89_v18, 1 }
  0x93   :  { %v57_v21 = vrot.slane %v56_v19, 1 }
  0x94   :  { %v91_v22 = vmax.f32 %v89_v18, %v90_v20 }
  0x95   :  { %v58_v23 = vadd.f32 %v57_v21, %v56_v19 }
  0x96   :  { %v92_v24 = vsub.f32 %v41_v7, %v91_v22 }
  0x97   :  { %60 = vst.msk [vmem:[#allocation5] sm:$0x1] %vm59_vm2, %v58_v23 }
  0x98   :  { %v93_v25 = vmul.f32 1.442695, %v92_v24 }
  0x9a   :  { %182 = vpow2.f32 %v93_v25 }
  0x9e   :  { %v137_v39 = vld [vmem:[#allocation5] sm:$0x1] }
  0x9f   :  { %v138_v40 = vsel %vm59_vm2, %v137_v39, 0.0 }
  0xa0   :  { %v183_v26 = vpop.eup %182 }
  0xa1   :  { %v95_v27 = vsel %vm51_vm1, %v183_v26, 0.0 }
  0xa2   :  { %v96_v28 = vrot.slane %v95_v27, 4 }
  0xa4   :  { %v97_v29 = vadd.f32 %v96_v28, %v95_v27 }
  0xa6   :  { %v98_v30 = vrot.slane %v97_v29, 2 }
  0xa8   :  { %v99_v31 = vadd.f32 %v98_v30, %v97_v29 }
  0xaa   :  { %v100_v32 = vrot.slane %v99_v31, 1 }
  0xac   :  { %v101_v33 = vadd.f32 %v100_v32, %v99_v31 }
  0xae   :  { %184 = vlog2.f32 %v101_v33 }
  0xb4   :  { %v185_v34 = vpop.eup %184 }
  0xb5   :  { %v103_v35 = vmul.f32 0.6931472, %v185_v34 }
  0xb7   :  { %v104_v36 = vadd.f32 %v103_v35, %v91_v22 }
  0xb9   :  { %105 = vst.msk [vmem:[#allocation4] sm:$0x1] %vm59_vm2, %v104_v36 }
  0xc0   :  { %v125_v37 = vld [vmem:[#allocation4] sm:$0x1] }
  0xc1   :  { %v126_v38 = vsel %vm59_vm2, %v125_v37, 0.0 }
  0xc2   :  { %127 = vadd.xlane.f32.xlu2 %v126_v38 }
  0xca   :  { %139 = vadd.xlane.f32.xlu2 %v138_v40 }
  0xfd   :  { %v64_v45 = vpop.xlane.xlu0 %63 }
  0xfe   :  { %v65_v46 = vmax.f32 %v61_v44, %v64_v45 }
 0x100   :  { %v67_v47 = vsub.f32 %v61_v44, %v65_v46  ;;  %85 = vst.msk [vmem:[#allocation2] sm:$0xff] %vm22_vm3, %v65_v46  ;;  %73 = vperm.xlu0 %181, %v65_v46  }
 0x102   :  { %v68_v53 = vmul.f32 1.442695, %v67_v47 }
 0x107   :  { %v109_v62 = vld [vmem:[#allocation2] sm:$0xff] }
 0x135   :  { %v128_v1 = vpop.xlane.xlu2 %127 }
 0x136   :  { %v129_v3 = vrot.slane %v128_v1, 4 }
 0x138   :  { %v130_v5 = vadd.f32 %v129_v3, %v128_v1 }
 0x13d   :  { %v140_v2 = vpop.xlane.xlu2 %139 }
 0x13e   :  { %v141_v4 = vrot.slane %v140_v2, 4 }
 0x140   :  { %v142_v6 = vadd.f32 %v141_v4, %v140_v2 }
 0x142   :  { %v143_v9 = vrot.slane %v142_v6, 2 }
 0x144   :  { %v144_v13 = vadd.f32 %v143_v9, %v142_v6 }
 0x146   :  { %v145_v18 = vrot.slane %v144_v13, 1 }
 0x148   :  { %v146_v21 = vadd.f32 %v145_v18, %v144_v13 }
 0x172   :  { %v74_v48 = vpop.permute.xlu0 %73 }
 0x173   :  { %v76_v49 = vsub.f32 %v41_v7, %v74_v48  ;;  %v131_v7 = vrot.slane %v130_v5, 2 }
 0x175   :  { %v77_v50 = vmul.f32 1.442695, %v76_v49  ;;  %v132_v12 = vadd.f32 %v131_v7, %v130_v5 }
 0x177   :  { %186 = vpow2.f32 %v77_v50  ;;  %v133_v16 = vrot.slane %v132_v12, 1 }
 0x178   :  { %188 = vpow2.f32 %v68_v53 }
 0x179   :  { %v134_v20 = vadd.f32 %v133_v16, %v132_v12 }
 0x17d   :  { %v187_v51 = vpop.eup %186 }
 0x17e   :  { %v79_v52 = vsel %vm51_vm1, %v187_v51, 0.0  ;;  %v189_v54 = vpop.eup %188 }
 0x17f   :  { %80 = vadd.xlane.f32.xlu1 %v79_v52  ;;  %v70_v56 = vmul.f32 %v189_v54, %v66_v55 }
 0x1f2   :  { %v81_v57 = vpop.xlane.xlu1 %80 }
 0x1f3   :  { %v82_v58 = vadd.f32 %v81_v57, %v70_v56 }
 0x1f5   :  { %84 = vst.msk [vmem:[#allocation3] sm:$0xff] %vm22_vm3, %v82_v58 }
 0x1fc   :  { %v110_v59 = vld [vmem:[#allocation3] sm:$0xff] }
 0x1fd   :  { %190 = vlog2.f32 %v110_v59 }
 0x203   :  { %v191_v60 = vpop.eup %190 }
 0x204   :  { %v112_v61 = vmul.f32 0.6931472, %v191_v60 }
 0x206   :  { %v113_v63 = vadd.f32 %v112_v61, %v109_v62 }
 0x208   :  { %v114_v0 = vsel %vm22_vm3, %v113_v63, 0.0 }
 0x209   :  { %115 = vadd.xlane.f32.xlu1 %v114_v0 }
 0x27c   :  { %v116_v8 = vpop.xlane.xlu1 %115 }
 0x27d   :  { %v117_v10 = vrot.slane %v116_v8, 4 }
 0x27f   :  { %v118_v11 = vadd.f32 %v117_v10, %v116_v8 }
 0x281   :  { %v119_v14 = vrot.slane %v118_v11, 2 }
 0x283   :  { %v120_v15 = vadd.f32 %v119_v14, %v118_v11 }
 0x285   :  { %v121_v17 = vrot.slane %v120_v15, 1 }
 0x287   :  { %v122_v19 = vadd.f32 %v121_v17, %v120_v15 }
 0x289   :  { %171 = vpush %v122_v19 }
 0x28a   :  { %173 = vpush %v134_v20 }
 0x28b   :  { %175 = vpush %v146_v21 }
 0x2ba   :  { %s172_s0 = spop %171 }
 0x2bb   :  { %v124_v22 = vstv %s172_s0  ;;  %s174_s1 = spop %173 }
 0x2bc   :  { %v136_v23 = vstv %s174_s1  ;;  %s176_s2 = spop %175 }
 0x2bd   :  { %v149_v24 = vadd.f32 %v136_v23, %v124_v22  ;;  %v148_v25 = vstv %s176_s2 }
 0x2be   :  { %v150_v26 = vmul.f32 2.0, %v148_v25 }
 0x2c0   :  { %v151_v27 = vsub.f32 %v149_v24, %v150_v26 }
 0x2c2   :  { %v152_v28 = vmul.f32 0.0625, %v151_v27 }
 0x2c4   :  { %154 = vst.msk [vmem:[#allocation7] sm:$0x1] %vm153_vm4, %v152_v28 }
 0x2c5   :  { %165 = dma.vmem_to_hbm [thread:$0]  %s161_s19, 16, %s163_s22, [#allocation8]  }
 0x2c6   :  { %216 = dma.done.wait [#allocation8], 16  }
 0x2c7   :  { %217 = vsyncadd [#allocation8], 4294967280 }
 0x2c8   :  { %170 = vsyncpa [#allocation8], 1 }

// kernel: clip_forward.3
= control target key start
LH: loop header
LB: loop body
LE: loop exit
PB: predicated region body
PF: predicated region fallthrough
CT: control target
= control target key end

     0   :  { %10 = vsyncpa [#allocation3], 0  ;;  %s1125_s0 = inlined_call_operand.vmem [shape: f32[8,768], index: 0, kind: input, shape index: {}]   ;;  %s1126_s1 = inlined_call_operand.hbm [shape: bf16[768,128], index: 1, kind: input, shape index: {}]   ;;  %s1127_s2 = inlined_call_operand.hbm [shape: f32[1,128], index: 2, kind: input, shape index: {}]   ;;  %s1128_s3 = inlined_call_operand.hbm [shape: bf16[128,128], index: 3, kind: input, shape index: {}]   ;;  %s1129_s4 = inlined_call_operand.hbm [shape: f32[1,128], index: 4, kind: input, shape index: {}]   ;;  %s1130_s5 = inlined_call_operand.vmem [shape: bf16[8,128], index: 5, kind: output, shape index: {}]  }
   0x1   :  { %11 = vsyncpa [#allocation5], 0  ;;  %s33_s20 = sshll.u32 %s1127_s2, 4  ;;  %s34_s20 = int_to_ptr.hbm [resolvable:$true] %s33_s20 }
   0x2   :  { %12 = vsyncpa [#allocation8], 0  ;;  %s1056_s21 = smov [#allocation4]   ;;  %s19_s25 = sshll.u32 %s1126_s1, 4  ;;  %s20_s25 = int_to_ptr.hbm [resolvable:$true] %s19_s25 }
   0x3   :  { %s35_s22 = sshll.u32 %s1056_s21, 4  ;;  %s1057_s26 = smov [#allocation2]   ;;  %s36_s22 = int_to_ptr.vmem [resolvable:$true] %s35_s22 }
   0x4   :  { %38 = dma.hbm_to_vmem [thread:$0]  %s34_s20, 16, %s36_s22, [#allocation5]  }
   0x5   :  { %s21_s27 = sshll.u32 %s1057_s26, 4  ;;  %s1058_s28 = smov 64   ;;  %s22_s27 = int_to_ptr.vmem [resolvable:$true] %s21_s27 }
   0x6   :  { %s1059_s29 = smov 4   ;;  %s43_s2 = sshll.u32 %s1128_s3, 4  ;;  %s44_s2 = int_to_ptr.hbm [resolvable:$true] %s43_s2 }
   0x7   :  { %27 = dma.hbm_to_vmem [thread:$0]  %s20_s25, 6144, %s22_s27, [#allocation3], %s1058_s28, %s1058_s28, %s1059_s29  }
   0x8   :  { %s1060_s7 = smov [#allocation6]   ;;  %s57_s1 = sshll.u32 %s1129_s4, 4  ;;  %s58_s1 = int_to_ptr.hbm [resolvable:$true] %s57_s1 }
   0x9   :  { %s45_s8 = sshll.u32 %s1060_s7, 4  ;;  %s1061_s11 = smov [#allocation7]   ;;  %s46_s8 = int_to_ptr.vmem [resolvable:$true] %s45_s8 }
   0xa   :  { %51 = dma.hbm_to_vmem [thread:$0]  %s44_s2, 1024, %s46_s8, [#allocation5], %s1058_s28, %s1058_s28, %s1059_s29  }
   0xb   :  { %s59_s12 = sshll.u32 %s1061_s11, 4  ;;  %s60_s12 = int_to_ptr.vmem [resolvable:$true] %s59_s12 }
   0xc   :  { %62 = dma.hbm_to_vmem [thread:$0]  %s58_s1, 16, %s60_s12, [#allocation8]  }
   0xd   :  { %1050 = dma.done.wait [#allocation3], 6144  }
   0xe   :  { %1051 = vsyncadd [#allocation3], 4294961152 }
   0xf   :  { %1052 = dma.done.wait [#allocation5], 1040  }
  0x10   :  { %1053 = vsyncadd [#allocation5], 4294966256 }
  0x11   :  { %1054 = dma.done.wait [#allocation8], 16  }
  0x12   :  { %1055 = vsyncadd [#allocation8], 4294967280  ;;  %v895_v0 = vld [vmem:[#allocation2 + $0x38] sm:$0xff]  ;;  %v894_v2 = vld [vmem:[#allocation2 + $0x30] sm:$0xff] }
  0x13   :  { %v903_v1 = vld [vmem:[#allocation2 + $0x78] sm:$0xff]  ;;  %479 = vmatpush.bf16.msra.mxu0 %v895_v0  ;;  %v902_v3 = vld [vmem:[#allocation2 + $0x70] sm:$0xff]  ;;  %v893_v8 = vld [vmem:[#allocation2 + $0x28] sm:$0xff] }
  0x14   :  { %492 = vmatpush.bf16.msra.mxu1 %v903_v1  ;;  %v911_v4 = vld [vmem:[#allocation2 + $0xb8] sm:$0xff]  ;;  %v910_v6 = vld [vmem:[#allocation2 + $0xb0] sm:$0xff]  ;;  %v901_v9 = vld [vmem:[#allocation2 + $0x68] sm:$0xff] }
  0x15   :  { %v919_v5 = vld [vmem:[#allocation2 + $0xf8] sm:$0xff]  ;;  %505 = vmatpush.bf16.msra.mxu2 %v911_v4  ;;  %v918_v7 = vld [vmem:[#allocation2 + $0xf0] sm:$0xff]  ;;  %v909_v10 = vld [vmem:[#allocation2 + $0xa8] sm:$0xff] }
  0x16   :  { %518 = vmatpush.bf16.msra.mxu3 %v919_v5  ;;  %v917_v11 = vld [vmem:[#allocation2 + $0xe8] sm:$0xff]  ;;  %v892_v12 = vld [vmem:[#allocation2 + $0x20] sm:$0xff]  ;;  %v891_v16 = vld [vmem:[#allocation2 + $0x18] sm:$0xff] }
  0x17   :  { %480 = vmatpush.bf16.msra.mxu0 %v894_v2  ;;  %v900_v13 = vld [vmem:[#allocation2 + $0x60] sm:$0xff]  ;;  %v899_v17 = vld [vmem:[#allocation2 + $0x58] sm:$0xff]  ;;  %v890_v20 = vld [vmem:[#allocation2 + $0x10] sm:$0xff] }
  0x18   :  { %493 = vmatpush.bf16.msra.mxu1 %v902_v3  ;;  %v908_v14 = vld [vmem:[#allocation2 + $0xa0] sm:$0xff]  ;;  %v907_v18 = vld [vmem:[#allocation2 + $0x98] sm:$0xff]  ;;  %v898_v21 = vld [vmem:[#allocation2 + $0x50] sm:$0xff] }
  0x19   :  { %506 = vmatpush.bf16.msra.mxu2 %v910_v6  ;;  %v916_v15 = vld [vmem:[#allocation2 + $0xe0] sm:$0xff]  ;;  %v915_v19 = vld [vmem:[#allocation2 + $0xd8] sm:$0xff]  ;;  %v906_v22 = vld [vmem:[#allocation2 + $0x90] sm:$0xff] }
  0x1a   :  { %519 = vmatpush.bf16.msra.mxu3 %v918_v7  ;;  %v914_v23 = vld [vmem:[#allocation2 + $0xd0] sm:$0xff]  ;;  %v889_v24 = vld [vmem:[#allocation2 + $0x8] sm:$0xff]  ;;  %v888_v27 = vld [vmem:[#allocation2] sm:$0xff] }
  0x1b   :  { %481 = vmatpush.bf16.msra.mxu0 %v893_v8  ;;  %v897_v25 = vld [vmem:[#allocation2 + $0x48] sm:$0xff]  ;;  %v896_v29 = vld [vmem:[#allocation2 + $0x40] sm:$0xff]  ;;  %v927_v32 = vld [vmem:[#allocation2 + $0x138] sm:$0xff] }
  0x1c   :  { %494 = vmatpush.bf16.msra.mxu1 %v901_v9  ;;  %v905_v26 = vld [vmem:[#allocation2 + $0x88] sm:$0xff]  ;;  %v79_v30 = vld [vmem:[%s1125_s0] sm:$0xff]  ;;  %v935_v33 = vld [vmem:[#allocation2 + $0x178] sm:$0xff] }
  0x1d   :  { %507 = vmatpush.bf16.msra.mxu2 %v909_v10  ;;  %v913_v28 = vld [vmem:[#allocation2 + $0xc8] sm:$0xff]  ;;  %v904_v34 = vld [vmem:[#allocation2 + $0x80] sm:$0xff]  ;;  %v85_v35 = vpack.c.bf16 %v79_v30, %v79_v30  ;;  %v81_v37 = vld [vmem:[%s1125_s0 + $0x10] sm:$0xff] }
  0x1e   :  { %520 = vmatpush.bf16.msra.mxu3 %v917_v11  ;;  %v80_v31 = vld [vmem:[%s1125_s0 + $0x8] sm:$0xff]  ;;  %v912_v38 = vld [vmem:[#allocation2 + $0xc0] sm:$0xff]  ;;  %v82_v39 = vld [vmem:[%s1125_s0 + $0x18] sm:$0xff]  ;;  %v87_v42 = vpack.c.bf16 %v81_v37, %v81_v37 }
  0x1f   :  { %482 = vmatpush.bf16.msra.mxu0 %v892_v12  ;;  %v86_v36 = vpack.c.bf16 %v80_v31, %v80_v31  ;;  %v926_v40 = vld [vmem:[#allocation2 + $0x130] sm:$0xff]  ;;  %v88_v43 = vpack.c.bf16 %v82_v39, %v82_v39  ;;  %v925_v44 = vld [vmem:[#allocation2 + $0x128] sm:$0xff]  ;;  %v924_v46 = vld [vmem:[#allocation2 + $0x120] sm:$0xff] }
  0x20   :  { %495 = vmatpush.bf16.msra.mxu1 %v900_v13  ;;  %v934_v41 = vld [vmem:[#allocation2 + $0x170] sm:$0xff]  ;;  %v933_v45 = vld [vmem:[#allocation2 + $0x168] sm:$0xff]  ;;  %v932_v47 = vld [vmem:[#allocation2 + $0x160] sm:$0xff] }
  0x21   :  { %508 = vmatpush.bf16.msra.mxu2 %v908_v14  ;;  %v923_v48 = vld [vmem:[#allocation2 + $0x118] sm:$0xff]  ;;  %v922_v50 = vld [vmem:[#allocation2 + $0x110] sm:$0xff]  ;;  %v921_v52 = vld [vmem:[#allocation2 + $0x108] sm:$0xff] }
  0x22   :  { %521 = vmatpush.bf16.msra.mxu3 %v916_v15  ;;  %v931_v49 = vld [vmem:[#allocation2 + $0x158] sm:$0xff]  ;;  %v930_v51 = vld [vmem:[#allocation2 + $0x150] sm:$0xff]  ;;  %v929_v53 = vld [vmem:[#allocation2 + $0x148] sm:$0xff] }
  0x23   :  { %483 = vmatpush.bf16.msra.mxu0 %v891_v16  ;;  %v920_v54 = vld [vmem:[#allocation2 + $0x100] sm:$0xff]  ;;  %v84_v57 = vld [vmem:[%s1125_s0 + $0x28] sm:$0xff]  ;;  %v942_v61 = vld [vmem:[#allocation6 + $0x30] sm:$0xff] }
  0x24   :  { %496 = vmatpush.bf16.msra.mxu1 %v899_v17  ;;  %v928_v55 = vld [vmem:[#allocation2 + $0x140] sm:$0xff]  ;;  %v90_v59 = vpack.c.bf16 %v84_v57, %v84_v57  ;;  %v941_v62 = vld [vmem:[#allocation6 + $0x28] sm:$0xff]  ;;  %v938_v1 = vld [vmem:[#allocation6 + $0x10] sm:$0xff] }
  0x25   :  { %509 = vmatpush.bf16.msra.mxu2 %v907_v18  ;;  %v83_v56 = vld [vmem:[%s1125_s0 + $0x20] sm:$0xff]  ;;  %v937_v2 = vld [vmem:[#allocation6 + $0x8] sm:$0xff] }
  0x26   :  { %522 = vmatpush.bf16.msra.mxu3 %v915_v19  ;;  %v89_v58 = vpack.c.bf16 %v83_v56, %v83_v56  ;;  %v943_v60 = vld [vmem:[#allocation6 + $0x38] sm:$0xff]  ;;  %v940_v63 = vld [vmem:[#allocation6 + $0x20] sm:$0xff] }
  0x27   :  { %484 = vmatpush.bf16.msra.mxu0 %v890_v20  ;;  %v939_v0 = vld [vmem:[#allocation6 + $0x18] sm:$0xff]  ;;  %v936_v5 = vld [vmem:[#allocation6] sm:$0xff] }
  0x28   :  { %497 = vmatpush.bf16.msra.mxu1 %v898_v21  ;;  %v950_v10 = vld [vmem:[#allocation4] ss:$0 sm:$0xff] }
  0x29   :  { %510 = vmatpush.bf16.msra.mxu2 %v906_v22 }
  0x2a   :  { %523 = vmatpush.bf16.msra.mxu3 %v914_v23 }
  0x2b   :  { %485 = vmatpush.bf16.msra.mxu0 %v889_v24 }
  0x2c   :  { %498 = vmatpush.bf16.msra.mxu1 %v897_v25  ;;  %v951_v25 = vld [vmem:[#allocation7] ss:$0 sm:$0xff] }
  0x2d   :  { %511 = vmatpush.bf16.msra.mxu2 %v905_v26 }
  0x2e   :  { %524 = vmatpush.bf16.msra.mxu3 %v913_v28 }
  0x2f   :  { %486 = vmatpush.bf16.msra.mxu0 %v888_v27 }
  0x30   :  { %499 = vmatpush.bf16.msra.mxu1 %v896_v29 }
  0x31   :  { %512 = vmatpush.bf16.msra.mxu2 %v904_v34 }
  0x32   :  { %487 = vmatmul.bf16.vlgmr.msra.gmra.mxu0 %v85_v35  ;;  %525 = vmatpush.bf16.msra.mxu3 %v912_v38 }
  0x33   :  { %531 = vmatpush.bf16.msrb.mxu0 %v927_v32  ;;  %500 = vmatmul.bf16.vlgmr.msra.gmra.mxu1 %v86_v36 }
  0x34   :  { %544 = vmatpush.bf16.msrb.mxu1 %v935_v33  ;;  %513 = vmatmul.bf16.vlgmr.msra.gmra.mxu2 %v87_v42 }
  0x35   :  { %526 = vmatmul.bf16.vlgmr.msra.gmra.mxu3 %v88_v43  ;;  %627 = vmatpush.bf16.msrb.mxu2 %v943_v60 }
  0x37   :  { %532 = vmatpush.bf16.msrb.mxu0 %v926_v40 }
  0x38   :  { %545 = vmatpush.bf16.msrb.mxu1 %v934_v41 }
  0x39   :  { %628 = vmatpush.bf16.msrb.mxu2 %v942_v61 }
  0x3b   :  { %533 = vmatpush.bf16.msrb.mxu0 %v925_v44 }
  0x3c   :  { %546 = vmatpush.bf16.msrb.mxu1 %v933_v45 }
  0x3d   :  { %629 = vmatpush.bf16.msrb.mxu2 %v941_v62 }
  0x3f   :  { %534 = vmatpush.bf16.msrb.mxu0 %v924_v46 }
  0x40   :  { %547 = vmatpush.bf16.msrb.mxu1 %v932_v47 }
  0x41   :  { %630 = vmatpush.bf16.msrb.mxu2 %v940_v63 }
  0x43   :  { %535 = vmatpush.bf16.msrb.mxu0 %v923_v48 }
  0x44   :  { %548 = vmatpush.bf16.msrb.mxu1 %v931_v49 }
  0x45   :  { %631 = vmatpush.bf16.msrb.mxu2 %v939_v0 }
  0x47   :  { %536 = vmatpush.bf16.msrb.mxu0 %v922_v50 }
  0x48   :  { %549 = vmatpush.bf16.msrb.mxu1 %v930_v51 }
  0x49   :  { %632 = vmatpush.bf16.msrb.mxu2 %v938_v1 }
  0x4b   :  { %537 = vmatpush.bf16.msrb.mxu0 %v921_v52 }
  0x4c   :  { %550 = vmatpush.bf16.msrb.mxu1 %v929_v53 }
  0x4d   :  { %633 = vmatpush.bf16.msrb.mxu2 %v937_v2 }
  0x4f   :  { %538 = vmatpush.bf16.msrb.mxu0 %v920_v54 }
  0x50   :  { %551 = vmatpush.bf16.msrb.mxu1 %v928_v55 }
  0x51   :  { %634 = vmatpush.bf16.msrb.mxu2 %v936_v5 }
  0x52   :  { %539 = vmatmul.bf16.vlgmr.msrb.gmra.mxu0 %v89_v58 }
  0x53   :  { %552 = vmatmul.bf16.vlgmr.msrb.gmra.mxu1 %v90_v59 }
  0xaf   :  { %v488_v3 = vpop.f32.mrf.mxu0 }
  0xb0   :  { %v501_v4 = vpop.f32.mrf.mxu1  ;;  %v489_v11 = vadd.f32 %v950_v10, %v488_v3 }
  0xb2   :  { %v502_v14 = vadd.f32 %v501_v4, %v489_v11 }
  0xb7   :  { %v490_v6 = vpop.f32.mrf.mxu0  ;;  %v514_v8 = vpop.f32.mrf.mxu2 }
  0xb8   :  { %v503_v7 = vpop.f32.mrf.mxu1  ;;  %v527_v9 = vpop.f32.mrf.mxu3  ;;  %v515_v15 = vadd.f32 %v514_v8, %v502_v14 }
  0xba   :  { %v528_v16 = vadd.f32 %v527_v9, %v515_v15 }
  0xbf   :  { %v516_v12 = vpop.f32.mrf.mxu2 }
  0xc0   :  { %v529_v13 = vpop.f32.mrf.mxu3 }
  0xcf   :  { %v540_v17 = vpop.f32.mrf.mxu0 }
  0xd0   :  { %v553_v18 = vpop.f32.mrf.mxu1  ;;  %v541_v19 = vadd.f32 %v540_v17, %v528_v16 }
  0xd2   :  { %v554_v20 = vadd.f32 %v553_v18, %v541_v19 }
  0xd4   :  { %v557_v21 = vmax.f32 %v554_v20, 0.0 }
  0xd6   :  { %v558_v22 = vpack.c.bf16 %v557_v21, %v557_v21 }
  0xd7   :  { %v542_v23 = vpop.f32.mrf.mxu0 }
  0xd8   :  { %v555_v24 = vpop.f32.mrf.mxu1  ;;  %635 = vmatmul.bf16.vlgmr.msrb.gmra.mxu2 %v558_v22 }
 0x15b   :  { %v636_v26 = vpop.f32.mrf.mxu2 }
 0x15c   :  { %v637_v27 = vadd.f32 %v951_v25, %v636_v26 }
 0x15e   :  { %v640_v28 = vmul.f32 %v637_v27, %v637_v27 }
 0x160   :  { %641 = vadd.xlane.f32.xlu0 %v640_v28 }
 0x163   :  { %v638_v29 = vpop.f32.mrf.mxu2 }
 0x1d3   :  { %v642_v30 = vpop.xlane.xlu0 %641 }
 0x1d4   :  { %v643_v31 = vmax.f32 %v642_v30, 1e-24 }
 0x1d6   :  { %952 = vrsqrt.f32 %v643_v31  ;;  %vm650_vm1 = vweird.f32 %v643_v31 }
 0x1dc   :  { %v953_v32 = vpop.eup %952 }
 0x1dd   :  { %v645_v33 = vmul.f32 %v953_v32, %v643_v31  ;;  %vm651_vm0 = vweird.f32 %v953_v32 }
 0x1de   :  { %vm652_vm2 = vmor %vm650_vm1, %vm651_vm0 }
 0x1df   :  { %v646_v34 = vmul.f32 %v953_v32, %v645_v33 }
 0x1e1   :  { %v647_v35 = vmul.f32 0.5, %v646_v34 }
 0x1e3   :  { %v648_v36 = vsub.f32 1.5, %v647_v35 }
 0x1e5   :  { %v649_v37 = vmul.f32 %v953_v32, %v648_v36 }
 0x1e7   :  { %v653_v38 = vsel %vm652_vm2, %v953_v32, %v649_v37 }
 0x1e8   :  { %v654_v39 = vmul.f32 %v653_v38, %v637_v27 }
 0x1ea   :  { %v655_v40 = vpack.c.bf16 %v654_v39, %v654_v39 }
 0x1ec   :  { %656 = vst [vmem:[%s1130_s5] sm:$0xf] %v655_v40 }
 0x1ed   :  { %661 = vsyncpa [#allocation3], 1 }
 0x1ee   :  { %662 = vsyncpa [#allocation5], 1 }
 0x1ef   :  { %663 = vsyncpa [#allocation8], 1 }

// kernel: clip_forward.4
= control target key start
LH: loop header
LB: loop body
LE: loop exit
PB: predicated region body
PF: predicated region fallthrough
CT: control target
= control target key end

     0   :  { %10 = vsyncpa [#allocation3], 0  ;;  %s4750_s0 = inlined_call_operand.vmem [shape: f32[8,768], index: 0, kind: input, shape index: {}]   ;;  %s4751_s1 = inlined_call_operand.hbm [shape: bf16[768,768], index: 1, kind: input, shape index: {}]   ;;  %s4752_s2 = inlined_call_operand.hbm [shape: f32[1,768], index: 2, kind: input, shape index: {}]   ;;  %s4753_s3 = inlined_call_operand.hbm [shape: bf16[768,128], index: 3, kind: input, shape index: {}]   ;;  %s4754_s4 = inlined_call_operand.hbm [shape: f32[1,128], index: 4, kind: input, shape index: {}]   ;;  %s4755_s5 = inlined_call_operand.vmem [shape: bf16[8,128], index: 5, kind: output, shape index: {}]  }
   0x1   :  { %11 = vsyncpa [#allocation5], 0  ;;  %s33_s20 = sshll.u32 %s4752_s2, 4  ;;  %s34_s20 = int_to_ptr.hbm [resolvable:$true] %s33_s20 }
   0x2   :  { %12 = vsyncpa [#allocation8], 0  ;;  %s4597_s21 = smov [#allocation4]   ;;  %s19_s25 = sshll.u32 %s4751_s1, 4  ;;  %s20_s25 = int_to_ptr.hbm [resolvable:$true] %s19_s25 }
   0x3   :  { %s35_s22 = sshll.u32 %s4597_s21, 4  ;;  %s4598_s26 = smov [#allocation2]   ;;  %s36_s22 = int_to_ptr.vmem [resolvable:$true] %s35_s22 }
   0x4   :  { %38 = dma.hbm_to_vmem [thread:$0]  %s34_s20, 96, %s36_s22, [#allocation5]  }
   0x5   :  { %s21_s27 = sshll.u32 %s4598_s26, 4  ;;  %s4599_s28 = smov 384   ;;  %s22_s27 = int_to_ptr.vmem [resolvable:$true] %s21_s27 }
   0x6   :  { %s4600_s29 = smov 24   ;;  %s43_s2 = sshll.u32 %s4753_s3, 4  ;;  %s44_s2 = int_to_ptr.hbm [resolvable:$true] %s43_s2 }
   0x7   :  { %27 = dma.hbm_to_vmem [thread:$0]  %s20_s25, 36864, %s22_s27, [#allocation3], %s4599_s28, %s4599_s28, %s4600_s29  }
   0x8   :  { %s4601_s7 = smov [#allocation6]   ;;  %s57_s1 = sshll.u32 %s4754_s4, 4  ;;  %s58_s1 = int_to_ptr.hbm [resolvable:$true] %s57_s1 }
   0x9   :  { %s45_s8 = sshll.u32 %s4601_s7, 4  ;;  %s4602_s11 = smov 64   ;;  %s46_s8 = int_to_ptr.vmem [resolvable:$true] %s45_s8 }
   0xa   :  { %s4603_s12 = smov 4   ;;  %s4604_s13 = smov [#allocation7]  }
   0xb   :  { %51 = dma.hbm_to_vmem [thread:$0]  %s44_s2, 6144, %s46_s8, [#allocation5], %s4602_s11, %s4602_s11, %s4603_s12  }
   0xc   :  { %s59_s14 = sshll.u32 %s4604_s13, 4  ;;  %s60_s14 = int_to_ptr.vmem [resolvable:$true] %s59_s14 }
   0xd   :  { %62 = dma.hbm_to_vmem [thread:$0]  %s58_s1, 16, %s60_s14, [#allocation8]  }
   0xe   :  { %4591 = dma.done.wait [#allocation3], 36864  }
   0xf   :  { %4592 = vsyncadd [#allocation3], 4294930432 }
  0x10   :  { %4593 = dma.done.wait [#allocation5], 6240  }
  0x11   :  { %4594 = vsyncadd [#allocation5], 4294961056 }
  0x12   :  { %4595 = dma.done.wait [#allocation8], 16  }
  0x13   :  { %4596 = vsyncadd [#allocation8], 4294967280  ;;  %v2973_v0 = vld [vmem:[#allocation2 + $0x150] sm:$0xf]  ;;  %v4192_v1 = vld [vmem:[#allocation2 + $0x164] sm:$0xf0] }
  0x14   :  { %v3165_v2 = vld [vmem:[#allocation2 + $0x2d0] sm:$0xf]  ;;  %v2974_v3 = vor.u32 %v4192_v1, %v2973_v0  ;;  %v4240_v4 = vld [vmem:[#allocation2 + $0x2e4] sm:$0xf0]  ;;  %v2949_v11 = vld [vmem:[#allocation2 + $0x120] sm:$0xf] }
  0x15   :  { %v3357_v5 = vld [vmem:[#allocation2 + $0x450] sm:$0xf]  ;;  %v4288_v6 = vld [vmem:[#allocation2 + $0x464] sm:$0xf0]  ;;  %v3166_v7 = vor.u32 %v4240_v4, %v3165_v2  ;;  %v4186_v13 = vld [vmem:[#allocation2 + $0x134] sm:$0xf0] }
  0x16   :  { %v3358_v8 = vor.u32 %v4288_v6, %v3357_v5  ;;  %v3549_v9 = vld [vmem:[#allocation2 + $0x5d0] sm:$0xf]  ;;  %v4336_v10 = vld [vmem:[#allocation2 + $0x5e4] sm:$0xf0]  ;;  %1833 = vmatpush.bf16.msra.mxu0 %v2974_v3  ;;  %v3141_v14 = vld [vmem:[#allocation2 + $0x2a0] sm:$0xf]  ;;  %v2950_v16 = vor.u32 %v4186_v13, %v2949_v11 }
  0x17   :  { %v3550_v12 = vor.u32 %v4336_v10, %v3549_v9  ;;  %v4234_v15 = vld [vmem:[#allocation2 + $0x2b4] sm:$0xf0]  ;;  %1846 = vmatpush.bf16.msra.mxu1 %v3166_v7  ;;  %v3333_v18 = vld [vmem:[#allocation2 + $0x420] sm:$0xf]  ;;  %v2925_v23 = vld [vmem:[#allocation2 + $0xf0] sm:$0xf] }
  0x18   :  { %1859 = vmatpush.bf16.msra.mxu2 %v3358_v8  ;;  %v3142_v17 = vor.u32 %v4234_v15, %v3141_v14  ;;  %v4282_v19 = vld [vmem:[#allocation2 + $0x434] sm:$0xf0]  ;;  %v3525_v20 = vld [vmem:[#allocation2 + $0x5a0] sm:$0xf]  ;;  %v4180_v24 = vld [vmem:[#allocation2 + $0x104] sm:$0xf0] }
  0x19   :  { %1872 = vmatpush.bf16.msra.mxu3 %v3550_v12  ;;  %v3334_v21 = vor.u32 %v4282_v19, %v3333_v18  ;;  %v4330_v22 = vld [vmem:[#allocation2 + $0x5b4] sm:$0xf0]  ;;  %v3117_v26 = vld [vmem:[#allocation2 + $0x270] sm:$0xf]  ;;  %v4228_v27 = vld [vmem:[#allocation2 + $0x284] sm:$0xf0]  ;;  %v2926_v29 = vor.u32 %v4180_v24, %v2925_v23 }
  0x1a   :  { %v3526_v25 = vor.u32 %v4330_v22, %v3525_v20  ;;  %v3309_v28 = vld [vmem:[#allocation2 + $0x3f0] sm:$0xf]  ;;  %1834 = vmatpush.bf16.msra.mxu0 %v2950_v16  ;;  %v4276_v30 = vld [vmem:[#allocation2 + $0x404] sm:$0xf0]  ;;  %v3118_v33 = vor.u32 %v4228_v27, %v3117_v26  ;;  %v2901_v35 = vld [vmem:[#allocation2 + $0xc0] sm:$0xf] }
  0x1b   :  { %v3501_v31 = vld [vmem:[#allocation2 + $0x570] sm:$0xf]  ;;  %v4324_v32 = vld [vmem:[#allocation2 + $0x584] sm:$0xf0]  ;;  %1847 = vmatpush.bf16.msra.mxu1 %v3142_v17  ;;  %v3310_v34 = vor.u32 %v4276_v30, %v3309_v28  ;;  %v4174_v36 = vld [vmem:[#allocation2 + $0xd4] sm:$0xf0] }
  0x1c   :  { %1860 = vmatpush.bf16.msra.mxu2 %v3334_v21  ;;  %v3093_v37 = vld [vmem:[#allocation2 + $0x240] sm:$0xf]  ;;  %v3502_v38 = vor.u32 %v4324_v32, %v3501_v31  ;;  %v4222_v39 = vld [vmem:[#allocation2 + $0x254] sm:$0xf0]  ;;  %v2902_v44 = vor.u32 %v4174_v36, %v2901_v35  ;;  %v2877_v47 = vld [vmem:[#allocation2 + $0x90] sm:$0xf] }
  0x1d   :  { %1873 = vmatpush.bf16.msra.mxu3 %v3526_v25  ;;  %v3285_v40 = vld [vmem:[#allocation2 + $0x3c0] sm:$0xf]  ;;  %v4270_v41 = vld [vmem:[#allocation2 + $0x3d4] sm:$0xf0]  ;;  %v3094_v45 = vor.u32 %v4222_v39, %v3093_v37  ;;  %v4168_v48 = vld [vmem:[#allocation2 + $0xa4] sm:$0xf0] }
  0x1e   :  { %v3477_v42 = vld [vmem:[#allocation2 + $0x540] sm:$0xf]  ;;  %v4318_v43 = vld [vmem:[#allocation2 + $0x554] sm:$0xf0]  ;;  %1835 = vmatpush.bf16.msra.mxu0 %v2926_v29  ;;  %v3286_v46 = vor.u32 %v4270_v41, %v3285_v40  ;;  %v3069_v49 = vld [vmem:[#allocation2 + $0x210] sm:$0xf]  ;;  %v2878_v56 = vor.u32 %v4168_v48, %v2877_v47 }
  0x1f   :  { %1848 = vmatpush.bf16.msra.mxu1 %v3118_v33  ;;  %v3478_v50 = vor.u32 %v4318_v43, %v3477_v42  ;;  %v4216_v51 = vld [vmem:[#allocation2 + $0x224] sm:$0xf0]  ;;  %v3261_v52 = vld [vmem:[#allocation2 + $0x390] sm:$0xf]  ;;  %v2853_v59 = vld [vmem:[#allocation2 + $0x60] sm:$0xf] }
  0x20   :  { %1861 = vmatpush.bf16.msra.mxu2 %v3310_v34  ;;  %v4264_v53 = vld [vmem:[#allocation2 + $0x3a4] sm:$0xf0]  ;;  %v3453_v54 = vld [vmem:[#allocation2 + $0x510] sm:$0xf]  ;;  %v3070_v57 = vor.u32 %v4216_v51, %v3069_v49  ;;  %v4162_v60 = vld [vmem:[#allocation2 + $0x74] sm:$0xf0] }
  0x21   :  { %1874 = vmatpush.bf16.msra.mxu3 %v3502_v38  ;;  %v4312_v55 = vld [vmem:[#allocation2 + $0x524] sm:$0xf0]  ;;  %v3262_v58 = vor.u32 %v4264_v53, %v3261_v52  ;;  %v3045_v61 = vld [vmem:[#allocation2 + $0x1e0] sm:$0xf]  ;;  %v4210_v63 = vld [vmem:[#allocation2 + $0x1f4] sm:$0xf0]  ;;  %v2854_v4 = vor.u32 %v4162_v60, %v2853_v59 }
  0x22   :  { %1836 = vmatpush.bf16.msra.mxu0 %v2902_v44  ;;  %v3454_v62 = vor.u32 %v4312_v55, %v3453_v54  ;;  %v3237_v0 = vld [vmem:[#allocation2 + $0x360] sm:$0xf]  ;;  %v4258_v1 = vld [vmem:[#allocation2 + $0x374] sm:$0xf0]  ;;  %v3046_v5 = vor.u32 %v4210_v63, %v3045_v61  ;;  %v2829_v7 = vld [vmem:[#allocation2 + $0x30] sm:$0xf] }
  0x23   :  { %1849 = vmatpush.bf16.msra.mxu1 %v3094_v45  ;;  %v3429_v2 = vld [vmem:[#allocation2 + $0x4e0] sm:$0xf]  ;;  %v4306_v3 = vld [vmem:[#allocation2 + $0x4f4] sm:$0xf0]  ;;  %v3238_v6 = vor.u32 %v4258_v1, %v3237_v0  ;;  %v4156_v8 = vld [vmem:[#allocation2 + $0x44] sm:$0xf0] }
  0x24   :  { %1862 = vmatpush.bf16.msra.mxu2 %v3286_v46  ;;  %v3021_v9 = vld [vmem:[#allocation2 + $0x1b0] sm:$0xf]  ;;  %v3430_v10 = vor.u32 %v4306_v3, %v3429_v2  ;;  %v4204_v11 = vld [vmem:[#allocation2 + $0x1c4] sm:$0xf0]  ;;  %v2830_v16 = vor.u32 %v4156_v8, %v2829_v7  ;;  %v2805_v17 = vld [vmem:[#allocation2] sm:$0xf] }
  0x25   :  { %1875 = vmatpush.bf16.msra.mxu3 %v3478_v50  ;;  %v3213_v12 = vld [vmem:[#allocation2 + $0x330] sm:$0xf]  ;;  %v4252_v13 = vld [vmem:[#allocation2 + $0x344] sm:$0xf0]  ;;  %v4150_v18 = vld [vmem:[#allocation2 + $0x14] sm:$0xf0]  ;;  %v3022_v19 = vor.u32 %v4204_v11, %v3021_v9 }
  0x26   :  { %1837 = vmatpush.bf16.msra.mxu0 %v2878_v56  ;;  %v3405_v14 = vld [vmem:[#allocation2 + $0x4b0] sm:$0xf]  ;;  %v4300_v15 = vld [vmem:[#allocation2 + $0x4c4] sm:$0xf0]  ;;  %v3214_v20 = vor.u32 %v4252_v13, %v3213_v12  ;;  %v2997_v21 = vld [vmem:[#allocation2 + $0x180] sm:$0xf]  ;;  %v2806_v31 = vor.u32 %v4150_v18, %v2805_v17 }
  0x27   :  { %1850 = vmatpush.bf16.msra.mxu1 %v3070_v57  ;;  %v4198_v22 = vld [vmem:[#allocation2 + $0x194] sm:$0xf0]  ;;  %v3189_v23 = vld [vmem:[#allocation2 + $0x300] sm:$0xf]  ;;  %v3406_v24 = vor.u32 %v4300_v15, %v3405_v14  ;;  %v3741_v28 = vld [vmem:[#allocation2 + $0x750] sm:$0xf] }
  0x28   :  { %1863 = vmatpush.bf16.msra.mxu2 %v3262_v58  ;;  %v4246_v25 = vld [vmem:[#allocation2 + $0x314] sm:$0xf0]  ;;  %v3381_v26 = vld [vmem:[#allocation2 + $0x480] sm:$0xf]  ;;  %v4384_v29 = vld [vmem:[#allocation2 + $0x764] sm:$0xf0]  ;;  %v2998_v35 = vor.u32 %v4198_v22, %v2997_v21 }
  0x29   :  { %1876 = vmatpush.bf16.msra.mxu3 %v3454_v62  ;;  %v4294_v27 = vld [vmem:[#allocation2 + $0x494] sm:$0xf0]  ;;  %v3933_v30 = vld [vmem:[#allocation2 + $0x8d0] sm:$0xf]  ;;  %v4432_v32 = vld [vmem:[#allocation2 + $0x8e4] sm:$0xf0]  ;;  %v3190_v36 = vor.u32 %v4246_v25, %v3189_v23  ;;  %v3742_v40 = vor.u32 %v4384_v29, %v3741_v28 }
  0x2a   :  { %1838 = vmatpush.bf16.msra.mxu0 %v2854_v4  ;;  %v4189_v33 = vld [vmem:[#allocation2 + $0x154] sm:$0xf]  ;;  %v2975_v34 = vld [vmem:[#allocation2 + $0x168] sm:$0xf0]  ;;  %v3382_v39 = vor.u32 %v4294_v27, %v3381_v26  ;;  %v3934_v41 = vor.u32 %v4432_v32, %v3933_v30  ;;  %v3717_v43 = vld [vmem:[#allocation2 + $0x720] sm:$0xf] }
  0x2b   :  { %1851 = vmatpush.bf16.msra.mxu1 %v3046_v5  ;;  %v4237_v37 = vld [vmem:[#allocation2 + $0x2d4] sm:$0xf]  ;;  %v3167_v38 = vld [vmem:[#allocation2 + $0x2e8] sm:$0xf0]  ;;  %v2978_v42 = vor.u32 %v4189_v33, %v2975_v34  ;;  %v4378_v44 = vld [vmem:[#allocation2 + $0x734] sm:$0xf0] }
  0x2c   :  { %1864 = vmatpush.bf16.msra.mxu2 %v3238_v6  ;;  %v3909_v45 = vld [vmem:[#allocation2 + $0x8a0] sm:$0xf]  ;;  %v3170_v46 = vor.u32 %v4237_v37, %v3167_v38  ;;  %v4426_v47 = vld [vmem:[#allocation2 + $0x8b4] sm:$0xf0]  ;;  %v4183_v48 = vld [vmem:[#allocation2 + $0x124] sm:$0xf]  ;;  %v3718_v52 = vor.u32 %v4378_v44, %v3717_v43 }
  0x2d   :  { %1877 = vmatpush.bf16.msra.mxu3 %v3430_v10  ;;  %v2951_v49 = vld [vmem:[#allocation2 + $0x138] sm:$0xf0]  ;;  %v4231_v50 = vld [vmem:[#allocation2 + $0x2a4] sm:$0xf]  ;;  %v3693_v53 = vld [vmem:[#allocation2 + $0x6f0] sm:$0xf]  ;;  %v3910_v54 = vor.u32 %v4426_v47, %v3909_v45 }
  0x2e   :  { %1839 = vmatpush.bf16.msra.mxu0 %v2830_v16  ;;  %v3143_v51 = vld [vmem:[#allocation2 + $0x2b8] sm:$0xf0]  ;;  %v2954_v55 = vor.u32 %v4183_v48, %v2951_v49  ;;  %v4372_v56 = vld [vmem:[#allocation2 + $0x704] sm:$0xf0]  ;;  %v3885_v57 = vld [vmem:[#allocation2 + $0x870] sm:$0xf] }
  0x2f   :  { %1852 = vmatpush.bf16.msra.mxu1 %v3022_v19  ;;  %v4420_v58 = vld [vmem:[#allocation2 + $0x884] sm:$0xf0]  ;;  %v3146_v59 = vor.u32 %v4231_v50, %v3143_v51  ;;  %v4177_v60 = vld [vmem:[#allocation2 + $0xf4] sm:$0xf]  ;;  %v2927_v61 = vld [vmem:[#allocation2 + $0x108] sm:$0xf0]  ;;  %v3694_v0 = vor.u32 %v4372_v56, %v3693_v53 }
  0x30   :  { %1865 = vmatpush.bf16.msra.mxu2 %v3214_v20  ;;  %v4225_v62 = vld [vmem:[#allocation2 + $0x274] sm:$0xf]  ;;  %v3119_v63 = vld [vmem:[#allocation2 + $0x288] sm:$0xf0]  ;;  %v3886_v1 = vor.u32 %v4420_v58, %v3885_v57  ;;  %v3669_v2 = vld [vmem:[#allocation2 + $0x6c0] sm:$0xf]  ;;  %v2930_v5 = vor.u32 %v4177_v60, %v2927_v61 }
  0x31   :  { %1878 = vmatpush.bf16.msra.mxu3 %v3406_v24  ;;  %v81_v3 = vld [vmem:[%s4750_s0 + $0x10] sm:$0xff]  ;;  %v79_v4 = vld [vmem:[%s4750_s0] sm:$0xff]  ;;  %v4366_v6 = vld [vmem:[#allocation2 + $0x6d4] sm:$0xf0]  ;;  %v3122_v11 = vor.u32 %v4225_v62, %v3119_v63 }
  0x32   :  { %1840 = vmatpush.bf16.msra.mxu0 %v2806_v31  ;;  %v3861_v7 = vld [vmem:[#allocation2 + $0x840] sm:$0xf]  ;;  %v4653_v8 = vpack.c.bf16 %v81_v3, %v81_v3  ;;  %v4655_v9 = vpack.c.bf16 %v79_v4, %v79_v4  ;;  %v82_v10 = vld [vmem:[%s4750_s0 + $0x18] sm:$0xff]  ;;  %v4171_v13 = vld [vmem:[#allocation2 + $0xc4] sm:$0xf]  ;;  %v3670_v18 = vor.u32 %v4366_v6, %v3669_v2 }
  0x33   :  { %1853 = vmatpush.bf16.msra.mxu1 %v2998_v35  ;;  %v4414_v12 = vld [vmem:[#allocation2 + $0x854] sm:$0xf0]  ;;  %v2903_v14 = vld [vmem:[#allocation2 + $0xd8] sm:$0xf0]  ;;  %v4660_v15 = vpack.c.bf16 %v82_v10, %v82_v10  ;;  %v4219_v16 = vld [vmem:[#allocation2 + $0x244] sm:$0xf] }
  0x34   :  { %1866 = vmatpush.bf16.msra.mxu2 %v3190_v36  ;;  %v3095_v17 = vld [vmem:[#allocation2 + $0x258] sm:$0xf0]  ;;  %v80_v19 = vld [vmem:[%s4750_s0 + $0x8] sm:$0xff]  ;;  %v3862_v20 = vor.u32 %v4414_v12, %v3861_v7  ;;  %v2906_v21 = vor.u32 %v4171_v13, %v2903_v14  ;;  %v3645_v22 = vld [vmem:[#allocation2 + $0x690] sm:$0xf] }
  0x35   :  { %1879 = vmatpush.bf16.msra.mxu3 %v3382_v39  ;;  %1841 = vmatmul.bf16.vlgmr.msra.gmra.mxu0 %v4655_v9  ;;  %v4360_v23 = vld [vmem:[#allocation2 + $0x6a4] sm:$0xf0]  ;;  %v3837_v24 = vld [vmem:[#allocation2 + $0x810] sm:$0xf]  ;;  %v4668_v25 = vpack.c.bf16 %v80_v19, %v80_v19  ;;  %v3098_v26 = vor.u32 %v4219_v16, %v3095_v17  ;;  %v4165_v28 = vld [vmem:[#allocation2 + $0x94] sm:$0xf] }
  0x36   :  { %1885 = vmatpush.bf16.msrb.mxu0 %v3742_v40  ;;  %v4408_v27 = vld [vmem:[#allocation2 + $0x824] sm:$0xf0]  ;;  %v2879_v29 = vld [vmem:[#allocation2 + $0xa8] sm:$0xf0]  ;;  %v4213_v30 = vld [vmem:[#allocation2 + $0x214] sm:$0xf]  ;;  %v3646_v32 = vor.u32 %v4360_v23, %v3645_v22 }
  0x37   :  { %1898 = vmatpush.bf16.msrb.mxu1 %v3934_v41  ;;  %1867 = vmatmul.bf16.vlgmr.msra.gmra.mxu2 %v4653_v8  ;;  %v3071_v31 = vld [vmem:[#allocation2 + $0x228] sm:$0xf0]  ;;  %v3838_v33 = vor.u32 %v4408_v27, %v3837_v24  ;;  %v2882_v34 = vor.u32 %v4165_v28, %v2879_v29  ;;  %v3621_v35 = vld [vmem:[#allocation2 + $0x660] sm:$0xf]  ;;  %v4354_v36 = vld [vmem:[#allocation2 + $0x674] sm:$0xf0] }
  0x38   :  { %1911 = vmatpush.bf16.msrb.mxu2 %v2978_v42  ;;  %1880 = vmatmul.bf16.vlgmr.msra.gmra.mxu3 %v4660_v15  ;;  %v3813_v37 = vld [vmem:[#allocation2 + $0x7e0] sm:$0xf]  ;;  %v3074_v38 = vor.u32 %v4213_v30, %v3071_v31  ;;  %v4402_v39 = vld [vmem:[#allocation2 + $0x7f4] sm:$0xf0]  ;;  %v4159_v40 = vld [vmem:[#allocation2 + $0x64] sm:$0xf]  ;;  %v3622_v44 = vor.u32 %v4354_v36, %v3621_v35 }
  0x39   :  { %1924 = vmatpush.bf16.msrb.mxu3 %v3170_v46  ;;  %1854 = vmatmul.bf16.vlgmr.msra.gmra.mxu1 %v4668_v25  ;;  %v2855_v41 = vld [vmem:[#allocation2 + $0x78] sm:$0xf0]  ;;  %v4207_v42 = vld [vmem:[#allocation2 + $0x1e4] sm:$0xf]  ;;  %v3814_v45 = vor.u32 %v4402_v39, %v3813_v37  ;;  %v3597_v47 = vld [vmem:[#allocation2 + $0x630] sm:$0xf] }
  0x3a   :  { %1886 = vmatpush.bf16.msrb.mxu0 %v3718_v52  ;;  %v3047_v43 = vld [vmem:[#allocation2 + $0x1f8] sm:$0xf0]  ;;  %v2858_v46 = vor.u32 %v4159_v40, %v2855_v41  ;;  %v4348_v48 = vld [vmem:[#allocation2 + $0x644] sm:$0xf0]  ;;  %v3789_v49 = vld [vmem:[#allocation2 + $0x7b0] sm:$0xf] }
  0x3b   :  { %1899 = vmatpush.bf16.msrb.mxu1 %v3910_v54  ;;  %v3050_v50 = vor.u32 %v4207_v42, %v3047_v43  ;;  %v4396_v51 = vld [vmem:[#allocation2 + $0x7c4] sm:$0xf0]  ;;  %v4153_v52 = vld [vmem:[#allocation2 + $0x34] sm:$0xf]  ;;  %v2831_v53 = vld [vmem:[#allocation2 + $0x48] sm:$0xf0]  ;;  %v3598_v56 = vor.u32 %v4348_v48, %v3597_v47 }
  0x3c   :  { %1912 = vmatpush.bf16.msrb.mxu2 %v2954_v55  ;;  %v4201_v54 = vld [vmem:[#allocation2 + $0x1b4] sm:$0xf]  ;;  %v3023_v55 = vld [vmem:[#allocation2 + $0x1c8] sm:$0xf0]  ;;  %v3573_v57 = vld [vmem:[#allocation2 + $0x600] sm:$0xf]  ;;  %v2834_v60 = vor.u32 %v4153_v52, %v2831_v53 }
  0x3d   :  { %1925 = vmatpush.bf16.msrb.mxu3 %v3146_v59  ;;  %v4342_v58 = vld [vmem:[#allocation2 + $0x614] sm:$0xf0]  ;;  %v3790_v59 = vor.u32 %v4396_v51, %v3789_v49  ;;  %v3765_v61 = vld [vmem:[#allocation2 + $0x780] sm:$0xf]  ;;  %v4147_v63 = vld [vmem:[#allocation2 + $0x4] sm:$0xf] }
  0x3e   :  { %1887 = vmatpush.bf16.msrb.mxu0 %v3694_v0  ;;  %v4390_v62 = vld [vmem:[#allocation2 + $0x794] sm:$0xf0]  ;;  %v3026_v0 = vor.u32 %v4201_v54, %v3023_v55  ;;  %v4195_v2 = vld [vmem:[#allocation2 + $0x184] sm:$0xf]  ;;  %v2999_v3 = vld [vmem:[#allocation2 + $0x198] sm:$0xf0]  ;;  %v3574_v7 = vor.u32 %v4342_v58, %v3573_v57 }
  0x3f   :  { %1900 = vmatpush.bf16.msrb.mxu1 %v3886_v1  ;;  %v2807_v1 = vld [vmem:[#allocation2 + $0x18] sm:$0xf0]  ;;  %v4285_v4 = vld [vmem:[#allocation2 + $0x454] sm:$0xf]  ;;  %v3551_v10 = vld [vmem:[#allocation2 + $0x5e8] sm:$0xf0]  ;;  %v3766_v13 = vor.u32 %v4390_v62, %v3765_v61  ;;  %v3002_v19 = vor.u32 %v4195_v2, %v2999_v3 }
  0x40   :  { %1913 = vmatpush.bf16.msrb.mxu2 %v2930_v5  ;;  %v3359_v5 = vld [vmem:[#allocation2 + $0x468] sm:$0xf0]  ;;  %v4333_v6 = vld [vmem:[#allocation2 + $0x5d4] sm:$0xf]  ;;  %v2810_v14 = vor.u32 %v4147_v63, %v2807_v1  ;;  %v4279_v24 = vld [vmem:[#allocation2 + $0x424] sm:$0xf] }
  0x41   :  { %1926 = vmatpush.bf16.msrb.mxu3 %v3122_v11  ;;  %v4381_v11 = vld [vmem:[#allocation2 + $0x754] sm:$0xf]  ;;  %v3743_v12 = vld [vmem:[#allocation2 + $0x768] sm:$0xf0]  ;;  %v3554_v22 = vor.u32 %v4333_v6, %v3551_v10  ;;  %v4327_v27 = vld [vmem:[#allocation2 + $0x5a4] sm:$0xf] }
  0x42   :  { %1888 = vmatpush.bf16.msrb.mxu0 %v3670_v18  ;;  %v4429_v16 = vld [vmem:[#allocation2 + $0x8d4] sm:$0xf]  ;;  %v3935_v17 = vld [vmem:[#allocation2 + $0x8e8] sm:$0xf0]  ;;  %v83_v18 = vld [vmem:[%s4750_s0 + $0x20] sm:$0xff]  ;;  %v3746_v23 = vor.u32 %v4381_v11, %v3743_v12 }
  0x43   :  { %1901 = vmatpush.bf16.msrb.mxu1 %v3862_v20  ;;  %v3362_v20 = vor.u32 %v4285_v4, %v3359_v5  ;;  %v3938_v28 = vor.u32 %v4429_v16, %v3935_v17  ;;  %v3527_v29 = vld [vmem:[#allocation2 + $0x5b8] sm:$0xf0]  ;;  %v4375_v30 = vld [vmem:[#allocation2 + $0x724] sm:$0xf]  ;;  %v4273_v39 = vld [vmem:[#allocation2 + $0x3f4] sm:$0xf] }
  0x44   :  { %1914 = vmatpush.bf16.msrb.mxu2 %v2906_v21  ;;  %v84_v21 = vld [vmem:[%s4750_s0 + $0x28] sm:$0xff]  ;;  %v3719_v31 = vld [vmem:[#allocation2 + $0x738] sm:$0xf0]  ;;  %v3530_v37 = vor.u32 %v4327_v27, %v3527_v29  ;;  %v4321_v41 = vld [vmem:[#allocation2 + $0x574] sm:$0xf] }
  0x45   :  { %1927 = vmatpush.bf16.msrb.mxu3 %v3098_v26  ;;  %v3335_v26 = vld [vmem:[#allocation2 + $0x438] sm:$0xf0]  ;;  %v4679_v35 = vpack.c.bf16 %v84_v21, %v84_v21  ;;  %v3311_v40 = vld [vmem:[#allocation2 + $0x408] sm:$0xf0]  ;;  %v4267_v51 = vld [vmem:[#allocation2 + $0x3c4] sm:$0xf] }
  0x46   :  { %1889 = vmatpush.bf16.msrb.mxu0 %v3646_v32  ;;  %v4677_v32 = vpack.c.bf16 %v83_v18, %v83_v18  ;;  %v3338_v36 = vor.u32 %v4279_v24, %v3335_v26  ;;  %v3503_v43 = vld [vmem:[#allocation2 + $0x588] sm:$0xf0]  ;;  %v3314_v48 = vor.u32 %v4273_v39, %v3311_v40  ;;  %v3287_v52 = vld [vmem:[#allocation2 + $0x3d8] sm:$0xf0]  ;;  %v4315_v53 = vld [vmem:[#allocation2 + $0x544] sm:$0xf] }
  0x47   :  { %1902 = vmatpush.bf16.msrb.mxu1 %v3838_v33  ;;  %v4423_v33 = vld [vmem:[#allocation2 + $0x8a4] sm:$0xf]  ;;  %v3887_v47 = vld [vmem:[#allocation2 + $0x888] sm:$0xf0]  ;;  %v3506_v49 = vor.u32 %v4321_v41, %v3503_v43  ;;  %v3479_v55 = vld [vmem:[#allocation2 + $0x558] sm:$0xf0] }
  0x48   :  { %1915 = vmatpush.bf16.msrb.mxu2 %v2882_v34  ;;  %v3911_v34 = vld [vmem:[#allocation2 + $0x8b8] sm:$0xf0]  ;;  %v4411_v58 = vld [vmem:[#allocation2 + $0x844] sm:$0xf]  ;;  %v3482_v61 = vor.u32 %v4315_v53, %v3479_v55  ;;  %v4261_v63 = vld [vmem:[#allocation2 + $0x394] sm:$0xf] }
  0x49   :  { %1928 = vmatpush.bf16.msrb.mxu3 %v3074_v38  ;;  %v3722_v38 = vor.u32 %v4375_v30, %v3719_v31  ;;  %v3914_v42 = vor.u32 %v4423_v33, %v3911_v34  ;;  %v3671_v57 = vld [vmem:[#allocation2 + $0x6d8] sm:$0xf0]  ;;  %v4309_v1 = vld [vmem:[#allocation2 + $0x514] sm:$0xf]  ;;  %v3455_v3 = vld [vmem:[#allocation2 + $0x528] sm:$0xf0] }
  0x4a   :  { %1890 = vmatpush.bf16.msrb.mxu0 %v3622_v44  ;;  %v4369_v44 = vld [vmem:[#allocation2 + $0x6f4] sm:$0xf]  ;;  %v3647_v5 = vld [vmem:[#allocation2 + $0x6a8] sm:$0xf0]  ;;  %v3458_v11 = vor.u32 %v4309_v1, %v3455_v3  ;;  %v4303_v16 = vld [vmem:[#allocation2 + $0x4e4] sm:$0xf] }
  0x4b   :  { %1903 = vmatpush.bf16.msrb.mxu1 %v3814_v45  ;;  %v3695_v45 = vld [vmem:[#allocation2 + $0x708] sm:$0xf0]  ;;  %v4357_v4 = vld [vmem:[#allocation2 + $0x694] sm:$0xf]  ;;  %v3431_v18 = vld [vmem:[#allocation2 + $0x4f8] sm:$0xf0] }
  0x4c   :  { %1916 = vmatpush.bf16.msrb.mxu2 %v2858_v46  ;;  %v4417_v46 = vld [vmem:[#allocation2 + $0x874] sm:$0xf]  ;;  %v3650_v12 = vor.u32 %v4357_v4, %v3647_v5  ;;  %v4399_v21 = vld [vmem:[#allocation2 + $0x7e4] sm:$0xf]  ;;  %v3434_v24 = vor.u32 %v4303_v16, %v3431_v18  ;;  %v3407_v31 = vld [vmem:[#allocation2 + $0x4c8] sm:$0xf0] }
  0x4d   :  { %1929 = vmatpush.bf16.msrb.mxu3 %v3050_v50  ;;  %v3698_v50 = vor.u32 %v4369_v44, %v3695_v45  ;;  %v3890_v54 = vor.u32 %v4417_v46, %v3887_v47  ;;  %v4405_v6 = vld [vmem:[#allocation2 + $0x814] sm:$0xf]  ;;  %v3599_v34 = vld [vmem:[#allocation2 + $0x648] sm:$0xf0]  ;;  %v4243_v39 = vld [vmem:[#allocation2 + $0x304] sm:$0xf] }
  0x4e   :  { %1891 = vmatpush.bf16.msrb.mxu0 %v3598_v56  ;;  %v4363_v56 = vld [vmem:[#allocation2 + $0x6c4] sm:$0xf]  ;;  %v4249_v27 = vld [vmem:[#allocation2 + $0x334] sm:$0xf]  ;;  %v3191_v40 = vld [vmem:[#allocation2 + $0x318] sm:$0xf0] }
  0x4f   :  { %1904 = vmatpush.bf16.msrb.mxu1 %v3790_v59  ;;  %v3863_v59 = vld [vmem:[#allocation2 + $0x858] sm:$0xf0]  ;;  %v3674_v62 = vor.u32 %v4363_v56, %v3671_v57  ;;  %v4297_v29 = vld [vmem:[#allocation2 + $0x4b4] sm:$0xf]  ;;  %v4291_v43 = vld [vmem:[#allocation2 + $0x484] sm:$0xf]  ;;  %v3194_v53 = vor.u32 %v4243_v39, %v3191_v40 }
  0x50   :  { %1917 = vmatpush.bf16.msrb.mxu2 %v2834_v60  ;;  %v3290_v60 = vor.u32 %v4267_v51, %v3287_v52  ;;  %v3866_v2 = vor.u32 %v4411_v58, %v3863_v59  ;;  %v4345_v33 = vld [vmem:[#allocation2 + $0x634] sm:$0xf]  ;;  %v3410_v41 = vor.u32 %v4297_v29, %v3407_v31  ;;  %v3383_v44 = vld [vmem:[#allocation2 + $0x498] sm:$0xf0]  ;;  %v4339_v45 = vld [vmem:[#allocation2 + $0x604] sm:$0xf] }
  0x51   :  { %1930 = vmatpush.bf16.msrb.mxu3 %v3026_v0  ;;  %v3263_v0 = vld [vmem:[#allocation2 + $0x3a8] sm:$0xf0]  ;;  %v3575_v47 = vld [vmem:[#allocation2 + $0x618] sm:$0xf0]  ;;  %v4193_v51 = vld [vmem:[#allocation2 + $0x16c] sm:$0xf0]  ;;  %v3386_v57 = vor.u32 %v4291_v43, %v3383_v44 }
  0x52   :  { %1892 = vmatpush.bf16.msrb.mxu0 %v3574_v7  ;;  %v3839_v7 = vld [vmem:[#allocation2 + $0x828] sm:$0xf0]  ;;  %v3266_v10 = vor.u32 %v4261_v63, %v3263_v0  ;;  %v3173_v52 = vld [vmem:[#allocation2 + $0x2d8] sm:$0xf]  ;;  %v4289_v56 = vld [vmem:[#allocation2 + $0x46c] sm:$0xf0]  ;;  %v3578_v58 = vor.u32 %v4339_v45, %v3575_v47 }
  0x53   :  { %1905 = vmatpush.bf16.msrb.mxu1 %v3766_v13  ;;  %v4255_v13 = vld [vmem:[#allocation2 + $0x364] sm:$0xf]  ;;  %v3842_v17 = vor.u32 %v4405_v6, %v3839_v7  ;;  %v3365_v55 = vld [vmem:[#allocation2 + $0x458] sm:$0xf]  ;;  %v2957_v1 = vld [vmem:[#allocation2 + $0x128] sm:$0xf] }
  0x54   :  { %1918 = vmatpush.bf16.msrb.mxu2 %v2810_v14  ;;  %v3239_v14 = vld [vmem:[#allocation2 + $0x378] sm:$0xf0]  ;;  %v3557_v59 = vld [vmem:[#allocation2 + $0x5d8] sm:$0xf]  ;;  %v3366_v0 = vor.u32 %v4289_v56, %v3365_v55  ;;  %v3149_v3 = vld [vmem:[#allocation2 + $0x2a8] sm:$0xf] }
  0x55   :  { %1931 = vmatpush.bf16.msrb.mxu3 %v3002_v19  ;;  %1893 = vmatmul.bf16.vlgmr.msrb.gmra.mxu0 %v4677_v32  ;;  %v4351_v19 = vld [vmem:[#allocation2 + $0x664] sm:$0xf]  ;;  %v4235_v5 = vld [vmem:[#allocation2 + $0x2bc] sm:$0xf0]  ;;  %v3341_v6 = vld [vmem:[#allocation2 + $0x428] sm:$0xf] }
  0x56   :  { %1937 = vmatpush.bf16.msra.mxu0 %v3362_v20  ;;  %1906 = vmatmul.bf16.vlgmr.msrb.gmra.mxu1 %v4679_v35  ;;  %v3623_v20 = vld [vmem:[#allocation2 + $0x678] sm:$0xf0]  ;;  %v4283_v7 = vld [vmem:[#allocation2 + $0x43c] sm:$0xf0]  ;;  %v2933_v16 = vld [vmem:[#allocation2 + $0xf8] sm:$0xf] }
  0x57   :  { %1950 = vmatpush.bf16.msra.mxu1 %v3554_v22  ;;  %1919 = vmatmul.bf16.vlgmr.msrb.gmra.mxu2 %v4655_v9  ;;  %v3815_v22 = vld [vmem:[#allocation2 + $0x7f8] sm:$0xf0]  ;;  %v3626_v26 = vor.u32 %v4351_v19, %v3623_v20  ;;  %v3125_v18 = vld [vmem:[#allocation2 + $0x278] sm:$0xf]  ;;  %v4229_v20 = vld [vmem:[#allocation2 + $0x28c] sm:$0xf0] }
  0x58   :  { %1963 = vmatpush.bf16.msra.mxu2 %v3746_v23  ;;  %1932 = vmatmul.bf16.vlgmr.msrb.gmra.mxu3 %v4668_v25  ;;  %v3242_v23 = vor.u32 %v4255_v13, %v3239_v14  ;;  %v3818_v30 = vor.u32 %v4399_v21, %v3815_v22  ;;  %v3150_v13 = vor.u32 %v4235_v5, %v3149_v3  ;;  %v3317_v21 = vld [vmem:[#allocation2 + $0x3f8] sm:$0xf]  ;;  %v4277_v22 = vld [vmem:[#allocation2 + $0x40c] sm:$0xf0]  ;;  %v2909_v29 = vld [vmem:[#allocation2 + $0xc8] sm:$0xf] }
  0x59   :  { %1976 = vmatpush.bf16.msra.mxu3 %v3938_v28  ;;  %v3215_v28 = vld [vmem:[#allocation2 + $0x348] sm:$0xf0]  ;;  %v3342_v14 = vor.u32 %v4283_v7, %v3341_v6  ;;  %v3101_v31 = vld [vmem:[#allocation2 + $0x248] sm:$0xf]  ;;  %v4319_v39 = vld [vmem:[#allocation2 + $0x55c] sm:$0xf0] }
  0x5a   :  { %1938 = vmatpush.bf16.msra.mxu0 %v3338_v36  ;;  %v4393_v36 = vld [vmem:[#allocation2 + $0x7b4] sm:$0xf]  ;;  %v2885_v43 = vld [vmem:[#allocation2 + $0x98] sm:$0xf]  ;;  %v4169_v44 = vld [vmem:[#allocation2 + $0xac] sm:$0xf0] }
  0x5b   :  { %1951 = vmatpush.bf16.msra.mxu1 %v3530_v37  ;;  %v3791_v37 = vld [vmem:[#allocation2 + $0x7c8] sm:$0xf0]  ;;  %v3077_v45 = vld [vmem:[#allocation2 + $0x218] sm:$0xf]  ;;  %v4217_v47 = vld [vmem:[#allocation2 + $0x22c] sm:$0xf0] }
  0x5c   :  { %1964 = vmatpush.bf16.msra.mxu2 %v3722_v38  ;;  %v3218_v38 = vor.u32 %v4249_v27, %v3215_v28  ;;  %v3794_v46 = vor.u32 %v4393_v36, %v3791_v37  ;;  %v3126_v27 = vor.u32 %v4229_v20, %v3125_v18  ;;  %v3318_v28 = vor.u32 %v4277_v22, %v3317_v21  ;;  %v3293_v36 = vld [vmem:[#allocation2 + $0x3c8] sm:$0xf]  ;;  %v4271_v37 = vld [vmem:[#allocation2 + $0x3dc] sm:$0xf0]  ;;  %v2837_v3 = vld [vmem:[#allocation2 + $0x38] sm:$0xf] }
  0x5d   :  { %1977 = vmatpush.bf16.msra.mxu3 %v3914_v42  ;;  %v3602_v42 = vor.u32 %v4345_v33, %v3599_v34  ;;  %v4223_v34 = vld [vmem:[#allocation2 + $0x25c] sm:$0xf0]  ;;  %v2861_v55 = vld [vmem:[#allocation2 + $0x68] sm:$0xf]  ;;  %v3029_v5 = vld [vmem:[#allocation2 + $0x1b8] sm:$0xf] }
  0x5e   :  { %1939 = vmatpush.bf16.msra.mxu0 %v3314_v48  ;;  %v4387_v48 = vld [vmem:[#allocation2 + $0x784] sm:$0xf]  ;;  %v4163_v56 = vld [vmem:[#allocation2 + $0x7c] sm:$0xf0]  ;;  %v4205_v7 = vld [vmem:[#allocation2 + $0x1cc] sm:$0xf0] }
  0x5f   :  { %1952 = vmatpush.bf16.msra.mxu1 %v3506_v49  ;;  %v3767_v49 = vld [vmem:[#allocation2 + $0x798] sm:$0xf0]  ;;  %v3030_v18 = vor.u32 %v4205_v7, %v3029_v5  ;;  %v3005_v20 = vld [vmem:[#allocation2 + $0x188] sm:$0xf]  ;;  %v4199_v21 = vld [vmem:[#allocation2 + $0x19c] sm:$0xf0] }
  0x60   :  { %1965 = vmatpush.bf16.msra.mxu2 %v3698_v50  ;;  %v2981_v50 = vld [vmem:[#allocation2 + $0x158] sm:$0xf]  ;;  %v3197_v22 = vld [vmem:[#allocation2 + $0x308] sm:$0xf] }
  0x61   :  { %1978 = vmatpush.bf16.msra.mxu3 %v3890_v54  ;;  %v4241_v54 = vld [vmem:[#allocation2 + $0x2ec] sm:$0xf0]  ;;  %v3677_v5 = vld [vmem:[#allocation2 + $0x6c8] sm:$0xf] }
  0x62   :  { %1940 = vmatpush.bf16.msra.mxu0 %v3290_v60  ;;  %v4337_v60 = vld [vmem:[#allocation2 + $0x5ec] sm:$0xf0]  ;;  %v3174_v63 = vor.u32 %v4241_v54, %v3173_v52  ;;  %v2886_v52 = vor.u32 %v4169_v44, %v2885_v43  ;;  %v3869_v7 = vld [vmem:[#allocation2 + $0x848] sm:$0xf] }
  0x63   :  { %1953 = vmatpush.bf16.msra.mxu1 %v3482_v61  ;;  %v3770_v61 = vor.u32 %v4387_v48, %v3767_v49  ;;  %v3558_v4 = vor.u32 %v4337_v60, %v3557_v59  ;;  %v3269_v48 = vld [vmem:[#allocation2 + $0x398] sm:$0xf]  ;;  %v4265_v49 = vld [vmem:[#allocation2 + $0x3ac] sm:$0xf0]  ;;  %v4211_v59 = vld [vmem:[#allocation2 + $0x1fc] sm:$0xf0] }
  0x64   :  { %1966 = vmatpush.bf16.msra.mxu2 %v3674_v62  ;;  %v2982_v62 = vor.u32 %v4193_v51, %v2981_v50  ;;  %v3461_v50 = vld [vmem:[#allocation2 + $0x518] sm:$0xf]  ;;  %v4313_v51 = vld [vmem:[#allocation2 + $0x52c] sm:$0xf0]  ;;  %v3270_v54 = vor.u32 %v4265_v49, %v3269_v48  ;;  %v3245_v60 = vld [vmem:[#allocation2 + $0x368] sm:$0xf] }
  0x65   :  { %1979 = vmatpush.bf16.msra.mxu3 %v3866_v2  ;;  %v4187_v2 = vld [vmem:[#allocation2 + $0x13c] sm:$0xf0] }
  0x66   :  { %1941 = vmatpush.bf16.msra.mxu0 %v3266_v10  ;;  %v3533_v10 = vld [vmem:[#allocation2 + $0x5a8] sm:$0xf]  ;;  %v4427_v49 = vld [vmem:[#allocation2 + $0x8bc] sm:$0xf0] }
  0x67   :  { %1954 = vmatpush.bf16.msra.mxu1 %v3458_v11  ;;  %v4331_v11 = vld [vmem:[#allocation2 + $0x5bc] sm:$0xf0] }
  0x68   :  { %1967 = vmatpush.bf16.msra.mxu2 %v3650_v12  ;;  %v2958_v12 = vor.u32 %v4187_v2, %v2957_v1  ;;  %v3534_v19 = vor.u32 %v4331_v11, %v3533_v10  ;;  %v3221_v10 = vld [vmem:[#allocation2 + $0x338] sm:$0xf]  ;;  %v4253_v11 = vld [vmem:[#allocation2 + $0x34c] sm:$0xf0] }
  0x69   :  { %1980 = vmatpush.bf16.msra.mxu3 %v3842_v17  ;;  %v4181_v17 = vld [vmem:[#allocation2 + $0x10c] sm:$0xf0] }
  0x6a   :  { %1942 = vmatpush.bf16.msra.mxu0 %v3242_v23  ;;  %v3509_v23 = vld [vmem:[#allocation2 + $0x578] sm:$0xf] }
  0x6b   :  { %1955 = vmatpush.bf16.msra.mxu1 %v3434_v24  ;;  %v4325_v24 = vld [vmem:[#allocation2 + $0x58c] sm:$0xf0] }
  0x6c   :  { %1968 = vmatpush.bf16.msra.mxu2 %v3626_v26  ;;  %v2934_v26 = vor.u32 %v4181_v17, %v2933_v16  ;;  %v3510_v33 = vor.u32 %v4325_v24, %v3509_v23  ;;  %v2813_v16 = vld [vmem:[#allocation2 + $0x8] sm:$0xf]  ;;  %v4151_v17 = vld [vmem:[#allocation2 + $0x1c] sm:$0xf0] }
  0x6d   :  { %1981 = vmatpush.bf16.msra.mxu3 %v3818_v30  ;;  %v4175_v30 = vld [vmem:[#allocation2 + $0xdc] sm:$0xf0] }
  0x6e   :  { %1943 = vmatpush.bf16.msra.mxu0 %v3218_v38  ;;  %v3485_v38 = vld [vmem:[#allocation2 + $0x548] sm:$0xf]  ;;  %v2910_v40 = vor.u32 %v4175_v30, %v2909_v29  ;;  %v4247_v24 = vld [vmem:[#allocation2 + $0x31c] sm:$0xf0]  ;;  %v4385_v29 = vld [vmem:[#allocation2 + $0x76c] sm:$0xf0] }
  0x6f   :  { %1956 = vmatpush.bf16.msra.mxu1 %v3410_v41  ;;  %v3102_v41 = vor.u32 %v4223_v34, %v3101_v31  ;;  %v3941_v30 = vld [vmem:[#allocation2 + $0x8d8] sm:$0xf]  ;;  %v2814_v31 = vor.u32 %v4151_v17, %v2813_v16  ;;  %v4190_v34 = vld [vmem:[#allocation2 + $0x15c] sm:$0xf]  ;;  %v3103_v16 = vld [vmem:[#allocation2 + $0x260] sm:$0xf0] }
  0x70   :  { %1969 = vmatpush.bf16.msra.mxu2 %v3602_v42  ;;  %v3294_v42 = vor.u32 %v4271_v37, %v3293_v36  ;;  %v2983_v36 = vld [vmem:[#allocation2 + $0x170] sm:$0xf0]  ;;  %v3006_v37 = vor.u32 %v4199_v21, %v3005_v20  ;;  %v3653_v20 = vld [vmem:[#allocation2 + $0x698] sm:$0xf]  ;;  %v4361_v21 = vld [vmem:[#allocation2 + $0x6ac] sm:$0xf0] }
  0x71   :  { %1982 = vmatpush.bf16.msra.mxu3 %v3794_v46  ;;  %v3486_v46 = vor.u32 %v4319_v39, %v3485_v38  ;;  %v3198_v38 = vor.u32 %v4247_v24, %v3197_v22  ;;  %v4238_v39 = vld [vmem:[#allocation2 + $0x2dc] sm:$0xf]  ;;  %v2986_v44 = vor.u32 %v4190_v34, %v2983_v36  ;;  %v3845_v22 = vld [vmem:[#allocation2 + $0x818] sm:$0xf]  ;;  %v4409_v24 = vld [vmem:[#allocation2 + $0x82c] sm:$0xf0] }
  0x72   :  { %1944 = vmatpush.bf16.msra.mxu0 %v3194_v53  ;;  %v3078_v53 = vor.u32 %v4217_v47, %v3077_v45  ;;  %v3725_v45 = vld [vmem:[#allocation2 + $0x728] sm:$0xf]  ;;  %v4355_v36 = vld [vmem:[#allocation2 + $0x67c] sm:$0xf0] }
  0x73   :  { %1957 = vmatpush.bf16.msra.mxu1 %v3386_v57  ;;  %v3053_v57 = vld [vmem:[#allocation2 + $0x1e8] sm:$0xf] }
  0x74   :  { %1970 = vmatpush.bf16.msra.mxu2 %v3578_v58  ;;  %v3462_v58 = vor.u32 %v4313_v51, %v3461_v50  ;;  %v3054_v1 = vor.u32 %v4211_v59, %v3053_v57  ;;  %v3917_v47 = vld [vmem:[#allocation2 + $0x8a8] sm:$0xf]  ;;  %v4184_v50 = vld [vmem:[#allocation2 + $0x12c] sm:$0xf]  ;;  %v2959_v51 = vld [vmem:[#allocation2 + $0x140] sm:$0xf0] }
  0x75   :  { %1983 = vmatpush.bf16.msra.mxu3 %v3770_v61  ;;  %1945 = vmatmul.bf16.vlgmr.msra.gmra.mxu0 %v4653_v8  ;;  %v4259_v61 = vld [vmem:[#allocation2 + $0x37c] sm:$0xf0]  ;;  %v3701_v57 = vld [vmem:[#allocation2 + $0x6f8] sm:$0xf]  ;;  %v3629_v34 = vld [vmem:[#allocation2 + $0x668] sm:$0xf] }
  0x76   :  { %1989 = vmatpush.bf16.msrb.mxu0 %v2982_v62  ;;  %1958 = vmatmul.bf16.vlgmr.msra.gmra.mxu1 %v4660_v15  ;;  %v3437_v62 = vld [vmem:[#allocation2 + $0x4e8] sm:$0xf]  ;;  %v3246_v2 = vor.u32 %v4259_v61, %v3245_v60  ;;  %v3893_v59 = vld [vmem:[#allocation2 + $0x878] sm:$0xf]  ;;  %v4421_v61 = vld [vmem:[#allocation2 + $0x88c] sm:$0xf0] }
  0x77   :  { %2002 = vmatpush.bf16.msrb.mxu1 %v3174_v63  ;;  %1971 = vmatmul.bf16.vlgmr.msra.gmra.mxu2 %v4677_v32  ;;  %v4307_v63 = vld [vmem:[#allocation2 + $0x4fc] sm:$0xf0] }
  0x78   :  { %2015 = vmatpush.bf16.msrb.mxu2 %v3366_v0  ;;  %1984 = vmatmul.bf16.vlgmr.msra.gmra.mxu3 %v4679_v35  ;;  %v2862_v0 = vor.u32 %v4163_v56, %v2861_v55  ;;  %v3438_v6 = vor.u32 %v4307_v63, %v3437_v62  ;;  %v3918_v55 = vor.u32 %v4427_v49, %v3917_v47  ;;  %v4178_v62 = vld [vmem:[#allocation2 + $0xfc] sm:$0xf]  ;;  %v2935_v63 = vld [vmem:[#allocation2 + $0x110] sm:$0xf0]  ;;  %v3605_v47 = vld [vmem:[#allocation2 + $0x638] sm:$0xf] }
  0x79   :  { %2028 = vmatpush.bf16.msrb.mxu3 %v3558_v4  ;;  %v4157_v4 = vld [vmem:[#allocation2 + $0x4c] sm:$0xf0]  ;;  %v2962_v56 = vor.u32 %v4184_v50, %v2959_v51  ;;  %v3797_v49 = vld [vmem:[#allocation2 + $0x7b8] sm:$0xf] }
  0x7a   :  { %1990 = vmatpush.bf16.msrb.mxu0 %v2958_v12  ;;  %v3413_v12 = vld [vmem:[#allocation2 + $0x4b8] sm:$0xf]  ;;  %v4397_v51 = vld [vmem:[#allocation2 + $0x7cc] sm:$0xf0] }
  0x7b   :  { %2003 = vmatpush.bf16.msrb.mxu1 %v3150_v13  ;;  %v4301_v13 = vld [vmem:[#allocation2 + $0x4cc] sm:$0xf0] }
  0x7c   :  { %2016 = vmatpush.bf16.msrb.mxu2 %v3342_v14  ;;  %v2838_v14 = vor.u32 %v4157_v4, %v2837_v3  ;;  %v3414_v23 = vor.u32 %v4301_v13, %v3413_v12  ;;  %v3894_v3 = vor.u32 %v4421_v61, %v3893_v59  ;;  %v2938_v4 = vor.u32 %v4178_v62, %v2935_v63  ;;  %v4172_v12 = vld [vmem:[#allocation2 + $0xcc] sm:$0xf]  ;;  %v2911_v13 = vld [vmem:[#allocation2 + $0xe0] sm:$0xf0]  ;;  %v3773_v61 = vld [vmem:[#allocation2 + $0x788] sm:$0xf] }
  0x7d   :  { %2029 = vmatpush.bf16.msrb.mxu3 %v3534_v19  ;;  %v3222_v19 = vor.u32 %v4253_v11, %v3221_v10  ;;  %v4415_v11 = vld [vmem:[#allocation2 + $0x85c] sm:$0xf0]  ;;  %v3798_v59 = vor.u32 %v4397_v51, %v3797_v49  ;;  %v4148_v63 = vld [vmem:[#allocation2 + $0xc] sm:$0xf] }
  0x7e   :  { %1991 = vmatpush.bf16.msrb.mxu0 %v2934_v26  ;;  %v3389_v26 = vld [vmem:[#allocation2 + $0x488] sm:$0xf]  ;;  %v4391_v62 = vld [vmem:[#allocation2 + $0x79c] sm:$0xf0]  ;;  %v4316_v51 = vld [vmem:[#allocation2 + $0x54c] sm:$0xf] }
  0x7f   :  { %2004 = vmatpush.bf16.msrb.mxu1 %v3126_v27  ;;  %v4295_v27 = vld [vmem:[#allocation2 + $0x49c] sm:$0xf0] }
  0x80   :  { %2017 = vmatpush.bf16.msrb.mxu2 %v3318_v28  ;;  %v3749_v28 = vld [vmem:[#allocation2 + $0x758] sm:$0xf] }
  0x81   :  { %2030 = vmatpush.bf16.msrb.mxu3 %v3510_v33  ;;  %v4433_v33 = vld [vmem:[#allocation2 + $0x8ec] sm:$0xf0] }
  0x82   :  { %1992 = vmatpush.bf16.msrb.mxu0 %v2910_v40  ;;  %v3175_v40 = vld [vmem:[#allocation2 + $0x2f0] sm:$0xf0]  ;;  %v3942_v43 = vor.u32 %v4433_v33, %v3941_v30  ;;  %v3654_v30 = vor.u32 %v4361_v21, %v3653_v20 }
  0x83   :  { %2005 = vmatpush.bf16.msrb.mxu1 %v3102_v41  ;;  %v3390_v41 = vor.u32 %v4295_v27, %v3389_v26  ;;  %v3178_v48 = vor.u32 %v4238_v39, %v3175_v40  ;;  %v4166_v26 = vld [vmem:[#allocation2 + $0x9c] sm:$0xf]  ;;  %v2887_v27 = vld [vmem:[#allocation2 + $0xb0] sm:$0xf0]  ;;  %v4403_v39 = vld [vmem:[#allocation2 + $0x7fc] sm:$0xf0] }
  0x84   :  { %2018 = vmatpush.bf16.msrb.mxu2 %v3294_v42  ;;  %v3750_v42 = vor.u32 %v4385_v29, %v3749_v28  ;;  %v4214_v28 = vld [vmem:[#allocation2 + $0x21c] sm:$0xf]  ;;  %v3079_v29 = vld [vmem:[#allocation2 + $0x230] sm:$0xf0]  ;;  %v2890_v33 = vor.u32 %v4166_v26, %v2887_v27  ;;  %v4160_v40 = vld [vmem:[#allocation2 + $0x6c] sm:$0xf] }
  0x85   :  { %2031 = vmatpush.bf16.msrb.mxu3 %v3486_v46  ;;  %v4379_v46 = vld [vmem:[#allocation2 + $0x73c] sm:$0xf0]  ;;  %v3535_v27 = vld [vmem:[#allocation2 + $0x5c0] sm:$0xf0] }
  0x86   :  { %1993 = vmatpush.bf16.msrb.mxu0 %v2886_v52  ;;  %v4232_v52 = vld [vmem:[#allocation2 + $0x2ac] sm:$0xf] }
  0x87   :  { %2006 = vmatpush.bf16.msrb.mxu1 %v3078_v53  ;;  %v3151_v53 = vld [vmem:[#allocation2 + $0x2c0] sm:$0xf0] }
  0x88   :  { %2019 = vmatpush.bf16.msrb.mxu2 %v3270_v54  ;;  %v3726_v54 = vor.u32 %v4379_v46, %v3725_v45  ;;  %v3154_v60 = vor.u32 %v4232_v52, %v3151_v53  ;;  %v4154_v52 = vld [vmem:[#allocation2 + $0x3c] sm:$0xf]  ;;  %v2839_v53 = vld [vmem:[#allocation2 + $0x50] sm:$0xf0] }
  0x89   :  { %2032 = vmatpush.bf16.msrb.mxu3 %v3462_v58  ;;  %v4373_v58 = vld [vmem:[#allocation2 + $0x70c] sm:$0xf0] }
  0x8a   :  { %1994 = vmatpush.bf16.msrb.mxu0 %v2862_v0  ;;  %v4226_v0 = vld [vmem:[#allocation2 + $0x27c] sm:$0xf] }
  0x8b   :  { %2007 = vmatpush.bf16.msrb.mxu1 %v3054_v1  ;;  %v3127_v1 = vld [vmem:[#allocation2 + $0x290] sm:$0xf0] }
  0x8c   :  { %2020 = vmatpush.bf16.msrb.mxu2 %v3246_v2  ;;  %v3702_v2 = vor.u32 %v4373_v58, %v3701_v57  ;;  %v3130_v10 = vor.u32 %v4226_v0, %v3127_v1  ;;  %v3581_v57 = vld [vmem:[#allocation2 + $0x608] sm:$0xf]  ;;  %v4343_v58 = vld [vmem:[#allocation2 + $0x61c] sm:$0xf0]  ;;  %v2815_v1 = vld [vmem:[#allocation2 + $0x20] sm:$0xf0] }
  0x8d   :  { %2033 = vmatpush.bf16.msrb.mxu3 %v3438_v6  ;;  %v4367_v6 = vld [vmem:[#allocation2 + $0x6dc] sm:$0xf0] }
  0x8e   :  { %1995 = vmatpush.bf16.msrb.mxu0 %v2838_v14  ;;  %v4220_v14 = vld [vmem:[#allocation2 + $0x24c] sm:$0xf]  ;;  %v3678_v17 = vor.u32 %v4367_v6, %v3677_v5  ;;  %v3367_v5 = vld [vmem:[#allocation2 + $0x470] sm:$0xf0]  ;;  %v4334_v6 = vld [vmem:[#allocation2 + $0x5dc] sm:$0xf] }
  0x8f   :  { %2008 = vmatpush.bf16.msrb.mxu1 %v3030_v18  ;;  %v3870_v18 = vor.u32 %v4415_v11, %v3869_v7  ;;  %v3582_v7 = vor.u32 %v4343_v58, %v3581_v57  ;;  %v4382_v11 = vld [vmem:[#allocation2 + $0x75c] sm:$0xf]  ;;  %v4412_v57 = vld [vmem:[#allocation2 + $0x84c] sm:$0xf]  ;;  %v3871_v58 = vld [vmem:[#allocation2 + $0x860] sm:$0xf0] }
  0x90   :  { %2021 = vmatpush.bf16.msrb.mxu2 %v3222_v19  ;;  %v2914_v19 = vor.u32 %v4172_v12, %v2911_v13  ;;  %v3751_v12 = vld [vmem:[#allocation2 + $0x770] sm:$0xf0]  ;;  %v3774_v13 = vor.u32 %v4391_v62, %v3773_v61 }
  0x91   :  { %2034 = vmatpush.bf16.msrb.mxu3 %v3414_v23  ;;  %v3106_v23 = vor.u32 %v4220_v14, %v3103_v16  ;;  %v2818_v14 = vor.u32 %v4148_v63, %v2815_v1  ;;  %v4430_v16 = vld [vmem:[#allocation2 + $0x8dc] sm:$0xf]  ;;  %v3754_v21 = vor.u32 %v4382_v11, %v3751_v12  ;;  %v3271_v63 = vld [vmem:[#allocation2 + $0x3b0] sm:$0xf0] }
  0x92   :  { %1996 = vmatpush.bf16.msrb.mxu0 %v2814_v31  ;;  %v3846_v31 = vor.u32 %v4409_v24, %v3845_v22  ;;  %v4280_v22 = vld [vmem:[#allocation2 + $0x42c] sm:$0xf] }
  0x93   :  { %2009 = vmatpush.bf16.msrb.mxu1 %v3006_v37  ;;  %v3821_v37 = vld [vmem:[#allocation2 + $0x7e8] sm:$0xf]  ;;  %v4328_v24 = vld [vmem:[#allocation2 + $0x5ac] sm:$0xf] }
  0x94   :  { %2022 = vmatpush.bf16.msrb.mxu2 %v3198_v38  ;;  %v3082_v38 = vor.u32 %v4214_v28, %v3079_v29  ;;  %v3822_v45 = vor.u32 %v4403_v39, %v3821_v37  ;;  %v4376_v28 = vld [vmem:[#allocation2 + $0x72c] sm:$0xf]  ;;  %v3727_v29 = vld [vmem:[#allocation2 + $0x740] sm:$0xf0]  ;;  %v4274_v37 = vld [vmem:[#allocation2 + $0x3fc] sm:$0xf] }
  0x95   :  { %2035 = vmatpush.bf16.msrb.mxu3 %v3390_v41  ;;  %1997 = vmatmul.bf16.vlgmr.msrb.gmra.mxu0 %v4655_v9  ;;  %v2863_v41 = vld [vmem:[#allocation2 + $0x80] sm:$0xf0]  ;;  %v4322_v39 = vld [vmem:[#allocation2 + $0x57c] sm:$0xf] }
  0x96   :  { %2041 = vmatpush.bf16.msra.mxu0 %v3750_v42  ;;  %2010 = vmatmul.bf16.vlgmr.msrb.gmra.mxu1 %v4668_v25  ;;  %v4208_v42 = vld [vmem:[#allocation2 + $0x1ec] sm:$0xf]  ;;  %v2866_v46 = vor.u32 %v4160_v40, %v2863_v41  ;;  %v3511_v41 = vld [vmem:[#allocation2 + $0x590] sm:$0xf0] }
  0x97   :  { %2054 = vmatpush.bf16.msra.mxu1 %v3942_v43  ;;  %2023 = vmatmul.bf16.vlgmr.msrb.gmra.mxu2 %v4653_v8  ;;  %v3055_v43 = vld [vmem:[#allocation2 + $0x200] sm:$0xf0] }
  0x98   :  { %2067 = vmatpush.bf16.msra.mxu2 %v2986_v44  ;;  %2036 = vmatmul.bf16.vlgmr.msrb.gmra.mxu3 %v4660_v15  ;;  %v3630_v44 = vor.u32 %v4355_v36, %v3629_v34  ;;  %v3058_v50 = vor.u32 %v4208_v42, %v3055_v43  ;;  %v3538_v34 = vor.u32 %v4328_v24, %v3535_v27  ;;  %v4370_v42 = vld [vmem:[#allocation2 + $0x6fc] sm:$0xf]  ;;  %v3703_v43 = vld [vmem:[#allocation2 + $0x710] sm:$0xf0]  ;;  %v3823_v24 = vld [vmem:[#allocation2 + $0x800] sm:$0xf0] }
  0x99   :  { %2080 = vmatpush.bf16.msra.mxu3 %v3178_v48  ;;  %v4349_v48 = vld [vmem:[#allocation2 + $0x64c] sm:$0xf0]  ;;  %v3730_v36 = vor.u32 %v4376_v28, %v3727_v29  ;;  %v3706_v49 = vor.u32 %v4370_v42, %v3703_v43  ;;  %v3799_v42 = vld [vmem:[#allocation2 + $0x7d0] sm:$0xf0] }
  0x9a   :  { %2042 = vmatpush.bf16.msra.mxu0 %v3726_v54  ;;  %v4202_v54 = vld [vmem:[#allocation2 + $0x1bc] sm:$0xf] }
  0x9b   :  { %2055 = vmatpush.bf16.msra.mxu1 %v3918_v55  ;;  %v3031_v55 = vld [vmem:[#allocation2 + $0x1d0] sm:$0xf0] }
  0x9c   :  { %2068 = vmatpush.bf16.msra.mxu2 %v2962_v56  ;;  %v3606_v56 = vor.u32 %v4349_v48, %v3605_v47  ;;  %v3034_v0 = vor.u32 %v4202_v54, %v3031_v55  ;;  %v4268_v47 = vld [vmem:[#allocation2 + $0x3cc] sm:$0xf]  ;;  %v3514_v48 = vor.u32 %v4322_v39, %v3511_v41  ;;  %v3679_v55 = vld [vmem:[#allocation2 + $0x6e0] sm:$0xf0]  ;;  %v3607_v39 = vld [vmem:[#allocation2 + $0x650] sm:$0xf0] }
  0x9d   :  { %2081 = vmatpush.bf16.msra.mxu3 %v3154_v60  ;;  %v2842_v60 = vor.u32 %v4154_v52, %v2839_v53  ;;  %v3487_v52 = vld [vmem:[#allocation2 + $0x560] sm:$0xf0]  ;;  %v4364_v54 = vld [vmem:[#allocation2 + $0x6cc] sm:$0xf]  ;;  %v4394_v41 = vld [vmem:[#allocation2 + $0x7bc] sm:$0xf] }
  0x9e   :  { %2043 = vmatpush.bf16.msra.mxu0 %v3702_v2  ;;  %v4196_v2 = vld [vmem:[#allocation2 + $0x18c] sm:$0xf]  ;;  %v3490_v61 = vor.u32 %v4316_v51, %v3487_v52  ;;  %v3682_v62 = vor.u32 %v4364_v54, %v3679_v55  ;;  %v3391_v52 = vld [vmem:[#allocation2 + $0x4a0] sm:$0xf0]  ;;  %v3802_v55 = vor.u32 %v4394_v41, %v3799_v42 }
  0x9f   :  { %2056 = vmatpush.bf16.msra.mxu1 %v3894_v3  ;;  %v3007_v3 = vld [vmem:[#allocation2 + $0x1a0] sm:$0xf0]  ;;  %v4292_v51 = vld [vmem:[#allocation2 + $0x48c] sm:$0xf] }
  0xa0   :  { %2069 = vmatpush.bf16.msra.mxu2 %v2938_v4  ;;  %v4286_v4 = vld [vmem:[#allocation2 + $0x45c] sm:$0xf] }
  0xa1   :  { %2082 = vmatpush.bf16.msra.mxu3 %v3130_v10  ;;  %v3559_v10 = vld [vmem:[#allocation2 + $0x5f0] sm:$0xf0] }
  0xa2   :  { %2044 = vmatpush.bf16.msra.mxu0 %v3678_v17  ;;  %v3943_v17 = vld [vmem:[#allocation2 + $0x8f0] sm:$0xf0]  ;;  %v3562_v20 = vor.u32 %v4334_v6, %v3559_v10  ;;  %v4406_v6 = vld [vmem:[#allocation2 + $0x81c] sm:$0xf] }
  0xa3   :  { %2057 = vmatpush.bf16.msra.mxu1 %v3870_v18  ;;  %v3010_v18 = vor.u32 %v4196_v2, %v3007_v3  ;;  %v3946_v26 = vor.u32 %v4430_v16, %v3943_v17  ;;  %v3874_v2 = vor.u32 %v4412_v57, %v3871_v58  ;;  %v3463_v3 = vld [vmem:[#allocation2 + $0x530] sm:$0xf0]  ;;  %v3247_v16 = vld [vmem:[#allocation2 + $0x380] sm:$0xf0]  ;;  %v4304_v17 = vld [vmem:[#allocation2 + $0x4ec] sm:$0xf] }
  0xa4   :  { %2070 = vmatpush.bf16.msra.mxu2 %v2914_v19  ;;  %v3370_v19 = vor.u32 %v4286_v4, %v3367_v5  ;;  %v4358_v4 = vld [vmem:[#allocation2 + $0x69c] sm:$0xf]  ;;  %v3655_v5 = vld [vmem:[#allocation2 + $0x6b0] sm:$0xf0]  ;;  %v3583_v57 = vld [vmem:[#allocation2 + $0x620] sm:$0xf0] }
  0xa5   :  { %2083 = vmatpush.bf16.msra.mxu3 %v3106_v23  ;;  %v3343_v23 = vld [vmem:[#allocation2 + $0x440] sm:$0xf0]  ;;  %v4388_v58 = vld [vmem:[#allocation2 + $0x78c] sm:$0xf] }
  0xa6   :  { %2045 = vmatpush.bf16.msra.mxu0 %v3654_v30  ;;  %v4424_v30 = vld [vmem:[#allocation2 + $0x8ac] sm:$0xf] }
  0xa7   :  { %2058 = vmatpush.bf16.msra.mxu1 %v3846_v31  ;;  %v3919_v31 = vld [vmem:[#allocation2 + $0x8c0] sm:$0xf0] }
  0xa8   :  { %2071 = vmatpush.bf16.msra.mxu2 %v2890_v33  ;;  %v3346_v33 = vor.u32 %v4280_v22, %v3343_v23  ;;  %v3922_v40 = vor.u32 %v4424_v30, %v3919_v31  ;;  %v3631_v22 = vld [vmem:[#allocation2 + $0x680] sm:$0xf0]  ;;  %v4400_v23 = vld [vmem:[#allocation2 + $0x7ec] sm:$0xf]  ;;  %v4250_v30 = vld [vmem:[#allocation2 + $0x33c] sm:$0xf] }
  0xa9   :  { %2084 = vmatpush.bf16.msra.mxu3 %v3082_v38  ;;  %v3319_v38 = vld [vmem:[#allocation2 + $0x410] sm:$0xf0] }
  0xaa   :  { %2046 = vmatpush.bf16.msra.mxu0 %v3630_v44  ;;  %v4418_v44 = vld [vmem:[#allocation2 + $0x87c] sm:$0xf]  ;;  %v3223_v31 = vld [vmem:[#allocation2 + $0x350] sm:$0xf0] }
  0xab   :  { %2059 = vmatpush.bf16.msra.mxu1 %v3822_v45  ;;  %v3895_v45 = vld [vmem:[#allocation2 + $0x890] sm:$0xf0] }
  0xac   :  { %2072 = vmatpush.bf16.msra.mxu2 %v2866_v46  ;;  %v3322_v46 = vor.u32 %v4274_v37, %v3319_v38  ;;  %v3898_v53 = vor.u32 %v4418_v44, %v3895_v45  ;;  %v3415_v37 = vld [vmem:[#allocation2 + $0x4d0] sm:$0xf0]  ;;  %v4346_v38 = vld [vmem:[#allocation2 + $0x63c] sm:$0xf]  ;;  %v3226_v45 = vor.u32 %v4250_v30, %v3223_v31  ;;  %v2941_v30 = vld [vmem:[#allocation2 + $0x100] sm:$0xf] }
  0xad   :  { %2085 = vmatpush.bf16.msra.mxu3 %v3058_v50  ;;  %v3295_v50 = vld [vmem:[#allocation2 + $0x3e0] sm:$0xf0]  ;;  %v4182_v31 = vld [vmem:[#allocation2 + $0x114] sm:$0xf0] }
  0xae   :  { %2047 = vmatpush.bf16.msra.mxu0 %v3606_v56  ;;  %v4697_v56 = vld [vmem:[#allocation4] sm:$0x3f]  ;;  %v2942_v41 = vor.u32 %v4182_v31, %v2941_v30  ;;  %v4158_v31 = vld [vmem:[#allocation2 + $0x54] sm:$0xf0] }
  0xaf   :  { %2060 = vmatpush.bf16.msra.mxu1 %v3798_v59  ;;  %v3298_v59 = vor.u32 %v4268_v47, %v3295_v50  ;;  %v381_v1 = vperm.slane %v4697_v56, 0  ;;  %v3199_v47 = vld [vmem:[#allocation2 + $0x320] sm:$0xf0]  ;;  %v3610_v50 = vor.u32 %v4346_v38, %v3607_v39  ;;  %v4278_v38 = vld [vmem:[#allocation2 + $0x414] sm:$0xf0] }
  0xb0   :  { %2073 = vmatpush.bf16.msra.mxu2 %v2842_v60  ;;  %v4262_v60 = vld [vmem:[#allocation2 + $0x39c] sm:$0xf]  ;;  %v3517_v39 = vld [vmem:[#allocation2 + $0x580] sm:$0xf] }
  0xb1   :  { %2086 = vmatpush.bf16.msra.mxu3 %v3034_v0  ;;  %v4310_v0 = vld [vmem:[#allocation2 + $0x51c] sm:$0xf]  ;;  %v3274_v10 = vor.u32 %v4262_v60, %v3271_v63  ;;  %v2989_v60 = vld [vmem:[#allocation2 + $0x160] sm:$0xf] }
  0xb2   :  { %2048 = vmatpush.bf16.msra.mxu0 %v3582_v7  ;;  %v3847_v7 = vld [vmem:[#allocation2 + $0x830] sm:$0xf0]  ;;  %v1842_v11 = vpop.f32.mrf.mxu0  ;;  %v3466_v12 = vor.u32 %v4310_v0, %v3463_v3  ;;  %v4242_v0 = vld [vmem:[#allocation2 + $0x2f4] sm:$0xf0]  ;;  %v2845_v30 = vld [vmem:[#allocation2 + $0x40] sm:$0xf] }
  0xb3   :  { %2061 = vmatpush.bf16.msra.mxu1 %v3774_v13  ;;  %v3658_v13 = vor.u32 %v4358_v4, %v3655_v5  ;;  %v3394_v4 = vor.u32 %v4292_v51, %v3391_v52  ;;  %v3493_v51 = vld [vmem:[#allocation2 + $0x550] sm:$0xf]  ;;  %v4320_v52 = vld [vmem:[#allocation2 + $0x564] sm:$0xf0] }
  0xb4   :  { %2074 = vmatpush.bf16.msra.mxu2 %v2818_v14  ;;  %v4256_v14 = vld [vmem:[#allocation2 + $0x36c] sm:$0xf] }
  0xb5   :  { %2087 = vmatpush.bf16.msra.mxu3 %v3010_v18  ;;  %2049 = vmatmul.bf16.vlgmr.msra.gmra.mxu0 %v4677_v32  ;;  %v1843_v18 = vadd.f32 %v1842_v11, %v381_v1  ;;  %v3373_v1 = vld [vmem:[#allocation2 + $0x460] sm:$0xf] }
  0xb6   :  { %2093 = vmatpush.bf16.msrb.mxu0 %v3370_v19  ;;  %2062 = vmatmul.bf16.vlgmr.msra.gmra.mxu1 %v4679_v35  ;;  %v3850_v19 = vor.u32 %v4406_v6, %v3847_v7  ;;  %v1855_v27 = vpop.f32.mrf.mxu1  ;;  %v3565_v6 = vld [vmem:[#allocation2 + $0x5e0] sm:$0xf]  ;;  %v4338_v7 = vld [vmem:[#allocation2 + $0x5f4] sm:$0xf0] }
  0xb7   :  { %2106 = vmatpush.bf16.msrb.mxu1 %v3562_v20  ;;  %2075 = vmatmul.bf16.vlgmr.msra.gmra.mxu2 %v4655_v9  ;;  %v3439_v20 = vld [vmem:[#allocation2 + $0x500] sm:$0xf0] }
  0xb8   :  { %2119 = vmatpush.bf16.msrb.mxu2 %v3754_v21  ;;  %2088 = vmatmul.bf16.vlgmr.msra.gmra.mxu3 %v4668_v25  ;;  %v4352_v21 = vld [vmem:[#allocation2 + $0x66c] sm:$0xf]  ;;  %v3442_v28 = vor.u32 %v4304_v17, %v3439_v20  ;;  %v4188_v17 = vld [vmem:[#allocation2 + $0x144] sm:$0xf0]  ;;  %v3566_v20 = vor.u32 %v4338_v7, %v3565_v6  ;;  %v4314_v6 = vld [vmem:[#allocation2 + $0x534] sm:$0xf0] }
  0xb9   :  { %2132 = vmatpush.bf16.msrb.mxu3 %v3946_v26  ;;  %v3250_v26 = vor.u32 %v4256_v14, %v3247_v16  ;;  %v3634_v29 = vor.u32 %v4352_v21, %v3631_v22  ;;  %v2965_v16 = vld [vmem:[#allocation2 + $0x130] sm:$0xf]  ;;  %v4236_v21 = vld [vmem:[#allocation2 + $0x2c4] sm:$0xf0]  ;;  %v382_v7 = vperm.slane %v4697_v56, 1 }
  0xba   :  { %2094 = vmatpush.bf16.msrb.mxu0 %v3346_v33  ;;  %v4298_v33 = vld [vmem:[#allocation2 + $0x4bc] sm:$0xf]  ;;  %v3349_v22 = vld [vmem:[#allocation2 + $0x430] sm:$0xf] }
  0xbb   :  { %2107 = vmatpush.bf16.msrb.mxu1 %v3538_v34  ;;  %v1856_v34 = vadd.f32 %v1855_v27, %v1843_v18  ;;  %v1881_v44 = vpop.f32.mrf.mxu3  ;;  %v3157_v18 = vld [vmem:[#allocation2 + $0x2b0] sm:$0xf]  ;;  %v2966_v27 = vor.u32 %v4188_v17, %v2965_v16  ;;  %v4212_v17 = vld [vmem:[#allocation2 + $0x204] sm:$0xf0] }
  0xbc   :  { %2120 = vmatpush.bf16.msrb.mxu2 %v3730_v36  ;;  %v3826_v36 = vor.u32 %v4400_v23, %v3823_v24  ;;  %v4284_v23 = vld [vmem:[#allocation2 + $0x444] sm:$0xf0]  ;;  %v3541_v24 = vld [vmem:[#allocation2 + $0x5b0] sm:$0xf] }
  0xbd   :  { %2133 = vmatpush.bf16.msrb.mxu3 %v3922_v40  ;;  %v1868_v40 = vpop.f32.mrf.mxu2 }
  0xbe   :  { %2095 = vmatpush.bf16.msrb.mxu0 %v3322_v46  ;;  %v1869_v43 = vadd.f32 %v1868_v40, %v1856_v34  ;;  %v4244_v46 = vld [vmem:[#allocation2 + $0x30c] sm:$0xf]  ;;  %v1857_v3 = vpop.f32.mrf.mxu1  ;;  %v4326_v40 = vld [vmem:[#allocation2 + $0x594] sm:$0xf0] }
  0xbf   :  { %2108 = vmatpush.bf16.msrb.mxu1 %v3514_v48  ;;  %v1844_v48 = vpop.f32.mrf.mxu0  ;;  %v3202_v63 = vor.u32 %v4244_v46, %v3199_v47  ;;  %v3109_v46 = vld [vmem:[#allocation2 + $0x250] sm:$0xf]  ;;  %v3518_v47 = vor.u32 %v4326_v40, %v3517_v39  ;;  %v4266_v3 = vld [vmem:[#allocation2 + $0x3b4] sm:$0xf0]  ;;  %v3421_v40 = vld [vmem:[#allocation2 + $0x4c0] sm:$0xf] }
  0xc0   :  { %2121 = vmatpush.bf16.msrb.mxu2 %v3706_v49  ;;  %v3418_v49 = vor.u32 %v4298_v33, %v3415_v37  ;;  %v4700_v54 = vadd.f32 %v1881_v44, %v1869_v43  ;;  %v3133_v33 = vld [vmem:[#allocation2 + $0x280] sm:$0xf]  ;;  %v2917_v44 = vld [vmem:[#allocation2 + $0xd0] sm:$0xf]  ;;  %v4224_v48 = vld [vmem:[#allocation2 + $0x264] sm:$0xf0] }
  0xc1   :  { %2134 = vmatpush.bf16.msrb.mxu3 %v3898_v53  ;;  %v4340_v53 = vld [vmem:[#allocation2 + $0x60c] sm:$0xf]  ;;  %v3325_v37 = vld [vmem:[#allocation2 + $0x400] sm:$0xf]  ;;  %v4254_v39 = vld [vmem:[#allocation2 + $0x354] sm:$0xf0] }
  0xc2   :  { %2096 = vmatpush.bf16.msrb.mxu0 %v3298_v59  ;;  %v3775_v59 = vld [vmem:[#allocation2 + $0x7a0] sm:$0xf0]  ;;  %v3586_v5 = vor.u32 %v4340_v53, %v3583_v57  ;;  %v3326_v43 = vor.u32 %v4278_v38, %v3325_v37  ;;  %v4206_v37 = vld [vmem:[#allocation2 + $0x1d4] sm:$0xf0]  ;;  %v3229_v38 = vld [vmem:[#allocation2 + $0x340] sm:$0xf] }
  0xc3   :  { %2109 = vmatpush.bf16.msrb.mxu1 %v3490_v61  ;;  %v4194_v61 = vld [vmem:[#allocation2 + $0x174] sm:$0xf0] }
  0xc4   :  { %2122 = vmatpush.bf16.msrb.mxu2 %v3682_v62  ;;  %v3181_v62 = vld [vmem:[#allocation2 + $0x2e0] sm:$0xf]  ;;  %v2990_v11 = vor.u32 %v4194_v61, %v2989_v60 }
  0xc5   :  { %2135 = vmatpush.bf16.msrb.mxu3 %v3874_v2  ;;  %v4290_v2 = vld [vmem:[#allocation2 + $0x474] sm:$0xf0]  ;;  %v2893_v61 = vld [vmem:[#allocation2 + $0xa0] sm:$0xf] }
  0xc6   :  { %2097 = vmatpush.bf16.msrb.mxu0 %v3274_v10  ;;  %v3778_v10 = vor.u32 %v4388_v58, %v3775_v59  ;;  %v3374_v14 = vor.u32 %v4290_v2, %v3373_v1  ;;  %v3110_v59 = vor.u32 %v4224_v48, %v3109_v46  ;;  %v4218_v1 = vld [vmem:[#allocation2 + $0x234] sm:$0xf0]  ;;  %v3277_v2 = vld [vmem:[#allocation2 + $0x3a0] sm:$0xf]  ;;  %v3230_v46 = vor.u32 %v4254_v39, %v3229_v38  ;;  %v4200_v48 = vld [vmem:[#allocation2 + $0x1a4] sm:$0xf0] }
  0xc7   :  { %2110 = vmatpush.bf16.msrb.mxu1 %v3466_v12  ;;  %v1870_v12 = vpop.f32.mrf.mxu2  ;;  %v3685_v39 = vld [vmem:[#allocation2 + $0x6d0] sm:$0xf] }
  0xc8   :  { %2123 = vmatpush.bf16.msrb.mxu2 %v3658_v13  ;;  %v3182_v13 = vor.u32 %v4242_v0, %v3181_v62  ;;  %v4170_v62 = vld [vmem:[#allocation2 + $0xb4] sm:$0xf0]  ;;  %v3494_v0 = vor.u32 %v4320_v52, %v3493_v51  ;;  %v2869_v12 = vld [vmem:[#allocation2 + $0x70] sm:$0xf]  ;;  %v4248_v51 = vld [vmem:[#allocation2 + $0x324] sm:$0xf0] }
  0xc9   :  { %2136 = vmatpush.bf16.msrb.mxu3 %v3850_v19  ;;  %v1883_v19 = vpop.f32.mrf.mxu3  ;;  %v3397_v52 = vld [vmem:[#allocation2 + $0x490] sm:$0xf] }
  0xca   :  { %2098 = vmatpush.bf16.msrb.mxu0 %v3250_v26  ;;  %v4332_v26 = vld [vmem:[#allocation2 + $0x5c4] sm:$0xf0] }
  0xcb   :  { %2111 = vmatpush.bf16.msrb.mxu1 %v3442_v28  ;;  %v3158_v28 = vor.u32 %v4236_v21, %v3157_v18  ;;  %v3542_v34 = vor.u32 %v4332_v26, %v3541_v24  ;;  %v3253_v18 = vld [vmem:[#allocation2 + $0x370] sm:$0xf]  ;;  %v4260_v19 = vld [vmem:[#allocation2 + $0x384] sm:$0xf0] }
  0xcc   :  { %2124 = vmatpush.bf16.msrb.mxu2 %v3634_v29  ;;  %v3350_v29 = vor.u32 %v4284_v23, %v3349_v22  ;;  %v3445_v21 = vld [vmem:[#allocation2 + $0x4f0] sm:$0xf]  ;;  %v4308_v22 = vld [vmem:[#allocation2 + $0x504] sm:$0xf0] }
  0xcd   :  { %2137 = vmatpush.bf16.msrb.mxu3 %v3826_v36  ;;  %v4230_v36 = vld [vmem:[#allocation2 + $0x294] sm:$0xf0] }
  0xce   :  { %2099 = vmatpush.bf16.msrb.mxu0 %v3226_v45  ;;  %v3134_v42 = vor.u32 %v4230_v36, %v3133_v33  ;;  %v4176_v45 = vld [vmem:[#allocation2 + $0xe4] sm:$0xf0]  ;;  %v3037_v33 = vld [vmem:[#allocation2 + $0x1c0] sm:$0xf]  ;;  %v3446_v36 = vor.u32 %v4308_v22, %v3445_v21 }
  0xcf   :  { %2112 = vmatpush.bf16.msrb.mxu1 %v3418_v49  ;;  %v3301_v49 = vld [vmem:[#allocation2 + $0x3d0] sm:$0xf] }
  0xd0   :  { %2125 = vmatpush.bf16.msrb.mxu2 %v3610_v50  ;;  %v4272_v50 = vld [vmem:[#allocation2 + $0x3e4] sm:$0xf0] }
  0xd1   :  { %2138 = vmatpush.bf16.msrb.mxu3 %v3802_v55  ;;  %v2918_v55 = vor.u32 %v4176_v45, %v2917_v44  ;;  %v3302_v60 = vor.u32 %v4272_v50, %v3301_v49  ;;  %v4152_v44 = vld [vmem:[#allocation2 + $0x24] sm:$0xf0]  ;;  %v3038_v45 = vor.u32 %v4206_v37, %v3037_v33  ;;  %v3205_v49 = vld [vmem:[#allocation2 + $0x310] sm:$0xf]  ;;  %v3135_v33 = vld [vmem:[#allocation2 + $0x298] sm:$0xf0] }
  0xd2   :  { %2100 = vmatpush.bf16.msrb.mxu0 %v3202_v63  ;;  %v1894_v53 = vpop.f32.mrf.mxu0  ;;  %v3085_v63 = vld [vmem:[#allocation2 + $0x220] sm:$0xf] }
  0xd3   :  { %2113 = vmatpush.bf16.msrb.mxu1 %v3394_v4  ;;  %v1895_v57 = vadd.f32 %v1894_v53, %v4700_v54  ;;  %v1907_v58 = vpop.f32.mrf.mxu1  ;;  %v2894_v54 = vor.u32 %v4170_v62, %v2893_v61  ;;  %v4296_v53 = vld [vmem:[#allocation2 + $0x4a4] sm:$0xf0]  ;;  %v4434_v62 = vld [vmem:[#allocation2 + $0x8f4] sm:$0xf0] }
  0xd4   :  { %2126 = vmatpush.bf16.msrb.mxu2 %v3586_v5  ;;  %v3469_v5 = vld [vmem:[#allocation2 + $0x520] sm:$0xf] }
  0xd5   :  { %2139 = vmatpush.bf16.msrb.mxu3 %v3778_v10  ;;  %2101 = vmatmul.bf16.vlgmr.msrb.gmra.mxu0 %v4653_v8  ;;  %v4707_v4 = vadd.f32 %v1907_v58, %v1895_v57  ;;  %v3086_v10 = vor.u32 %v4218_v1, %v3085_v63  ;;  %v3470_v16 = vor.u32 %v4314_v6, %v3469_v5  ;;  %v3757_v57 = vld [vmem:[#allocation2 + $0x760] sm:$0xf]  ;;  %v4386_v58 = vld [vmem:[#allocation2 + $0x774] sm:$0xf0]  ;;  %v4191_v63 = vld [vmem:[#allocation2 + $0x164] sm:$0xf] }
  0xd6   :  { %2145 = vmatpush.bf16.msra.mxu0 %v2990_v11  ;;  %2114 = vmatmul.bf16.vlgmr.msrb.gmra.mxu1 %v4660_v15  ;;  %v3278_v11 = vor.u32 %v4266_v3, %v3277_v2  ;;  %v3206_v2 = vor.u32 %v4248_v51, %v3205_v49  ;;  %v4239_v3 = vld [vmem:[#allocation2 + $0x2e4] sm:$0xf]  ;;  %v3183_v5 = vld [vmem:[#allocation2 + $0x2f8] sm:$0xf0]  ;;  %v3398_v6 = vor.u32 %v4296_v53, %v3397_v52  ;;  %v3661_v52 = vld [vmem:[#allocation2 + $0x6a0] sm:$0xf] }
  0xd7   :  { %2158 = vmatpush.bf16.msra.mxu1 %v3182_v13  ;;  %2127 = vmatmul.bf16.vlgmr.msrb.gmra.mxu2 %v4677_v32  ;;  %v4164_v13 = vld [vmem:[#allocation2 + $0x84] sm:$0xf0]  ;;  %v4362_v53 = vld [vmem:[#allocation2 + $0x6b4] sm:$0xf0] }
  0xd8   :  { %2171 = vmatpush.bf16.msra.mxu2 %v3374_v14  ;;  %2140 = vmatmul.bf16.vlgmr.msrb.gmra.mxu3 %v4679_v35  ;;  %v3061_v14 = vld [vmem:[#allocation2 + $0x1f0] sm:$0xf]  ;;  %v2870_v26 = vor.u32 %v4164_v13, %v2869_v12  ;;  %v4380_v12 = vld [vmem:[#allocation2 + $0x744] sm:$0xf0] }
  0xd9   :  { %2184 = vmatpush.bf16.msra.mxu3 %v3566_v20  ;;  %v3925_v13 = vld [vmem:[#allocation2 + $0x8b0] sm:$0xf] }
  0xda   :  { %2146 = vmatpush.bf16.msra.mxu0 %v2966_v27  ;;  %v1920_v20 = vpop.f32.mrf.mxu2  ;;  %v1896_v56 = vpop.f32.mrf.mxu0 }
  0xdb   :  { %2159 = vmatpush.bf16.msra.mxu1 %v3158_v28  ;;  %v1921_v23 = vadd.f32 %v1920_v20, %v382_v7  ;;  %v1933_v24 = vpop.f32.mrf.mxu3  ;;  %v1909_v27 = vpop.f32.mrf.mxu1  ;;  %v3062_v28 = vor.u32 %v4212_v17, %v3061_v14  ;;  %v3758_v7 = vor.u32 %v4386_v58, %v3757_v57  ;;  %v3186_v14 = vor.u32 %v4239_v3, %v3183_v5  ;;  %v4185_v17 = vld [vmem:[#allocation2 + $0x134] sm:$0xf]  ;;  %v3159_v20 = vld [vmem:[#allocation2 + $0x2c8] sm:$0xf0]  ;;  %v4374_v56 = vld [vmem:[#allocation2 + $0x714] sm:$0xf0] }
  0xdc   :  { %2172 = vmatpush.bf16.msra.mxu2 %v3350_v29  ;;  %v3254_v29 = vor.u32 %v4260_v19, %v3253_v18  ;;  %v2967_v18 = vld [vmem:[#allocation2 + $0x148] sm:$0xf0]  ;;  %v4233_v19 = vld [vmem:[#allocation2 + $0x2b4] sm:$0xf] }
  0xdd   :  { %2185 = vmatpush.bf16.msra.mxu3 %v3542_v34  ;;  %v4710_v34 = vadd.f32 %v1933_v24, %v1921_v23  ;;  %v2970_v23 = vor.u32 %v4185_v17, %v2967_v18  ;;  %v3709_v24 = vld [vmem:[#allocation2 + $0x700] sm:$0xf]  ;;  %v3162_v27 = vor.u32 %v4233_v19, %v3159_v20  ;;  %v4209_v17 = vld [vmem:[#allocation2 + $0x1f4] sm:$0xf]  ;;  %v3063_v18 = vld [vmem:[#allocation2 + $0x208] sm:$0xf0] }
  0xde   :  { %2147 = vmatpush.bf16.msra.mxu0 %v2942_v41  ;;  %v4302_v41 = vld [vmem:[#allocation2 + $0x4d4] sm:$0xf0] }
  0xdf   :  { %2160 = vmatpush.bf16.msra.mxu1 %v3134_v42  ;;  %v2846_v42 = vor.u32 %v4158_v31, %v2845_v30  ;;  %v3422_v50 = vor.u32 %v4302_v41, %v3421_v40  ;;  %v2943_v30 = vld [vmem:[#allocation2 + $0x118] sm:$0xf0]  ;;  %v4227_v31 = vld [vmem:[#allocation2 + $0x284] sm:$0xf]  ;;  %v4368_v40 = vld [vmem:[#allocation2 + $0x6e4] sm:$0xf0] }
  0xe0   :  { %2173 = vmatpush.bf16.msra.mxu2 %v3326_v43  ;;  %v2821_v43 = vld [vmem:[#allocation2 + $0x10] sm:$0xf] }
  0xe1   :  { %2186 = vmatpush.bf16.msra.mxu3 %v3518_v47  ;;  %v3013_v47 = vld [vmem:[#allocation2 + $0x190] sm:$0xf]  ;;  %v2822_v61 = vor.u32 %v4152_v44, %v2821_v43  ;;  %v4416_v43 = vld [vmem:[#allocation2 + $0x864] sm:$0xf0]  ;;  %v4173_v44 = vld [vmem:[#allocation2 + $0xd4] sm:$0xf] }
  0xe2   :  { %2148 = vmatpush.bf16.msra.mxu0 %v2918_v55  ;;  %v1922_v55 = vpop.f32.mrf.mxu2  ;;  %v3014_v1 = vor.u32 %v4200_v48, %v3013_v47  ;;  %v3877_v41 = vld [vmem:[#allocation2 + $0x850] sm:$0xf]  ;;  %v3111_v47 = vld [vmem:[#allocation2 + $0x268] sm:$0xf0]  ;;  %v3686_v48 = vor.u32 %v4368_v40, %v3685_v39  ;;  %v4344_v39 = vld [vmem:[#allocation2 + $0x624] sm:$0xf0] }
  0xe3   :  { %2161 = vmatpush.bf16.msra.mxu1 %v3110_v59  ;;  %v3949_v59 = vld [vmem:[#allocation2 + $0x8e0] sm:$0xf] }
  0xe4   :  { %2174 = vmatpush.bf16.msra.mxu2 %v3302_v60  ;;  %v1935_v60 = vpop.f32.mrf.mxu3  ;;  %v3853_v55 = vld [vmem:[#allocation2 + $0x820] sm:$0xf] }
  0xe5   :  { %2187 = vmatpush.bf16.msra.mxu3 %v3494_v0  ;;  %v2991_v0 = vld [vmem:[#allocation2 + $0x178] sm:$0xf0]  ;;  %v4410_v60 = vld [vmem:[#allocation2 + $0x834] sm:$0xf0] }
  0xe6   :  { %2149 = vmatpush.bf16.msra.mxu0 %v2894_v54  ;;  %v3950_v54 = vor.u32 %v4434_v62, %v3949_v59  ;;  %v2895_v62 = vld [vmem:[#allocation2 + $0xb8] sm:$0xf0]  ;;  %v3854_v3 = vor.u32 %v4410_v60, %v3853_v55 }
  0xe7   :  { %2162 = vmatpush.bf16.msra.mxu1 %v3086_v10  ;;  %v2994_v10 = vor.u32 %v4191_v63, %v2991_v0  ;;  %v4215_v63 = vld [vmem:[#allocation2 + $0x224] sm:$0xf]  ;;  %v3087_v0 = vld [vmem:[#allocation2 + $0x238] sm:$0xf0] }
  0xe8   :  { %2175 = vmatpush.bf16.msra.mxu2 %v3278_v11  ;;  %v3733_v11 = vld [vmem:[#allocation2 + $0x730] sm:$0xf] }
  0xe9   :  { %2188 = vmatpush.bf16.msra.mxu3 %v3470_v16  ;;  %v4428_v16 = vld [vmem:[#allocation2 + $0x8c4] sm:$0xf0]  ;;  %v3734_v21 = vor.u32 %v4380_v12, %v3733_v11  ;;  %v4161_v12 = vld [vmem:[#allocation2 + $0x74] sm:$0xf] }
  0xea   :  { %2150 = vmatpush.bf16.msra.mxu0 %v2870_v26  ;;  %v3926_v22 = vor.u32 %v4428_v16, %v3925_v13  ;;  %v3901_v26 = vld [vmem:[#allocation2 + $0x880] sm:$0xf]  ;;  %v4404_v11 = vld [vmem:[#allocation2 + $0x804] sm:$0xf0]  ;;  %v2871_v13 = vld [vmem:[#allocation2 + $0x88] sm:$0xf0] }
  0xeb   :  { %2163 = vmatpush.bf16.msra.mxu1 %v3062_v28  ;;  %v4422_v28 = vld [vmem:[#allocation2 + $0x894] sm:$0xf0] }
  0xec   :  { %2176 = vmatpush.bf16.msra.mxu2 %v3254_v29  ;;  %v4179_v29 = vld [vmem:[#allocation2 + $0x104] sm:$0xf]  ;;  %v3902_v37 = vor.u32 %v4422_v28, %v3901_v26  ;;  %v3805_v26 = vld [vmem:[#allocation2 + $0x7c0] sm:$0xf]  ;;  %v3066_v28 = vor.u32 %v4209_v17, %v3063_v18 }
  0xed   :  { %2189 = vmatpush.bf16.msra.mxu3 %v3446_v36  ;;  %v3710_v36 = vor.u32 %v4374_v56, %v3709_v24  ;;  %v2946_v38 = vor.u32 %v4179_v29, %v2943_v30  ;;  %v3613_v24 = vld [vmem:[#allocation2 + $0x640] sm:$0xf]  ;;  %v4350_v56 = vld [vmem:[#allocation2 + $0x654] sm:$0xf0]  ;;  %v4155_v30 = vld [vmem:[#allocation2 + $0x44] sm:$0xf] }
  0xee   :  { %2151 = vmatpush.bf16.msra.mxu0 %v2846_v42  ;;  %v3138_v42 = vor.u32 %v4227_v31, %v3135_v33  ;;  %v4398_v29 = vld [vmem:[#allocation2 + $0x7d4] sm:$0xf0]  ;;  %v2847_v31 = vld [vmem:[#allocation2 + $0x58] sm:$0xf0]  ;;  %v4203_v33 = vld [vmem:[#allocation2 + $0x1c4] sm:$0xf] }
  0xef   :  { %2164 = vmatpush.bf16.msra.mxu1 %v3038_v45  ;;  %v2919_v45 = vld [vmem:[#allocation2 + $0xe8] sm:$0xf0]  ;;  %v3806_v40 = vor.u32 %v4398_v29, %v3805_v26  ;;  %v4275_v18 = vld [vmem:[#allocation2 + $0x404] sm:$0xf] }
  0xf0   :  { %2177 = vmatpush.bf16.msra.mxu2 %v3230_v46  ;;  %v4221_v46 = vld [vmem:[#allocation2 + $0x254] sm:$0xf]  ;;  %v2922_v51 = vor.u32 %v4173_v44, %v2919_v45  ;;  %v4419_v26 = vld [vmem:[#allocation2 + $0x884] sm:$0xf] }
  0xf1   :  { %2190 = vmatpush.bf16.msra.mxu3 %v3422_v50  ;;  %v3878_v50 = vor.u32 %v4416_v43, %v3877_v41  ;;  %v3114_v59 = vor.u32 %v4221_v46, %v3111_v47  ;;  %v2850_v41 = vor.u32 %v4155_v30, %v2847_v31  ;;  %v4392_v43 = vld [vmem:[#allocation2 + $0x7a4] sm:$0xf0]  ;;  %v4149_v44 = vld [vmem:[#allocation2 + $0x14] sm:$0xf]  ;;  %v2823_v47 = vld [vmem:[#allocation2 + $0x28] sm:$0xf0] }
  0xf2   :  { %2152 = vmatpush.bf16.msra.mxu0 %v2822_v61  ;;  %v1946_v49 = vpop.f32.mrf.mxu0  ;;  %v4167_v61 = vld [vmem:[#allocation2 + $0xa4] sm:$0xf]  ;;  %v4269_v31 = vld [vmem:[#allocation2 + $0x3d4] sm:$0xf] }
  0xf3   :  { %2165 = vmatpush.bf16.msra.mxu1 %v3014_v1  ;;  %v1947_v57 = vadd.f32 %v1946_v49, %v4710_v34  ;;  %v1959_v58 = vpop.f32.mrf.mxu1  ;;  %v2898_v5 = vor.u32 %v4167_v61, %v2895_v62  ;;  %v3090_v34 = vor.u32 %v4215_v63, %v3087_v0  ;;  %v3015_v49 = vld [vmem:[#allocation2 + $0x1a8] sm:$0xf0]  ;;  %v2826_v61 = vor.u32 %v4149_v44, %v2823_v47  ;;  %v4431_v62 = vld [vmem:[#allocation2 + $0x8e4] sm:$0xf]  ;;  %v3951_v63 = vld [vmem:[#allocation2 + $0x8f8] sm:$0xf0] }
  0xf4   :  { %2178 = vmatpush.bf16.msra.mxu2 %v3206_v2  ;;  %v3662_v2 = vor.u32 %v4362_v53, %v3661_v52  ;;  %v3375_v52 = vld [vmem:[#allocation2 + $0x478] sm:$0xf0]  ;;  %v4335_v53 = vld [vmem:[#allocation2 + $0x5e4] sm:$0xf] }
  0xf5   :  { %2191 = vmatpush.bf16.msra.mxu3 %v3398_v6  ;;  %2153 = vmatmul.bf16.vlgmr.msra.gmra.mxu0 %v4655_v9  ;;  %v1960_v1 = vadd.f32 %v1959_v58, %v1947_v57  ;;  %v3637_v6 = vld [vmem:[#allocation2 + $0x670] sm:$0xf]  ;;  %v3567_v57 = vld [vmem:[#allocation2 + $0x5f8] sm:$0xf0]  ;;  %v4383_v58 = vld [vmem:[#allocation2 + $0x764] sm:$0xf] }
  0xf6   :  { %2197 = vmatpush.bf16.msrb.mxu0 %v3758_v7  ;;  %2166 = vmatmul.bf16.vlgmr.msra.gmra.mxu1 %v4668_v25  ;;  %v4356_v7 = vld [vmem:[#allocation2 + $0x684] sm:$0xf0]  ;;  %v4311_v47 = vld [vmem:[#allocation2 + $0x524] sm:$0xf] }
  0xf7   :  { %2210 = vmatpush.bf16.msrb.mxu1 %v3950_v54  ;;  %2179 = vmatmul.bf16.vlgmr.msra.gmra.mxu2 %v4653_v8  ;;  %v3829_v54 = vld [vmem:[#allocation2 + $0x7f0] sm:$0xf]  ;;  %v3638_v19 = vor.u32 %v4356_v7, %v3637_v6  ;;  %v3351_v6 = vld [vmem:[#allocation2 + $0x448] sm:$0xf0]  ;;  %v4329_v7 = vld [vmem:[#allocation2 + $0x5b4] sm:$0xf] }
  0xf8   :  { %2223 = vmatpush.bf16.msrb.mxu2 %v2994_v10  ;;  %2192 = vmatmul.bf16.vlgmr.msra.gmra.mxu3 %v4660_v15 }
  0xf9   :  { %2236 = vmatpush.bf16.msrb.mxu3 %v3186_v14 }
  0xfa   :  { %2198 = vmatpush.bf16.msrb.mxu0 %v3734_v21  ;;  %v1972_v10 = vpop.f32.mrf.mxu2  ;;  %v1948_v21 = vpop.f32.mrf.mxu0 }
  0xfb   :  { %2211 = vmatpush.bf16.msrb.mxu1 %v3926_v22  ;;  %v1973_v14 = vadd.f32 %v1972_v10, %v1960_v1  ;;  %v1985_v16 = vpop.f32.mrf.mxu3  ;;  %v3830_v22 = vor.u32 %v4404_v11, %v3829_v54  ;;  %v3954_v54 = vor.u32 %v4431_v62, %v3951_v63  ;;  %v3543_v10 = vld [vmem:[#allocation2 + $0x5c8] sm:$0xf0]  ;;  %v4323_v21 = vld [vmem:[#allocation2 + $0x584] sm:$0xf]  ;;  %v4305_v62 = vld [vmem:[#allocation2 + $0x4f4] sm:$0xf] }
  0xfc   :  { %2224 = vmatpush.bf16.msrb.mxu2 %v2970_v23  ;;  %v2874_v23 = vor.u32 %v4161_v12, %v2871_v13  ;;  %v3735_v11 = vld [vmem:[#allocation2 + $0x748] sm:$0xf0]  ;;  %v4425_v12 = vld [vmem:[#allocation2 + $0x8b4] sm:$0xf] }
  0xfd   :  { %2237 = vmatpush.bf16.msrb.mxu3 %v3162_v27  ;;  %v4717_v20 = vadd.f32 %v1985_v16, %v1973_v14  ;;  %v1961_v27 = vpop.f32.mrf.mxu1  ;;  %v3927_v13 = vld [vmem:[#allocation2 + $0x8c8] sm:$0xf0]  ;;  %v3546_v16 = vor.u32 %v4329_v7, %v3543_v10 }
  0xfe   :  { %2199 = vmatpush.bf16.msrb.mxu0 %v3710_v36  ;;  %v3039_v36 = vld [vmem:[#allocation2 + $0x1d8] sm:$0xf0]  ;;  %v3831_v7 = vld [vmem:[#allocation2 + $0x808] sm:$0xf0] }
  0xff   :  { %2212 = vmatpush.bf16.msrb.mxu1 %v3902_v37  ;;  %v3614_v37 = vor.u32 %v4350_v56, %v3613_v24  ;;  %v3042_v46 = vor.u32 %v4203_v33, %v3039_v36  ;;  %v4371_v24 = vld [vmem:[#allocation2 + $0x704] sm:$0xf]  ;;  %v3711_v56 = vld [vmem:[#allocation2 + $0x718] sm:$0xf0]  ;;  %v3303_v33 = vld [vmem:[#allocation2 + $0x3e8] sm:$0xf0] }
 0x100   :  { %2225 = vmatpush.bf16.msrb.mxu2 %v2946_v38  ;;  %v3589_v38 = vld [vmem:[#allocation2 + $0x610] sm:$0xf]  ;;  %v3903_v27 = vld [vmem:[#allocation2 + $0x898] sm:$0xf0]  ;;  %v3714_v30 = vor.u32 %v4371_v24, %v3711_v56  ;;  %v4317_v36 = vld [vmem:[#allocation2 + $0x554] sm:$0xf] }
 0x101   :  { %2238 = vmatpush.bf16.msrb.mxu3 %v3138_v42  ;;  %v3781_v42 = vld [vmem:[#allocation2 + $0x790] sm:$0xf]  ;;  %v3590_v55 = vor.u32 %v4344_v39, %v3589_v38  ;;  %v3495_v38 = vld [vmem:[#allocation2 + $0x568] sm:$0xf0]  ;;  %v4365_v39 = vld [vmem:[#allocation2 + $0x6d4] sm:$0xf] }
 0x102   :  { %2200 = vmatpush.bf16.msrb.mxu0 %v3686_v48  ;;  %v1974_v45 = vpop.f32.mrf.mxu2  ;;  %v4197_v48 = vld [vmem:[#allocation2 + $0x194] sm:$0xf]  ;;  %v3782_v60 = vor.u32 %v4392_v43, %v3781_v42  ;;  %v3306_v42 = vor.u32 %v4269_v31, %v3303_v33  ;;  %v3399_v33 = vld [vmem:[#allocation2 + $0x4a8] sm:$0xf0] }
 0x103   :  { %2213 = vmatpush.bf16.msrb.mxu1 %v3878_v50  ;;  %v1987_v50 = vpop.f32.mrf.mxu3  ;;  %v3018_v0 = vor.u32 %v4197_v48, %v3015_v49  ;;  %v4263_v45 = vld [vmem:[#allocation2 + $0x3a4] sm:$0xf] }
 0x104   :  { %2226 = vmatpush.bf16.msrb.mxu2 %v2922_v51  ;;  %v4287_v51 = vld [vmem:[#allocation2 + $0x464] sm:$0xf]  ;;  %v3471_v50 = vld [vmem:[#allocation2 + $0x538] sm:$0xf0] }
 0x105   :  { %2239 = vmatpush.bf16.msrb.mxu3 %v3114_v59  ;;  %v3759_v59 = vld [vmem:[#allocation2 + $0x778] sm:$0xf0]  ;;  %v3378_v1 = vor.u32 %v4287_v51, %v3375_v52  ;;  %v4359_v51 = vld [vmem:[#allocation2 + $0x6a4] sm:$0xf] }
 0x106   :  { %2201 = vmatpush.bf16.msrb.mxu0 %v3662_v2  ;;  %v3570_v2 = vor.u32 %v4335_v53, %v3567_v57  ;;  %v3663_v52 = vld [vmem:[#allocation2 + $0x6b8] sm:$0xf0]  ;;  %v4407_v53 = vld [vmem:[#allocation2 + $0x824] sm:$0xf] }
 0x107   :  { %2214 = vmatpush.bf16.msrb.mxu1 %v3854_v3  ;;  %v3762_v3 = vor.u32 %v4383_v58, %v3759_v59  ;;  %v3474_v58 = vor.u32 %v4311_v47, %v3471_v50  ;;  %v3666_v59 = vor.u32 %v4359_v51, %v3663_v52  ;;  %v4731_v47 = vld [vmem:[#allocation4] sm:$0x3f]  ;;  %v4441_v50 = vld [vmem:[#allocation6 + $0x30] sm:$0xff] }
 0x108   :  { %2227 = vmatpush.bf16.msrb.mxu2 %v2898_v5  ;;  %v4281_v5 = vld [vmem:[#allocation2 + $0x434] sm:$0xf]  ;;  %v4466_v51 = vld [vmem:[#allocation6 + $0xf8] sm:$0xff] }
 0x109   :  { %2240 = vmatpush.bf16.msrb.mxu3 %v3090_v34  ;;  %v4377_v34 = vld [vmem:[#allocation2 + $0x734] sm:$0xf]  ;;  %v3354_v14 = vor.u32 %v4281_v5, %v3351_v6 }
 0x10a   :  { %2202 = vmatpush.bf16.msrb.mxu0 %v3638_v19  ;;  %v3738_v17 = vor.u32 %v4377_v34, %v3735_v11  ;;  %v3327_v19 = vld [vmem:[#allocation2 + $0x418] sm:$0xf0]  ;;  %v4401_v6 = vld [vmem:[#allocation2 + $0x7f4] sm:$0xf] }
 0x10b   :  { %2215 = vmatpush.bf16.msrb.mxu1 %v3830_v22  ;;  %v3930_v22 = vor.u32 %v4425_v12, %v3927_v13  ;;  %v4251_v12 = vld [vmem:[#allocation2 + $0x344] sm:$0xf]  ;;  %v3231_v13 = vld [vmem:[#allocation2 + $0x358] sm:$0xf0] }
 0x10c   :  { %2228 = vmatpush.bf16.msrb.mxu2 %v2874_v23  ;;  %v3519_v23 = vld [vmem:[#allocation2 + $0x598] sm:$0xf0]  ;;  %v3234_v24 = vor.u32 %v4251_v12, %v3231_v13 }
 0x10d   :  { %2241 = vmatpush.bf16.msrb.mxu3 %v3066_v28  ;;  %v3330_v28 = vor.u32 %v4275_v18, %v3327_v19  ;;  %v3522_v29 = vor.u32 %v4323_v21, %v3519_v23  ;;  %v3423_v18 = vld [vmem:[#allocation2 + $0x4d8] sm:$0xf0]  ;;  %v4347_v19 = vld [vmem:[#allocation2 + $0x644] sm:$0xf] }
 0x10e   :  { %2203 = vmatpush.bf16.msrb.mxu0 %v3614_v37  ;;  %v3906_v37 = vor.u32 %v4419_v26, %v3903_v27  ;;  %v3615_v21 = vld [vmem:[#allocation2 + $0x658] sm:$0xf0]  ;;  %v4245_v27 = vld [vmem:[#allocation2 + $0x314] sm:$0xf] }
 0x10f   :  { %2216 = vmatpush.bf16.msrb.mxu1 %v3806_v40  ;;  %v3687_v40 = vld [vmem:[#allocation2 + $0x6e8] sm:$0xf0]  ;;  %v3807_v23 = vld [vmem:[#allocation2 + $0x7d8] sm:$0xf0]  ;;  %v3618_v26 = vor.u32 %v4347_v19, %v3615_v21 }
 0x110   :  { %2229 = vmatpush.bf16.msrb.mxu2 %v2850_v41  ;;  %v4413_v41 = vld [vmem:[#allocation2 + $0x854] sm:$0xf]  ;;  %v3690_v44 = vor.u32 %v4365_v39, %v3687_v40  ;;  %v3783_v40 = vld [vmem:[#allocation2 + $0x7a8] sm:$0xf0]  ;;  %v4462_v12 = vld [vmem:[#allocation6 + $0xd8] sm:$0xff] }
 0x111   :  { %2242 = vmatpush.bf16.msrb.mxu3 %v3042_v46  ;;  %v3279_v46 = vld [vmem:[#allocation2 + $0x3b8] sm:$0xf0]  ;;  %v4389_v39 = vld [vmem:[#allocation2 + $0x794] sm:$0xf] }
 0x112   :  { %2204 = vmatpush.bf16.msrb.mxu0 %v3590_v55  ;;  %v4723_v43 = vpop.f32.mrf.mxu0  ;;  %v3855_v55 = vld [vmem:[#allocation2 + $0x838] sm:$0xf0]  ;;  %v3282_v57 = vor.u32 %v4263_v45, %v3279_v46 }
 0x113   :  { %2217 = vmatpush.bf16.msrb.mxu1 %v3782_v60  ;;  %v4725_v48 = vpop.f32.mrf.mxu1  ;;  %v4257_v60 = vld [vmem:[#allocation2 + $0x374] sm:$0xf]  ;;  %v4450_v45 = vld [vmem:[#allocation6 + $0x78] sm:$0xff] }
 0x114   :  { %2230 = vmatpush.bf16.msrb.mxu2 %v2826_v61  ;;  %v3255_v61 = vld [vmem:[#allocation2 + $0x388] sm:$0xf0]  ;;  %v4458_v46 = vld [vmem:[#allocation6 + $0xb8] sm:$0xff]  ;;  %v4449_v52 = vld [vmem:[#allocation6 + $0x70] sm:$0xff] }
 0x115   :  { %2243 = vmatpush.bf16.msrb.mxu3 %v3018_v0  ;;  %2205 = vmatmul.bf16.vlgmr.msrb.gmra.mxu0 %v4677_v32  ;;  %v3858_v0 = vor.u32 %v4407_v53, %v3855_v55  ;;  %v4457_v53 = vld [vmem:[#allocation6 + $0xb0] sm:$0xff] }
 0x116   :  { %2249 = vmatpush.bf16.msra.mxu0 %v3378_v1  ;;  %2218 = vmatmul.bf16.vlgmr.msrb.gmra.mxu1 %v4679_v35  ;;  %v3447_v1 = vld [vmem:[#allocation2 + $0x508] sm:$0xf0]  ;;  %v4453_v13 = vld [vmem:[#allocation6 + $0x90] sm:$0xff] }
 0x117   :  { %2262 = vmatpush.bf16.msra.mxu1 %v3570_v2  ;;  %2231 = vmatmul.bf16.vlgmr.msrb.gmra.mxu2 %v4655_v9  ;;  %v3879_v9 = vld [vmem:[#allocation2 + $0x868] sm:$0xf0]  ;;  %v4353_v2 = vld [vmem:[#allocation2 + $0x674] sm:$0xf]  ;;  %v3450_v34 = vor.u32 %v4305_v62, %v3447_v1  ;;  %v4438_v1 = vld [vmem:[#allocation6 + $0x18] sm:$0xff] }
 0x118   :  { %2275 = vmatpush.bf16.msra.mxu2 %v3762_v3  ;;  %2244 = vmatmul.bf16.vlgmr.msrb.gmra.mxu3 %v4668_v25  ;;  %v3498_v25 = vor.u32 %v4317_v36, %v3495_v38  ;;  %v3882_v49 = vor.u32 %v4413_v41, %v3879_v9  ;;  %v3639_v3 = vld [vmem:[#allocation2 + $0x688] sm:$0xf0]  ;;  %v4341_v36 = vld [vmem:[#allocation2 + $0x614] sm:$0xf] }
 0x119   :  { %2288 = vmatpush.bf16.msra.mxu3 %v3954_v54  ;;  %v3258_v54 = vor.u32 %v4257_v60, %v3255_v61  ;;  %v3642_v11 = vor.u32 %v4353_v2, %v3639_v3  ;;  %v4456_v60 = vld [vmem:[#allocation6 + $0xa8] sm:$0xff]  ;;  %v4463_v2 = vld [vmem:[#allocation6 + $0xe0] sm:$0xff]  ;;  %v4446_v3 = vld [vmem:[#allocation6 + $0x58] sm:$0xff] }
 0x11a   :  { %2250 = vmatpush.bf16.msra.mxu0 %v3354_v14  ;;  %v4727_v63 = vpop.f32.mrf.mxu2  ;;  %v2000_v10 = vpop.f32.mrf.mxu0  ;;  %v4299_v14 = vld [vmem:[#allocation2 + $0x4c4] sm:$0xf] }
 0x11b   :  { %2263 = vmatpush.bf16.msra.mxu1 %v3546_v16  ;;  %v4729_v5 = vpop.f32.mrf.mxu3  ;;  %v2013_v16 = vpop.f32.mrf.mxu1  ;;  %v3426_v56 = vor.u32 %v4299_v14, %v3423_v18  ;;  %v4452_v18 = vld [vmem:[#allocation6 + $0x88] sm:$0xff] }
 0x11c   :  { %2276 = vmatpush.bf16.msra.mxu2 %v3738_v17  ;;  %v3834_v17 = vor.u32 %v4401_v6, %v3831_v7  ;;  %v4436_v16 = vld [vmem:[#allocation6 + $0x8] sm:$0xff] }
 0x11d   :  { %2289 = vmatpush.bf16.msra.mxu3 %v3930_v22  ;;  %v4395_v22 = vld [vmem:[#allocation2 + $0x7c4] sm:$0xf] }
 0x11e   :  { %2251 = vmatpush.bf16.msra.mxu0 %v3330_v28  ;;  %v3207_v28 = vld [vmem:[#allocation2 + $0x328] sm:$0xf0]  ;;  %v3810_v31 = vor.u32 %v4395_v22, %v3807_v23 }
 0x11f   :  { %2264 = vmatpush.bf16.msra.mxu1 %v3522_v29  ;;  %v4293_v29 = vld [vmem:[#allocation2 + $0x494] sm:$0xf]  ;;  %v3210_v41 = vor.u32 %v4245_v27, %v3207_v28  ;;  %v4435_v23 = vld [vmem:[#allocation6] sm:$0xff]  ;;  %v2302_v28 = vmax.f32 %v4717_v20, 0.0 }
 0x120   :  { %2277 = vmatpush.bf16.msra.mxu2 %v3714_v30  ;;  %v3402_v9 = vor.u32 %v4293_v29, %v3399_v33  ;;  %v4451_v27 = vld [vmem:[#allocation6 + $0x80] sm:$0xff] }
 0x121   :  { %2290 = vmatpush.bf16.msra.mxu3 %v3906_v37  ;;  %v3591_v37 = vld [vmem:[#allocation2 + $0x628] sm:$0xf0] }
 0x122   :  { %2252 = vmatpush.bf16.msra.mxu0 %v3306_v42  ;;  %v2026_v30 = vpop.f32.mrf.mxu2  ;;  %v3594_v42 = vor.u32 %v4341_v36, %v3591_v37  ;;  %v4459_v36 = vld [vmem:[#allocation6 + $0xc0] sm:$0xff]  ;;  %v2308_v37 = vpack.c.bf16 %v2302_v28, %v2302_v28 }
 0x123   :  { %2265 = vmatpush.bf16.msra.mxu1 %v3498_v25  ;;  %v2039_v38 = vpop.f32.mrf.mxu3  ;;  %v3786_v25 = vor.u32 %v4389_v39, %v3783_v40  ;;  %v4474_v30 = vld [vmem:[#allocation6 + $0x138] sm:$0xff] }
 0x124   :  { %2278 = vmatpush.bf16.msra.mxu2 %v3690_v44  ;;  %v4442_v44 = vld [vmem:[#allocation6 + $0x38] sm:$0xff] }
 0x125   :  { %2291 = vmatpush.bf16.msra.mxu3 %v3882_v49  ;;  %v383_v49 = vperm.slane %v4731_v47, 2 }
 0x126   :  { %2253 = vmatpush.bf16.msra.mxu0 %v3282_v57  ;;  %v4440_v57 = vld [vmem:[#allocation6 + $0x28] sm:$0xff] }
 0x127   :  { %2266 = vmatpush.bf16.msra.mxu1 %v3474_v58  ;;  %v1999_v55 = vadd.f32 %v4723_v43, %v383_v49  ;;  %v4465_v58 = vld [vmem:[#allocation6 + $0xf0] sm:$0xff]  ;;  %v4464_v43 = vld [vmem:[#allocation6 + $0xe8] sm:$0xff] }
 0x128   :  { %2279 = vmatpush.bf16.msra.mxu2 %v3666_v59  ;;  %v4448_v59 = vld [vmem:[#allocation6 + $0x68] sm:$0xff] }
 0x129   :  { %2292 = vmatpush.bf16.msra.mxu3 %v3858_v0  ;;  %v2012_v61 = vadd.f32 %v4725_v48, %v1999_v55  ;;  %v4454_v48 = vld [vmem:[#allocation6 + $0x98] sm:$0xff] }
 0x12a   :  { %2254 = vmatpush.bf16.msra.mxu0 %v3258_v54 }
 0x12b   :  { %2267 = vmatpush.bf16.msra.mxu1 %v3450_v34  ;;  %v2025_v0 = vadd.f32 %v4727_v63, %v2012_v61  ;;  %v4437_v34 = vld [vmem:[#allocation6 + $0x10] sm:$0xff] }
 0x12c   :  { %2280 = vmatpush.bf16.msra.mxu2 %v3642_v11  ;;  %v4445_v63 = vld [vmem:[#allocation6 + $0x50] sm:$0xff] }
 0x12d   :  { %2293 = vmatpush.bf16.msra.mxu3 %v3834_v17  ;;  %v2038_v6 = vadd.f32 %v4729_v5, %v2025_v0  ;;  %v4461_v17 = vld [vmem:[#allocation6 + $0xd0] sm:$0xff]  ;;  %v4444_v5 = vld [vmem:[#allocation6 + $0x48] sm:$0xff]  ;;  %v4482_v0 = vld [vmem:[#allocation6 + $0x178] sm:$0xff] }
 0x12e   :  { %2255 = vmatpush.bf16.msra.mxu0 %v3234_v24  ;;  %v4460_v24 = vld [vmem:[#allocation6 + $0xc8] sm:$0xff] }
 0x12f   :  { %2268 = vmatpush.bf16.msra.mxu1 %v3426_v56  ;;  %v2301_v56 = vmax.f32 %v4707_v4, 0.0  ;;  %v4473_v4 = vld [vmem:[#allocation6 + $0x130] sm:$0xff] }
 0x130   :  { %2281 = vmatpush.bf16.msra.mxu2 %v3618_v26  ;;  %v4443_v26 = vld [vmem:[#allocation6 + $0x40] sm:$0xff] }
 0x131   :  { %2294 = vmatpush.bf16.msra.mxu3 %v3810_v31  ;;  %v384_v31 = vperm.slane %v4731_v47, 3  ;;  %v2307_v33 = vpack.c.bf16 %v2301_v56, %v2301_v56 }
 0x132   :  { %2256 = vmatpush.bf16.msra.mxu0 %v3210_v41  ;;  %v2050_v62 = vpop.f32.mrf.mxu0  ;;  %v4472_v41 = vld [vmem:[#allocation6 + $0x128] sm:$0xff] }
 0x133   :  { %2269 = vmatpush.bf16.msra.mxu1 %v3402_v9  ;;  %v2051_v14 = vadd.f32 %v2050_v62, %v2038_v6  ;;  %v4468_v62 = vld [vmem:[#allocation6 + $0x108] sm:$0xff] }
 0x134   :  { %2282 = vmatpush.bf16.msra.mxu2 %v3594_v42 }
 0x135   :  { %2295 = vmatpush.bf16.msra.mxu3 %v3786_v25  ;;  %2257 = vmatmul.bf16.vlgmr.msra.gmra.mxu0 %v4653_v8  ;;  %v4439_v8 = vld [vmem:[#allocation6 + $0x20] sm:$0xff] }
 0x136   :  { %2701 = vmatpush.bf16.msrb.mxu0 %v4442_v44  ;;  %2270 = vmatmul.bf16.vlgmr.msra.gmra.mxu1 %v4660_v15  ;;  %v2063_v15 = vpop.f32.mrf.mxu1  ;;  %v4471_v25 = vld [vmem:[#allocation6 + $0x120] sm:$0xff] }
 0x137   :  { %2714 = vmatpush.bf16.msrb.mxu1 %v4450_v45  ;;  %2283 = vmatmul.bf16.vlgmr.msra.gmra.mxu2 %v4677_v32  ;;  %v4447_v32 = vld [vmem:[#allocation6 + $0x60] sm:$0xff]  ;;  %v2064_v19 = vadd.f32 %v2063_v15, %v2051_v14 }
 0x138   :  { %2727 = vmatpush.bf16.msrb.mxu2 %v4458_v46  ;;  %2296 = vmatmul.bf16.vlgmr.msra.gmra.mxu3 %v4679_v35  ;;  %v4455_v35 = vld [vmem:[#allocation6 + $0xa0] sm:$0xff] }
 0x139   :  { %2740 = vmatpush.bf16.msrb.mxu3 %v4466_v51  ;;  %v2303_v29 = vmax.f32 %v2064_v19, 0.0  ;;  %v4467_v15 = vld [vmem:[#allocation6 + $0x100] sm:$0xff]  ;;  %v4476_v19 = vld [vmem:[#allocation6 + $0x148] sm:$0xff] }
 0x13a   :  { %2702 = vmatpush.bf16.msrb.mxu0 %v4441_v50  ;;  %v2076_v7 = vpop.f32.mrf.mxu2  ;;  %v2052_v10 = vpop.f32.mrf.mxu0  ;;  %v4470_v50 = vld [vmem:[#allocation6 + $0x118] sm:$0xff] }
 0x13b   :  { %2715 = vmatpush.bf16.msrb.mxu1 %v4449_v52  ;;  %v2089_v54 = vpop.f32.mrf.mxu3  ;;  %v2309_v38 = vpack.c.bf16 %v2303_v29, %v2303_v29  ;;  %v2077_v39 = vadd.f32 %v2076_v7, %v384_v31  ;;  %v4479_v10 = vld [vmem:[#allocation6 + $0x160] sm:$0xff]  ;;  %v386_v29 = vperm.slane %v4731_v47, 5 }
 0x13c   :  { %2728 = vmatpush.bf16.msrb.mxu2 %v4457_v53 }
 0x13d   :  { %2741 = vmatpush.bf16.msrb.mxu3 %v4465_v58  ;;  %v2090_v20 = vadd.f32 %v2089_v54, %v2077_v39 }
 0x13e   :  { %2703 = vmatpush.bf16.msrb.mxu0 %v4440_v57  ;;  %v2065_v11 = vpop.f32.mrf.mxu1  ;;  %v4469_v57 = vld [vmem:[#allocation6 + $0x110] sm:$0xff] }
 0x13f   :  { %2716 = vmatpush.bf16.msrb.mxu1 %v4448_v59 }
 0x140   :  { %2729 = vmatpush.bf16.msrb.mxu2 %v4456_v60 }
 0x141   :  { %2742 = vmatpush.bf16.msrb.mxu3 %v4464_v43 }
 0x142   :  { %2704 = vmatpush.bf16.msrb.mxu0 %v4439_v8  ;;  %v2078_v21 = vpop.f32.mrf.mxu2 }
 0x143   :  { %2717 = vmatpush.bf16.msrb.mxu1 %v4447_v32  ;;  %v2091_v22 = vpop.f32.mrf.mxu3 }
 0x144   :  { %2730 = vmatpush.bf16.msrb.mxu2 %v4455_v35 }
 0x145   :  { %2743 = vmatpush.bf16.msrb.mxu3 %v4463_v2  ;;  %v4481_v2 = vld [vmem:[#allocation6 + $0x170] sm:$0xff] }
 0x146   :  { %2705 = vmatpush.bf16.msrb.mxu0 %v4438_v1 }
 0x147   :  { %2718 = vmatpush.bf16.msrb.mxu1 %v4446_v3  ;;  %v385_v3 = vperm.slane %v4731_v47, 4 }
 0x148   :  { %2731 = vmatpush.bf16.msrb.mxu2 %v4454_v48  ;;  %v4480_v48 = vld [vmem:[#allocation6 + $0x168] sm:$0xff] }
 0x149   :  { %2744 = vmatpush.bf16.msrb.mxu3 %v4462_v12 }
 0x14a   :  { %2706 = vmatpush.bf16.msrb.mxu0 %v4437_v34 }
 0x14b   :  { %2719 = vmatpush.bf16.msrb.mxu1 %v4445_v63  ;;  %v4478_v63 = vld [vmem:[#allocation6 + $0x158] sm:$0xff] }
 0x14c   :  { %2732 = vmatpush.bf16.msrb.mxu2 %v4453_v13 }
 0x14d   :  { %2745 = vmatpush.bf16.msrb.mxu3 %v4461_v17  ;;  %v4477_v17 = vld [vmem:[#allocation6 + $0x150] sm:$0xff] }
 0x14e   :  { %2707 = vmatpush.bf16.msrb.mxu0 %v4436_v16 }
 0x14f   :  { %2720 = vmatpush.bf16.msrb.mxu1 %v4444_v5 }
 0x150   :  { %2733 = vmatpush.bf16.msrb.mxu2 %v4452_v18 }
 0x151   :  { %2746 = vmatpush.bf16.msrb.mxu3 %v4460_v24 }
 0x152   :  { %2708 = vmatpush.bf16.msrb.mxu0 %v4435_v23  ;;  %v2102_v40 = vpop.f32.mrf.mxu0 }
 0x153   :  { %2721 = vmatpush.bf16.msrb.mxu1 %v4443_v26  ;;  %v2103_v9 = vadd.f32 %v2102_v40, %v2090_v20  ;;  %v2115_v42 = vpop.f32.mrf.mxu1  ;;  %v4475_v26 = vld [vmem:[#allocation6 + $0x140] sm:$0xff] }
 0x154   :  { %2734 = vmatpush.bf16.msrb.mxu2 %v4451_v27 }
 0x155   :  { %2709 = vmatmul.bf16.vlgmr.msrb.gmra.mxu0 %v2307_v33  ;;  %2747 = vmatpush.bf16.msrb.mxu3 %v4459_v36  ;;  %v2116_v44 = vadd.f32 %v2115_v42, %v2103_v9 }
 0x156   :  { %2753 = vmatpush.bf16.msra.mxu0 %v4474_v30  ;;  %2722 = vmatmul.bf16.vlgmr.msrb.gmra.mxu1 %v2308_v37 }
 0x157   :  { %2735 = vmatmul.bf16.vlgmr.msrb.gmra.mxu2 %v2309_v38  ;;  %2766 = vmatpush.bf16.msra.mxu1 %v4482_v0 }
 0x15a   :  { %2754 = vmatpush.bf16.msra.mxu0 %v4473_v4  ;;  %v2128_v45 = vpop.f32.mrf.mxu2  ;;  %v2104_v52 = vpop.f32.mrf.mxu0 }
 0x15b   :  { %v2129_v46 = vadd.f32 %v2128_v45, %v2116_v44  ;;  %v2141_v49 = vpop.f32.mrf.mxu3  ;;  %v2117_v53 = vpop.f32.mrf.mxu1  ;;  %2767 = vmatpush.bf16.msra.mxu1 %v4481_v2 }
 0x15d   :  { %v2142_v51 = vadd.f32 %v2141_v49, %v2129_v46  ;;  %v4491_v46 = vld [vmem:[#allocation7] ss:$0 sm:$0xff] }
 0x15e   :  { %2755 = vmatpush.bf16.msra.mxu0 %v4472_v41 }
 0x15f   :  { %v2304_v55 = vmax.f32 %v2142_v51, 0.0  ;;  %2768 = vmatpush.bf16.msra.mxu1 %v4480_v48 }
 0x161   :  { %v2310_v58 = vpack.c.bf16 %v2304_v55, %v2304_v55 }
 0x162   :  { %2756 = vmatpush.bf16.msra.mxu0 %v4471_v25  ;;  %v2130_v59 = vpop.f32.mrf.mxu2 }
 0x163   :  { %2748 = vmatmul.bf16.vlgmr.msrb.gmra.mxu3 %v2310_v58  ;;  %v2143_v60 = vpop.f32.mrf.mxu3  ;;  %2769 = vmatpush.bf16.msra.mxu1 %v4479_v10 }
 0x166   :  { %2757 = vmatpush.bf16.msra.mxu0 %v4470_v50 }
 0x167   :  { %2770 = vmatpush.bf16.msra.mxu1 %v4478_v63 }
 0x16a   :  { %2758 = vmatpush.bf16.msra.mxu0 %v4469_v57 }
 0x16b   :  { %2771 = vmatpush.bf16.msra.mxu1 %v4477_v17 }
 0x16e   :  { %2759 = vmatpush.bf16.msra.mxu0 %v4468_v62 }
 0x16f   :  { %2772 = vmatpush.bf16.msra.mxu1 %v4476_v19 }
 0x172   :  { %v2154_v61 = vpop.f32.mrf.mxu0  ;;  %2760 = vmatpush.bf16.msra.mxu0 %v4467_v15 }
 0x173   :  { %v2167_v8 = vpop.f32.mrf.mxu1  ;;  %v2155_v6 = vadd.f32 %v2154_v61, %v385_v3  ;;  %2773 = vmatpush.bf16.msra.mxu1 %v4475_v26 }
 0x175   :  { %v2168_v34 = vadd.f32 %v2167_v8, %v2155_v6 }
 0x17a   :  { %v2180_v43 = vpop.f32.mrf.mxu2  ;;  %v2156_v32 = vpop.f32.mrf.mxu0 }
 0x17b   :  { %v2193_v35 = vpop.f32.mrf.mxu3  ;;  %v2169_v1 = vpop.f32.mrf.mxu1  ;;  %v2181_v11 = vadd.f32 %v2180_v43, %v2168_v34 }
 0x17d   :  { %v2194_v12 = vadd.f32 %v2193_v35, %v2181_v11 }
 0x182   :  { %v2182_v7 = vpop.f32.mrf.mxu2 }
 0x183   :  { %v2195_v54 = vpop.f32.mrf.mxu3 }
 0x192   :  { %v2206_v13 = vpop.f32.mrf.mxu0 }
 0x193   :  { %v2207_v14 = vadd.f32 %v2206_v13, %v2194_v12  ;;  %v2219_v16 = vpop.f32.mrf.mxu1 }
 0x195   :  { %v2220_v5 = vadd.f32 %v2219_v16, %v2207_v14 }
 0x197   :  { %v2305_v18 = vmax.f32 %v2220_v5, 0.0 }
 0x199   :  { %v2311_v21 = vpack.c.bf16 %v2305_v18, %v2305_v18 }
 0x19a   :  { %v2232_v22 = vpop.f32.mrf.mxu2  ;;  %v2208_v24 = vpop.f32.mrf.mxu0 }
 0x19b   :  { %v2245_v23 = vpop.f32.mrf.mxu3  ;;  %2761 = vmatmul.bf16.vlgmr.msra.gmra.mxu0 %v2311_v21  ;;  %v2221_v56 = vpop.f32.mrf.mxu1  ;;  %v2233_v30 = vadd.f32 %v2232_v22, %v386_v29 }
 0x19d   :  { %v2246_v31 = vadd.f32 %v2245_v23, %v2233_v30 }
 0x1a2   :  { %v2234_v27 = vpop.f32.mrf.mxu2 }
 0x1a3   :  { %v2247_v28 = vpop.f32.mrf.mxu3 }
 0x1b2   :  { %v2258_v33 = vpop.f32.mrf.mxu0 }
 0x1b3   :  { %v2271_v36 = vpop.f32.mrf.mxu1  ;;  %v2259_v37 = vadd.f32 %v2258_v33, %v2246_v31 }
 0x1b5   :  { %v2272_v38 = vadd.f32 %v2271_v36, %v2259_v37 }
 0x1ba   :  { %v2284_v4 = vpop.f32.mrf.mxu2  ;;  %v2260_v40 = vpop.f32.mrf.mxu0 }
 0x1bb   :  { %v2297_v39 = vpop.f32.mrf.mxu3  ;;  %v2285_v20 = vadd.f32 %v2284_v4, %v2272_v38  ;;  %v2273_v41 = vpop.f32.mrf.mxu1 }
 0x1bd   :  { %v2298_v9 = vadd.f32 %v2297_v39, %v2285_v20 }
 0x1bf   :  { %v2306_v42 = vmax.f32 %v2298_v9, 0.0 }
 0x1c1   :  { %v2312_v25 = vpack.c.bf16 %v2306_v42, %v2306_v42 }
 0x1c2   :  { %v2286_v44 = vpop.f32.mrf.mxu2 }
 0x1c3   :  { %v2299_v45 = vpop.f32.mrf.mxu3  ;;  %2774 = vmatmul.bf16.vlgmr.msra.gmra.mxu1 %v2312_v25 }
 0x1d2   :  { %v2710_v49 = vpop.f32.mrf.mxu0 }
 0x1d3   :  { %v2711_v47 = vadd.f32 %v4491_v46, %v2710_v49  ;;  %v2723_v50 = vpop.f32.mrf.mxu1 }
 0x1d5   :  { %v2724_v51 = vadd.f32 %v2723_v50, %v2711_v47 }
 0x1da   :  { %v2736_v52 = vpop.f32.mrf.mxu2  ;;  %v2712_v55 = vpop.f32.mrf.mxu0 }
 0x1db   :  { %v2737_v53 = vadd.f32 %v2736_v52, %v2724_v51  ;;  %v2725_v57 = vpop.f32.mrf.mxu1 }
 0x1e2   :  { %v2738_v58 = vpop.f32.mrf.mxu2 }
 0x1e6   :  { %v2749_v59 = vpop.f32.mrf.mxu3 }
 0x1e7   :  { %v2750_v60 = vadd.f32 %v2749_v59, %v2737_v53 }
 0x1ee   :  { %v2751_v61 = vpop.f32.mrf.mxu3 }
 0x218   :  { %v2762_v62 = vpop.f32.mrf.mxu0 }
 0x219   :  { %v2763_v15 = vadd.f32 %v2762_v62, %v2750_v60 }
 0x220   :  { %v2764_v8 = vpop.f32.mrf.mxu0 }
 0x240   :  { %v2775_v43 = vpop.f32.mrf.mxu1 }
 0x241   :  { %v2776_v32 = vadd.f32 %v2775_v43, %v2763_v15 }
 0x243   :  { %v2779_v35 = vmul.f32 %v2776_v32, %v2776_v32 }
 0x245   :  { %2780 = vadd.xlane.f32.xlu0 %v2779_v35 }
 0x248   :  { %v2777_v0 = vpop.f32.mrf.mxu1 }
 0x2b8   :  { %v2781_v1 = vpop.xlane.xlu0 %2780 }
 0x2b9   :  { %v2782_v2 = vmax.f32 %v2781_v1, 1e-24 }
 0x2bb   :  { %4492 = vrsqrt.f32 %v2782_v2  ;;  %vm2789_vm1 = vweird.f32 %v2782_v2 }
 0x2c1   :  { %v4493_v3 = vpop.eup %4492 }
 0x2c2   :  { %v2784_v48 = vmul.f32 %v4493_v3, %v2782_v2  ;;  %vm2790_vm0 = vweird.f32 %v4493_v3 }
 0x2c3   :  { %vm2791_vm2 = vmor %vm2789_vm1, %vm2790_vm0 }
 0x2c4   :  { %v2785_v6 = vmul.f32 %v4493_v3, %v2784_v48 }
 0x2c6   :  { %v2786_v7 = vmul.f32 0.5, %v2785_v6 }
 0x2c8   :  { %v2787_v54 = vsub.f32 1.5, %v2786_v7 }
 0x2ca   :  { %v2788_v10 = vmul.f32 %v4493_v3, %v2787_v54 }
 0x2cc   :  { %v2792_v34 = vsel %vm2791_vm2, %v4493_v3, %v2788_v10 }
 0x2cd   :  { %v2793_v11 = vmul.f32 %v2792_v34, %v2776_v32 }
 0x2cf   :  { %v2794_v12 = vpack.c.bf16 %v2793_v11, %v2793_v11 }
 0x2d1   :  { %2795 = vst [vmem:[%s4755_s5] sm:$0xf] %v2794_v12 }
 0x2d2   :  { %2800 = vsyncpa [#allocation3], 1 }
 0x2d3   :  { %2801 = vsyncpa [#allocation5], 1 }
 0x2d4   :  { %2802 = vsyncpa [#allocation8], 1 }

</bundles_post_ra>
